<compile_context>
chip_gen: v5e
topology: v5e:2x2
jax: 0.10.0
libtpu: 0.0.40
codegen_flags: <defaults>
</compile_context>

<pallas_src>
import math

import jax
import jax.numpy as jnp
from jax.experimental import pallas as pl
from jax.experimental.pallas import tpu as pltpu

EPS = 1e-5      # torch.nn.BatchNorm2d default eps
LANE = 128      # TPU vreg lane width


# ----------------------------- kernels ---------------------------------------


def _conv3x3_stats_body(x, w_ref, z_ref, stats_ref, xp_ref, acc_ref):
    """x: (H, W, Cp) f32 pre-activation for this image.
    Writes the pre-BN conv output to z_ref[0] and per-image (sum, sum^2) to stats_ref[0]."""
    H, W, Cp = x.shape
    # nn.ZeroPad2d(1) done in-kernel: border re-zeroed every step (megacore-safe, cheap memset),
    # interior overwritten with the activation -- saves a full padded-array HBM round trip.
    xp_ref[...] = jnp.zeros_like(xp_ref)
    xp_ref[1:H + 1, 1:W + 1, :] = x
    # 3x3 stride-1 conv = 9 shifted (H*W, Cp) x (Cp, Cp) MXU matmuls into a f32 VMEM accumulator
    # (explicit scratch keeps the accumulator out of vreg carry chains).
    acc_ref[...] = jnp.zeros_like(acc_ref)
    for kh in range(3):
        for kw in range(3):
            patch = xp_ref[kh:kh + H, kw:kw + W, :].reshape(H * W, Cp)
            acc_ref[...] += jnp.dot(patch, w_ref[kh, kw],
                                    preferred_element_type=jnp.float32)
    acc = acc_ref[...]                                        # (H*W, Cp) f32
    z_ref[0] = acc.reshape(H, W, Cp).astype(z_ref.dtype)
    # Per-image partial BN statistics; finalized across the batch in O(C) glue so the
    # batch grid axis can stay "parallel".
    stats_ref[0, 0:1, :] = jnp.sum(acc, axis=0, keepdims=True)
    stats_ref[0, 1:2, :] = jnp.sum(acc * acc, axis=0, keepdims=True)


def _block1_kernel(x_ref, w_ref, z_ref, stats_ref, xp_ref, acc_ref):
    # Conv2dBlock #1: conv only here; its BN+ReLU is folded into _block2_kernel's input FMA.
    # (conv bias dropped: it cancels exactly under the training-mode BN that follows)
    _conv3x3_stats_body(x_ref[0].astype(jnp.float32),
                        w_ref, z_ref, stats_ref, xp_ref, acc_ref)


def _block2_kernel(z1_ref, scale_ref, shift_ref, w_ref, z_ref, stats_ref, xp_ref, acc_ref):
    # BN1 as a single per-channel FMA + ReLU, then Conv2dBlock #2's conv.
    y = z1_ref[0].astype(jnp.float32) * scale_ref[0] + shift_ref[0]
    y = jnp.maximum(y, 0.0)
    _conv3x3_stats_body(y, w_ref, z_ref, stats_ref, xp_ref, acc_ref)


def _bn_residual_kernel(z_ref, scale_ref, shift_ref, res_ref, o_ref):
    # BN2 as a single per-channel FMA + residual add.
    o_ref[...] = (z_ref[...].astype(jnp.float32) * scale_ref[0] + shift_ref[0]
                  + res_ref[...].astype(jnp.float32)).astype(o_ref.dtype)


# ----------------------------- wrapper ----------------------------------------


def _bn_scale_shift(stats, gamma, beta, count):
    """stats: (N, 2, Cp) per-image (sum, sum^2).  Returns per-channel (1, Cp) scale/shift."""
    s = jnp.sum(stats, axis=0)                                  # (2, Cp)
    mean = s[0] / count
    var = jnp.maximum(s[1] / count - mean * mean, 0.0)          # biased variance (train-mode BN)
    scale = gamma * jax.lax.rsqrt(var + EPS)                    # (1, Cp)
    shift = beta - mean[None, :] * scale                        # (1, Cp)
    return scale, shift


def res_block(x, params):
    """x: (N, H, W, C) f32.  params: ((w1,b1,g1,be1), (w2,b2,g2,be2)); biases unused (cancel under BN)."""
    (w1, _b1, g1, be1), (w2, _b2, g2, be2) = params
    N, H, W, C = x.shape
    Cp = ((C + LANE - 1) // LANE) * LANE                        # lane-dense channel padding
    pc = Cp - C
    pad_c = lambda a: jnp.pad(a, [(0, 0)] * (a.ndim - 1) + [(0, pc)]) if pc else a
    # In a real network activations would live channel-padded; here the pad is one-off glue.
    x_p = pad_c(x)
    w1_p = jnp.pad(w1, ((0, 0), (0, 0), (0, pc), (0, pc))) if pc else w1
    w2_p = jnp.pad(w2, ((0, 0), (0, 0), (0, pc), (0, pc))) if pc else w2
    g1_p, be1_p, g2_p, be2_p = map(pad_c, (g1, be1, g2, be2))

    count = float(N * H * W)
    cparams = pltpu.CompilerParams(dimension_semantics=("parallel",),
                                   vmem_limit_bytes=32 * 1024 * 1024)

    act_spec = pl.BlockSpec((1, H, W, Cp), lambda n: (n, 0, 0, 0))
    w_spec = pl.BlockSpec((3, 3, Cp, Cp), lambda n: (0, 0, 0, 0))
    vec_spec = pl.BlockSpec((1, Cp), lambda n: (0, 0))
    stats_spec = pl.BlockSpec((1, 2, Cp), lambda n: (n, 0, 0))
    scratch = [pltpu.VMEM((H + 2, W + 2, Cp), jnp.float32),     # zero-padded input tile
               pltpu.VMEM((H * W, Cp), jnp.float32)]            # f32 conv accumulator
    conv_out_shape = (jax.ShapeDtypeStruct((N, H, W, Cp), jnp.float32),
                      jax.ShapeDtypeStruct((N, 2, Cp), jnp.float32))

    # Block-1 conv (pre-BN) + partial BN1 stats.
    z1, stats1 = pl.pallas_call(
        _block1_kernel,
        grid=(N,),
        in_specs=[act_spec, w_spec],
        out_specs=(act_spec, stats_spec),
        out_shape=conv_out_shape,
        scratch_shapes=scratch,
        compiler_params=cparams,
    )(x_p, w1_p)
    scale1, shift1 = _bn_scale_shift(stats1, g1_p, be1_p, count)

    # BN1+ReLU fused into block-2 conv (pre-BN) + partial BN2 stats.
    z2, stats2 = pl.pallas_call(
        _block2_kernel,
        grid=(N,),
        in_specs=[act_spec, vec_spec, vec_spec, w_spec],
        out_specs=(act_spec, stats_spec),
        out_shape=conv_out_shape,
        scratch_shapes=scratch,
        compiler_params=cparams,
    )(z1, scale1, shift1, w2_p)
    scale2, shift2 = _bn_scale_shift(stats2, g2_p, be2_p, count)

    # BN2 + residual add.
    out_p = pl.pallas_call(
        _bn_residual_kernel,
        grid=(N,),
        in_specs=[act_spec, vec_spec, vec_spec, act_spec],
        out_specs=act_spec,
        out_shape=jax.ShapeDtypeStruct((N, H, W, Cp), jnp.float32),
        compiler_params=cparams,
    )(z2, scale2, shift2, x_p)
    return out_p[..., :C]


# ----------------------------- reference & demo --------------------------------


def init_params(key, dim):
    """Deterministic synthetic params matching nn.Conv2d / nn.BatchNorm2d shapes & init."""
    k = jax.random.split(key, 4)
    fan_in = dim * 3 * 3
    bound = 1.0 / math.sqrt(fan_in)   # PyTorch Conv2d default uniform bound

    def conv_bn(kw_, kb_):
        w = jax.random.uniform(kw_, (3, 3, dim, dim), jnp.float32, -bound, bound)  # HWIO
        b = jax.random.uniform(kb_, (1, dim), jnp.float32, -bound, bound)
        g = jnp.ones((1, dim), jnp.float32)     # BN gamma init
        be = jnp.zeros((1, dim), jnp.float32)   # BN beta init
        return w, b, g, be

    return conv_bn(k[0], k[1]), conv_bn(k[2], k[3])


def res_block_ref(x, params):
    """Pure-JAX reference with the exact PyTorch forward semantics (incl. the conv bias)."""
    def block(h, w, b, g, be, relu):
        y = jax.lax.conv_general_dilated(
            h, w, window_strides=(1, 1), padding=((1, 1), (1, 1)),
            dimension_numbers=("NHWC", "HWIO", "NHWC"),
            precision=jax.lax.Precision.HIGHEST) + b.reshape(1, 1, 1, -1)
        m = jnp.mean(y, axis=(0, 1, 2), keepdims=True)
        v = jnp.mean((y - m) ** 2, axis=(0, 1, 2), keepdims=True)
        y = (y - m) * jax.lax.rsqrt(v + EPS) * g.reshape(1, 1, 1, -1) + be.reshape(1, 1, 1, -1)
        return jnp.maximum(y, 0.0) if relu else y

    (w1, b1, g1, be1), (w2, b2, g2, be2) = params
    y = block(x, w1, b1, g1, be1, True)
    y = block(y, w2, b2, g2, be2, False)
    return y + x


if __name__ == "__main__":
    N, H, W, C = 2, 16, 16, 8   # ResBlock(dim=8); layout NHWC (NCHW equiv input: (2, 8, 16, 16))
    key = jax.random.PRNGKey(0)
    kx, kp = jax.random.split(key)
    x = jax.random.normal(kx, (N, H, W, C), jnp.float32)
    params = init_params(kp, C)

    out = jax.block_until_ready(jax.jit(res_block)(x, params))
    assert out.shape == (N, H, W, C) and out.dtype == jnp.float32
    ref = res_block_ref(x, params)
    assert bool(jnp.allclose(out, ref, atol=1e-2, rtol=1e-2)), \
        float(jnp.max(jnp.abs(out - ref)))
    print("KERNEL_OK")
</pallas_src>

<mosaic_0001>
module attributes {stable_mosaic.version = 11 : i64} {
  func.func @_block1_kernel(%arg0: i32, %arg1: memref<1x16x16x128xf32, #tpu.memory_space<vmem>>, %arg2: memref<3x3x128x128xf32, #tpu.memory_space<vmem>>, %arg3: memref<1x16x16x128xf32, #tpu.memory_space<vmem>>, %arg4: memref<1x2x128xf32, #tpu.memory_space<vmem>>, %arg5: memref<18x18x128xf32, #tpu.memory_space<vmem>>, %arg6: memref<256x128xf32, #tpu.memory_space<vmem>>) attributes {dimension_semantics = [#tpu.dimension_semantics<parallel>], iteration_bounds = array<i64: 2>, scalar_prefetch = 0 : i64, scratch_operands = 2 : i64, tpu.core_type = #tpu.core_type<tc>, window_params = [{transform_indices = @transform_0, window_bounds = array<i64: 1, 16, 16, 128>}, {pipeline_mode = #tpu.pipeline_mode<synchronous>, transform_indices = @transform_1, window_bounds = array<i64: 3, 3, 128, 128>}, {transform_indices = @transform_2, window_bounds = array<i64: 1, 16, 16, 128>}, {transform_indices = @transform_3, window_bounds = array<i64: 1, 2, 128>}]} {
    %c0 = arith.constant 0 : index
    %c0_0 = arith.constant 0 : index
    %c0_1 = arith.constant 0 : index
    %c0_2 = arith.constant 0 : index
    %0 = vector.load %arg1[%c0, %c0_0, %c0_1, %c0_2] : memref<1x16x16x128xf32, #tpu.memory_space<vmem>>, vector<1x16x16x128xf32>
    %1 = vector.shape_cast %0 : vector<1x16x16x128xf32> to vector<16x16x128xf32>
    %cst = arith.constant 0.000000e+00 : f32
    %2 = vector.broadcast %cst : f32 to vector<18x18x128xf32>
    %c0_3 = arith.constant 0 : index
    %c0_4 = arith.constant 0 : index
    %c0_5 = arith.constant 0 : index
    %3 = vector.load %arg5[%c0_3, %c0_4, %c0_5] : memref<18x18x128xf32, #tpu.memory_space<vmem>>, vector<18x18x128xf32>
    tpu.vector_store %arg5[%c0_3, %c0_4, %c0_5], %2 {strides = array<i32>} : memref<18x18x128xf32, #tpu.memory_space<vmem>>, vector<18x18x128xf32>,
    %c1 = arith.constant 1 : index
    %c1_6 = arith.constant 1 : index
    %c0_7 = arith.constant 0 : index
    %4 = vector.load %arg5[%c1, %c1_6, %c0_7] : memref<18x18x128xf32, #tpu.memory_space<vmem>>, vector<16x16x128xf32>
    tpu.vector_store %arg5[%c1, %c1_6, %c0_7], %1 {strides = array<i32>} : memref<18x18x128xf32, #tpu.memory_space<vmem>>, vector<16x16x128xf32>,
    %cst_8 = arith.constant 0.000000e+00 : f32
    %5 = vector.broadcast %cst_8 : f32 to vector<256x128xf32>
    %c0_9 = arith.constant 0 : index
    %c0_10 = arith.constant 0 : index
    %6 = vector.load %arg6[%c0_9, %c0_10] : memref<256x128xf32, #tpu.memory_space<vmem>>, vector<256x128xf32>
    tpu.vector_store %arg6[%c0_9, %c0_10], %5 {strides = array<i32>} : memref<256x128xf32, #tpu.memory_space<vmem>>, vector<256x128xf32>,
    %c0_11 = arith.constant 0 : index
    %c0_12 = arith.constant 0 : index
    %c0_13 = arith.constant 0 : index
    %7 = vector.load %arg5[%c0_11, %c0_12, %c0_13] : memref<18x18x128xf32, #tpu.memory_space<vmem>>, vector<16x16x128xf32>
    %8 = vector.shape_cast %7 : vector<16x16x128xf32> to vector<256x128xf32>
    %c0_14 = arith.constant 0 : index
    %c0_15 = arith.constant 0 : index
    %9 = vector.load %arg6[%c0_14, %c0_15] : memref<256x128xf32, #tpu.memory_space<vmem>>, vector<256x128xf32>
    %c0_16 = arith.constant 0 : index
    %c0_17 = arith.constant 0 : index
    %c0_18 = arith.constant 0 : index
    %c0_19 = arith.constant 0 : index
    %10 = vector.load %arg2[%c0_16, %c0_17, %c0_18, %c0_19] : memref<3x3x128x128xf32, #tpu.memory_space<vmem>>, vector<1x1x128x128xf32>
    %11 = vector.shape_cast %10 : vector<1x1x128x128xf32> to vector<128x128xf32>
    %cst_20 = arith.constant dense<0.000000e+00> : vector<256x128xf32>
    %12 = tpu.matmul %8, %11, %cst_20 {dimension_numbers = #tpu.dot_dimension_numbers<[1], [0], [0], [1], [0, 0, 1, 1], [], []>} : vector<256x128xf32>, vector<128x128xf32>, vector<256x128xf32> -> vector<256x128xf32>
    %13 = arith.addf %9, %12 : vector<256x128xf32>
    %c0_21 = arith.constant 0 : index
    %c0_22 = arith.constant 0 : index
    %14 = vector.load %arg6[%c0_21, %c0_22] : memref<256x128xf32, #tpu.memory_space<vmem>>, vector<256x128xf32>
    tpu.vector_store %arg6[%c0_21, %c0_22], %13 {strides = array<i32>} : memref<256x128xf32, #tpu.memory_space<vmem>>, vector<256x128xf32>,
    %c0_23 = arith.constant 0 : index
    %c1_24 = arith.constant 1 : index
    %c0_25 = arith.constant 0 : index
    %15 = vector.load %arg5[%c0_23, %c1_24, %c0_25] : memref<18x18x128xf32, #tpu.memory_space<vmem>>, vector<16x16x128xf32>
    %16 = vector.shape_cast %15 : vector<16x16x128xf32> to vector<256x128xf32>
    %c0_26 = arith.constant 0 : index
    %c0_27 = arith.constant 0 : index
    %17 = vector.load %arg6[%c0_26, %c0_27] : memref<256x128xf32, #tpu.memory_space<vmem>>, vector<256x128xf32>
    %c0_28 = arith.constant 0 : index
    %c1_29 = arith.constant 1 : index
    %c0_30 = arith.constant 0 : index
    %c0_31 = arith.constant 0 : index
    %18 = vector.load %arg2[%c0_28, %c1_29, %c0_30, %c0_31] : memref<3x3x128x128xf32, #tpu.memory_space<vmem>>, vector<1x1x128x128xf32>
    %19 = vector.shape_cast %18 : vector<1x1x128x128xf32> to vector<128x128xf32>
    %cst_32 = arith.constant dense<0.000000e+00> : vector<256x128xf32>
    %20 = tpu.matmul %16, %19, %cst_32 {dimension_numbers = #tpu.dot_dimension_numbers<[1], [0], [0], [1], [0, 0, 1, 1], [], []>} : vector<256x128xf32>, vector<128x128xf32>, vector<256x128xf32> -> vector<256x128xf32>
    %21 = arith.addf %17, %20 : vector<256x128xf32>
    %c0_33 = arith.constant 0 : index
    %c0_34 = arith.constant 0 : index
    %22 = vector.load %arg6[%c0_33, %c0_34] : memref<256x128xf32, #tpu.memory_space<vmem>>, vector<256x128xf32>
    tpu.vector_store %arg6[%c0_33, %c0_34], %21 {strides = array<i32>} : memref<256x128xf32, #tpu.memory_space<vmem>>, vector<256x128xf32>,
    %c0_35 = arith.constant 0 : index
    %c2 = arith.constant 2 : index
    %c0_36 = arith.constant 0 : index
    %23 = vector.load %arg5[%c0_35, %c2, %c0_36] : memref<18x18x128xf32, #tpu.memory_space<vmem>>, vector<16x16x128xf32>
    %24 = vector.shape_cast %23 : vector<16x16x128xf32> to vector<256x128xf32>
    %c0_37 = arith.constant 0 : index
    %c0_38 = arith.constant 0 : index
    %25 = vector.load %arg6[%c0_37, %c0_38] : memref<256x128xf32, #tpu.memory_space<vmem>>, vector<256x128xf32>
    %c0_39 = arith.constant 0 : index
    %c2_40 = arith.constant 2 : index
    %c0_41 = arith.constant 0 : index
    %c0_42 = arith.constant 0 : index
    %26 = vector.load %arg2[%c0_39, %c2_40, %c0_41, %c0_42] : memref<3x3x128x128xf32, #tpu.memory_space<vmem>>, vector<1x1x128x128xf32>
    %27 = vector.shape_cast %26 : vector<1x1x128x128xf32> to vector<128x128xf32>
    %cst_43 = arith.constant dense<0.000000e+00> : vector<256x128xf32>
    %28 = tpu.matmul %24, %27, %cst_43 {dimension_numbers = #tpu.dot_dimension_numbers<[1], [0], [0], [1], [0, 0, 1, 1], [], []>} : vector<256x128xf32>, vector<128x128xf32>, vector<256x128xf32> -> vector<256x128xf32>
    %29 = arith.addf %25, %28 : vector<256x128xf32>
    %c0_44 = arith.constant 0 : index
    %c0_45 = arith.constant 0 : index
    %30 = vector.load %arg6[%c0_44, %c0_45] : memref<256x128xf32, #tpu.memory_space<vmem>>, vector<256x128xf32>
    tpu.vector_store %arg6[%c0_44, %c0_45], %29 {strides = array<i32>} : memref<256x128xf32, #tpu.memory_space<vmem>>, vector<256x128xf32>,
    %c1_46 = arith.constant 1 : index
    %c0_47 = arith.constant 0 : index
    %c0_48 = arith.constant 0 : index
    %31 = vector.load %arg5[%c1_46, %c0_47, %c0_48] : memref<18x18x128xf32, #tpu.memory_space<vmem>>, vector<16x16x128xf32>
    %32 = vector.shape_cast %31 : vector<16x16x128xf32> to vector<256x128xf32>
    %c0_49 = arith.constant 0 : index
    %c0_50 = arith.constant 0 : index
    %33 = vector.load %arg6[%c0_49, %c0_50] : memref<256x128xf32, #tpu.memory_space<vmem>>, vector<256x128xf32>
    %c1_51 = arith.constant 1 : index
    %c0_52 = arith.constant 0 : index
    %c0_53 = arith.constant 0 : index
    %c0_54 = arith.constant 0 : index
    %34 = vector.load %arg2[%c1_51, %c0_52, %c0_53, %c0_54] : memref<3x3x128x128xf32, #tpu.memory_space<vmem>>, vector<1x1x128x128xf32>
    %35 = vector.shape_cast %34 : vector<1x1x128x128xf32> to vector<128x128xf32>
    %cst_55 = arith.constant dense<0.000000e+00> : vector<256x128xf32>
    %36 = tpu.matmul %32, %35, %cst_55 {dimension_numbers = #tpu.dot_dimension_numbers<[1], [0], [0], [1], [0, 0, 1, 1], [], []>} : vector<256x128xf32>, vector<128x128xf32>, vector<256x128xf32> -> vector<256x128xf32>
    %37 = arith.addf %33, %36 : vector<256x128xf32>
    %c0_56 = arith.constant 0 : index
    %c0_57 = arith.constant 0 : index
    %38 = vector.load %arg6[%c0_56, %c0_57] : memref<256x128xf32, #tpu.memory_space<vmem>>, vector<256x128xf32>
    tpu.vector_store %arg6[%c0_56, %c0_57], %37 {strides = array<i32>} : memref<256x128xf32, #tpu.memory_space<vmem>>, vector<256x128xf32>,
    %c1_58 = arith.constant 1 : index
    %c1_59 = arith.constant 1 : index
    %c0_60 = arith.constant 0 : index
    %39 = vector.load %arg5[%c1_58, %c1_59, %c0_60] : memref<18x18x128xf32, #tpu.memory_space<vmem>>, vector<16x16x128xf32>
    %40 = vector.shape_cast %39 : vector<16x16x128xf32> to vector<256x128xf32>
    %c0_61 = arith.constant 0 : index
    %c0_62 = arith.constant 0 : index
    %41 = vector.load %arg6[%c0_61, %c0_62] : memref<256x128xf32, #tpu.memory_space<vmem>>, vector<256x128xf32>
    %c1_63 = arith.constant 1 : index
    %c1_64 = arith.constant 1 : index
    %c0_65 = arith.constant 0 : index
    %c0_66 = arith.constant 0 : index
    %42 = vector.load %arg2[%c1_63, %c1_64, %c0_65, %c0_66] : memref<3x3x128x128xf32, #tpu.memory_space<vmem>>, vector<1x1x128x128xf32>
    %43 = vector.shape_cast %42 : vector<1x1x128x128xf32> to vector<128x128xf32>
    %cst_67 = arith.constant dense<0.000000e+00> : vector<256x128xf32>
    %44 = tpu.matmul %40, %43, %cst_67 {dimension_numbers = #tpu.dot_dimension_numbers<[1], [0], [0], [1], [0, 0, 1, 1], [], []>} : vector<256x128xf32>, vector<128x128xf32>, vector<256x128xf32> -> vector<256x128xf32>
    %45 = arith.addf %41, %44 : vector<256x128xf32>
    %c0_68 = arith.constant 0 : index
    %c0_69 = arith.constant 0 : index
    %46 = vector.load %arg6[%c0_68, %c0_69] : memref<256x128xf32, #tpu.memory_space<vmem>>, vector<256x128xf32>
    tpu.vector_store %arg6[%c0_68, %c0_69], %45 {strides = array<i32>} : memref<256x128xf32, #tpu.memory_space<vmem>>, vector<256x128xf32>,
    %c1_70 = arith.constant 1 : index
    %c2_71 = arith.constant 2 : index
    %c0_72 = arith.constant 0 : index
    %47 = vector.load %arg5[%c1_70, %c2_71, %c0_72] : memref<18x18x128xf32, #tpu.memory_space<vmem>>, vector<16x16x128xf32>
    %48 = vector.shape_cast %47 : vector<16x16x128xf32> to vector<256x128xf32>
    %c0_73 = arith.constant 0 : index
    %c0_74 = arith.constant 0 : index
    %49 = vector.load %arg6[%c0_73, %c0_74] : memref<256x128xf32, #tpu.memory_space<vmem>>, vector<256x128xf32>
    %c1_75 = arith.constant 1 : index
    %c2_76 = arith.constant 2 : index
    %c0_77 = arith.constant 0 : index
    %c0_78 = arith.constant 0 : index
    %50 = vector.load %arg2[%c1_75, %c2_76, %c0_77, %c0_78] : memref<3x3x128x128xf32, #tpu.memory_space<vmem>>, vector<1x1x128x128xf32>
    %51 = vector.shape_cast %50 : vector<1x1x128x128xf32> to vector<128x128xf32>
    %cst_79 = arith.constant dense<0.000000e+00> : vector<256x128xf32>
    %52 = tpu.matmul %48, %51, %cst_79 {dimension_numbers = #tpu.dot_dimension_numbers<[1], [0], [0], [1], [0, 0, 1, 1], [], []>} : vector<256x128xf32>, vector<128x128xf32>, vector<256x128xf32> -> vector<256x128xf32>
    %53 = arith.addf %49, %52 : vector<256x128xf32>
    %c0_80 = arith.constant 0 : index
    %c0_81 = arith.constant 0 : index
    %54 = vector.load %arg6[%c0_80, %c0_81] : memref<256x128xf32, #tpu.memory_space<vmem>>, vector<256x128xf32>
    tpu.vector_store %arg6[%c0_80, %c0_81], %53 {strides = array<i32>} : memref<256x128xf32, #tpu.memory_space<vmem>>, vector<256x128xf32>,
    %c2_82 = arith.constant 2 : index
    %c0_83 = arith.constant 0 : index
    %c0_84 = arith.constant 0 : index
    %55 = vector.load %arg5[%c2_82, %c0_83, %c0_84] : memref<18x18x128xf32, #tpu.memory_space<vmem>>, vector<16x16x128xf32>
    %56 = vector.shape_cast %55 : vector<16x16x128xf32> to vector<256x128xf32>
    %c0_85 = arith.constant 0 : index
    %c0_86 = arith.constant 0 : index
    %57 = vector.load %arg6[%c0_85, %c0_86] : memref<256x128xf32, #tpu.memory_space<vmem>>, vector<256x128xf32>
    %c2_87 = arith.constant 2 : index
    %c0_88 = arith.constant 0 : index
    %c0_89 = arith.constant 0 : index
    %c0_90 = arith.constant 0 : index
    %58 = vector.load %arg2[%c2_87, %c0_88, %c0_89, %c0_90] : memref<3x3x128x128xf32, #tpu.memory_space<vmem>>, vector<1x1x128x128xf32>
    %59 = vector.shape_cast %58 : vector<1x1x128x128xf32> to vector<128x128xf32>
    %cst_91 = arith.constant dense<0.000000e+00> : vector<256x128xf32>
    %60 = tpu.matmul %56, %59, %cst_91 {dimension_numbers = #tpu.dot_dimension_numbers<[1], [0], [0], [1], [0, 0, 1, 1], [], []>} : vector<256x128xf32>, vector<128x128xf32>, vector<256x128xf32> -> vector<256x128xf32>
    %61 = arith.addf %57, %60 : vector<256x128xf32>
    %c0_92 = arith.constant 0 : index
    %c0_93 = arith.constant 0 : index
    %62 = vector.load %arg6[%c0_92, %c0_93] : memref<256x128xf32, #tpu.memory_space<vmem>>, vector<256x128xf32>
    tpu.vector_store %arg6[%c0_92, %c0_93], %61 {strides = array<i32>} : memref<256x128xf32, #tpu.memory_space<vmem>>, vector<256x128xf32>,
    %c2_94 = arith.constant 2 : index
    %c1_95 = arith.constant 1 : index
    %c0_96 = arith.constant 0 : index
    %63 = vector.load %arg5[%c2_94, %c1_95, %c0_96] : memref<18x18x128xf32, #tpu.memory_space<vmem>>, vector<16x16x128xf32>
    %64 = vector.shape_cast %63 : vector<16x16x128xf32> to vector<256x128xf32>
    %c0_97 = arith.constant 0 : index
    %c0_98 = arith.constant 0 : index
    %65 = vector.load %arg6[%c0_97, %c0_98] : memref<256x128xf32, #tpu.memory_space<vmem>>, vector<256x128xf32>
    %c2_99 = arith.constant 2 : index
    %c1_100 = arith.constant 1 : index
    %c0_101 = arith.constant 0 : index
    %c0_102 = arith.constant 0 : index
    %66 = vector.load %arg2[%c2_99, %c1_100, %c0_101, %c0_102] : memref<3x3x128x128xf32, #tpu.memory_space<vmem>>, vector<1x1x128x128xf32>
    %67 = vector.shape_cast %66 : vector<1x1x128x128xf32> to vector<128x128xf32>
    %cst_103 = arith.constant dense<0.000000e+00> : vector<256x128xf32>
    %68 = tpu.matmul %64, %67, %cst_103 {dimension_numbers = #tpu.dot_dimension_numbers<[1], [0], [0], [1], [0, 0, 1, 1], [], []>} : vector<256x128xf32>, vector<128x128xf32>, vector<256x128xf32> -> vector<256x128xf32>
    %69 = arith.addf %65, %68 : vector<256x128xf32>
    %c0_104 = arith.constant 0 : index
    %c0_105 = arith.constant 0 : index
    %70 = vector.load %arg6[%c0_104, %c0_105] : memref<256x128xf32, #tpu.memory_space<vmem>>, vector<256x128xf32>
    tpu.vector_store %arg6[%c0_104, %c0_105], %69 {strides = array<i32>} : memref<256x128xf32, #tpu.memory_space<vmem>>, vector<256x128xf32>,
    %c2_106 = arith.constant 2 : index
    %c2_107 = arith.constant 2 : index
    %c0_108 = arith.constant 0 : index
    %71 = vector.load %arg5[%c2_106, %c2_107, %c0_108] : memref<18x18x128xf32, #tpu.memory_space<vmem>>, vector<16x16x128xf32>
    %72 = vector.shape_cast %71 : vector<16x16x128xf32> to vector<256x128xf32>
    %c0_109 = arith.constant 0 : index
    %c0_110 = arith.constant 0 : index
    %73 = vector.load %arg6[%c0_109, %c0_110] : memref<256x128xf32, #tpu.memory_space<vmem>>, vector<256x128xf32>
    %c2_111 = arith.constant 2 : index
    %c2_112 = arith.constant 2 : index
    %c0_113 = arith.constant 0 : index
    %c0_114 = arith.constant 0 : index
    %74 = vector.load %arg2[%c2_111, %c2_112, %c0_113, %c0_114] : memref<3x3x128x128xf32, #tpu.memory_space<vmem>>, vector<1x1x128x128xf32>
    %75 = vector.shape_cast %74 : vector<1x1x128x128xf32> to vector<128x128xf32>
    %cst_115 = arith.constant dense<0.000000e+00> : vector<256x128xf32>
    %76 = tpu.matmul %72, %75, %cst_115 {dimension_numbers = #tpu.dot_dimension_numbers<[1], [0], [0], [1], [0, 0, 1, 1], [], []>} : vector<256x128xf32>, vector<128x128xf32>, vector<256x128xf32> -> vector<256x128xf32>
    %77 = arith.addf %73, %76 : vector<256x128xf32>
    %c0_116 = arith.constant 0 : index
    %c0_117 = arith.constant 0 : index
    %78 = vector.load %arg6[%c0_116, %c0_117] : memref<256x128xf32, #tpu.memory_space<vmem>>, vector<256x128xf32>
    tpu.vector_store %arg6[%c0_116, %c0_117], %77 {strides = array<i32>} : memref<256x128xf32, #tpu.memory_space<vmem>>, vector<256x128xf32>,
    %c0_118 = arith.constant 0 : index
    %c0_119 = arith.constant 0 : index
    %79 = vector.load %arg6[%c0_118, %c0_119] : memref<256x128xf32, #tpu.memory_space<vmem>>, vector<256x128xf32>
    %80 = vector.shape_cast %79 : vector<256x128xf32> to vector<16x16x128xf32>
    %c0_120 = arith.constant 0 : index
    %c0_121 = arith.constant 0 : index
    %c0_122 = arith.constant 0 : index
    %c0_123 = arith.constant 0 : index
    %81 = vector.load %arg3[%c0_120, %c0_121, %c0_122, %c0_123] : memref<1x16x16x128xf32, #tpu.memory_space<vmem>>, vector<1x16x16x128xf32>
    %82 = vector.shape_cast %81 : vector<1x16x16x128xf32> to vector<16x16x128xf32>
    %83 = vector.shape_cast %80 : vector<16x16x128xf32> to vector<1x16x16x128xf32>
    tpu.vector_store %arg3[%c0_120, %c0_121, %c0_122, %c0_123], %83 {strides = array<i32>} : memref<1x16x16x128xf32, #tpu.memory_space<vmem>>, vector<1x16x16x128xf32>,
    %cst_124 = arith.constant dense<0.000000e+00> : vector<128xf32>
    %84 = vector.multi_reduction <add>, %79, %cst_124 [0] : vector<256x128xf32> to vector<128xf32>
    %85 = vector.shape_cast %84 : vector<128xf32> to vector<1x128xf32>
    %c0_125 = arith.constant 0 : index
    %c0_126 = arith.constant 0 : index
    %c0_127 = arith.constant 0 : index
    %86 = vector.load %arg4[%c0_125, %c0_126, %c0_127] : memref<1x2x128xf32, #tpu.memory_space<vmem>>, vector<1x1x128xf32>
    %87 = vector.shape_cast %86 : vector<1x1x128xf32> to vector<1x128xf32>
    %88 = vector.shape_cast %85 : vector<1x128xf32> to vector<1x1x128xf32>
    tpu.vector_store %arg4[%c0_125, %c0_126, %c0_127], %88 {strides = array<i32>} : memref<1x2x128xf32, #tpu.memory_space<vmem>>, vector<1x1x128xf32>,
    %89 = arith.mulf %79, %79 : vector<256x128xf32>
    %cst_128 = arith.constant dense<0.000000e+00> : vector<128xf32>
    %90 = vector.multi_reduction <add>, %89, %cst_128 [0] : vector<256x128xf32> to vector<128xf32>
    %91 = vector.shape_cast %90 : vector<128xf32> to vector<1x128xf32>
    %c0_129 = arith.constant 0 : index
    %c1_130 = arith.constant 1 : index
    %c0_131 = arith.constant 0 : index
    %92 = vector.load %arg4[%c0_129, %c1_130, %c0_131] : memref<1x2x128xf32, #tpu.memory_space<vmem>>, vector<1x1x128xf32>
    %93 = vector.shape_cast %92 : vector<1x1x128xf32> to vector<1x128xf32>
    %94 = vector.shape_cast %91 : vector<1x128xf32> to vector<1x1x128xf32>
    tpu.vector_store %arg4[%c0_129, %c1_130, %c0_131], %94 {strides = array<i32>} : memref<1x2x128xf32, #tpu.memory_space<vmem>>, vector<1x1x128xf32>,
    return
  }
  func.func @transform_0(%arg0: i32) -> (i32, i32, i32, i32) {
    %c0_i32 = arith.constant 0 : i32
    %c0_i32_0 = arith.constant 0 : i32
    %c0_i32_1 = arith.constant 0 : i32
    %c0_i32_2 = arith.constant 0 : i32
    return %arg0, %c0_i32, %c0_i32_0, %c0_i32_1 : i32, i32, i32, i32
  }
  func.func @transform_1(%arg0: i32) -> (i32, i32, i32, i32) {
    %c0_i32 = arith.constant 0 : i32
    %c0_i32_0 = arith.constant 0 : i32
    %c0_i32_1 = arith.constant 0 : i32
    %c0_i32_2 = arith.constant 0 : i32
    %c0_i32_3 = arith.constant 0 : i32
    return %c0_i32, %c0_i32_0, %c0_i32_1, %c0_i32_2 : i32, i32, i32, i32
  }
  func.func @transform_2(%arg0: i32) -> (i32, i32, i32, i32) {
    %c0_i32 = arith.constant 0 : i32
    %c0_i32_0 = arith.constant 0 : i32
    %c0_i32_1 = arith.constant 0 : i32
    %c0_i32_2 = arith.constant 0 : i32
    return %arg0, %c0_i32, %c0_i32_0, %c0_i32_1 : i32, i32, i32, i32
  }
  func.func @transform_3(%arg0: i32) -> (i32, i32, i32) {
    %c0_i32 = arith.constant 0 : i32
    %c0_i32_0 = arith.constant 0 : i32
    %c0_i32_1 = arith.constant 0 : i32
    return %arg0, %c0_i32, %c0_i32_0 : i32, i32, i32
  }
}

module attributes {stable_mosaic.version = 11 : i64} {
  func.func @_block2_kernel(%arg0: i32, %arg1: memref<1x16x16x128xf32, #tpu.memory_space<vmem>>, %arg2: memref<1x128xf32, #tpu.memory_space<vmem>>, %arg3: memref<1x128xf32, #tpu.memory_space<vmem>>, %arg4: memref<3x3x128x128xf32, #tpu.memory_space<vmem>>, %arg5: memref<1x16x16x128xf32, #tpu.memory_space<vmem>>, %arg6: memref<1x2x128xf32, #tpu.memory_space<vmem>>, %arg7: memref<18x18x128xf32, #tpu.memory_space<vmem>>, %arg8: memref<256x128xf32, #tpu.memory_space<vmem>>) attributes {dimension_semantics = [#tpu.dimension_semantics<parallel>], iteration_bounds = array<i64: 2>, scalar_prefetch = 0 : i64, scratch_operands = 2 : i64, tpu.core_type = #tpu.core_type<tc>, window_params = [{transform_indices = @transform_0, window_bounds = array<i64: 1, 16, 16, 128>}, {pipeline_mode = #tpu.pipeline_mode<synchronous>, transform_indices = @transform_1, window_bounds = array<i64: 1, 128>}, {pipeline_mode = #tpu.pipeline_mode<synchronous>, transform_indices = @transform_2, window_bounds = array<i64: 1, 128>}, {pipeline_mode = #tpu.pipeline_mode<synchronous>, transform_indices = @transform_3, window_bounds = array<i64: 3, 3, 128, 128>}, {transform_indices = @transform_4, window_bounds = array<i64: 1, 16, 16, 128>}, {transform_indices = @transform_5, window_bounds = array<i64: 1, 2, 128>}]} {
    %c0 = arith.constant 0 : index
    %c0_0 = arith.constant 0 : index
    %c0_1 = arith.constant 0 : index
    %c0_2 = arith.constant 0 : index
    %0 = vector.load %arg1[%c0, %c0_0, %c0_1, %c0_2] : memref<1x16x16x128xf32, #tpu.memory_space<vmem>>, vector<1x16x16x128xf32>
    %1 = vector.shape_cast %0 : vector<1x16x16x128xf32> to vector<16x16x128xf32>
    %c0_3 = arith.constant 0 : index
    %c0_4 = arith.constant 0 : index
    %2 = vector.load %arg2[%c0_3, %c0_4] : memref<1x128xf32, #tpu.memory_space<vmem>>, vector<1x128xf32>
    %3 = vector.shape_cast %2 : vector<1x128xf32> to vector<128xf32>
    %4 = vector.shape_cast %3 : vector<128xf32> to vector<1x1x128xf32>
    %5 = vector.broadcast %4 : vector<1x1x128xf32> to vector<16x16x128xf32>
    %6 = arith.mulf %1, %5 : vector<16x16x128xf32>
    %c0_5 = arith.constant 0 : index
    %c0_6 = arith.constant 0 : index
    %7 = vector.load %arg3[%c0_5, %c0_6] : memref<1x128xf32, #tpu.memory_space<vmem>>, vector<1x128xf32>
    %8 = vector.shape_cast %7 : vector<1x128xf32> to vector<128xf32>
    %9 = vector.shape_cast %8 : vector<128xf32> to vector<1x1x128xf32>
    %10 = vector.broadcast %9 : vector<1x1x128xf32> to vector<16x16x128xf32>
    %11 = arith.addf %6, %10 : vector<16x16x128xf32>
    %cst = arith.constant 0.000000e+00 : f32
    %12 = vector.broadcast %cst : f32 to vector<16x16x128xf32>
    %13 = arith.maximumf %11, %12 : vector<16x16x128xf32>
    %cst_7 = arith.constant 0.000000e+00 : f32
    %14 = vector.broadcast %cst_7 : f32 to vector<18x18x128xf32>
    %c0_8 = arith.constant 0 : index
    %c0_9 = arith.constant 0 : index
    %c0_10 = arith.constant 0 : index
    %15 = vector.load %arg7[%c0_8, %c0_9, %c0_10] : memref<18x18x128xf32, #tpu.memory_space<vmem>>, vector<18x18x128xf32>
    tpu.vector_store %arg7[%c0_8, %c0_9, %c0_10], %14 {strides = array<i32>} : memref<18x18x128xf32, #tpu.memory_space<vmem>>, vector<18x18x128xf32>,
    %c1 = arith.constant 1 : index
    %c1_11 = arith.constant 1 : index
    %c0_12 = arith.constant 0 : index
    %16 = vector.load %arg7[%c1, %c1_11, %c0_12] : memref<18x18x128xf32, #tpu.memory_space<vmem>>, vector<16x16x128xf32>
    tpu.vector_store %arg7[%c1, %c1_11, %c0_12], %13 {strides = array<i32>} : memref<18x18x128xf32, #tpu.memory_space<vmem>>, vector<16x16x128xf32>,
    %cst_13 = arith.constant 0.000000e+00 : f32
    %17 = vector.broadcast %cst_13 : f32 to vector<256x128xf32>
    %c0_14 = arith.constant 0 : index
    %c0_15 = arith.constant 0 : index
    %18 = vector.load %arg8[%c0_14, %c0_15] : memref<256x128xf32, #tpu.memory_space<vmem>>, vector<256x128xf32>
    tpu.vector_store %arg8[%c0_14, %c0_15], %17 {strides = array<i32>} : memref<256x128xf32, #tpu.memory_space<vmem>>, vector<256x128xf32>,
    %c0_16 = arith.constant 0 : index
    %c0_17 = arith.constant 0 : index
    %c0_18 = arith.constant 0 : index
    %19 = vector.load %arg7[%c0_16, %c0_17, %c0_18] : memref<18x18x128xf32, #tpu.memory_space<vmem>>, vector<16x16x128xf32>
    %20 = vector.shape_cast %19 : vector<16x16x128xf32> to vector<256x128xf32>
    %c0_19 = arith.constant 0 : index
    %c0_20 = arith.constant 0 : index
    %21 = vector.load %arg8[%c0_19, %c0_20] : memref<256x128xf32, #tpu.memory_space<vmem>>, vector<256x128xf32>
    %c0_21 = arith.constant 0 : index
    %c0_22 = arith.constant 0 : index
    %c0_23 = arith.constant 0 : index
    %c0_24 = arith.constant 0 : index
    %22 = vector.load %arg4[%c0_21, %c0_22, %c0_23, %c0_24] : memref<3x3x128x128xf32, #tpu.memory_space<vmem>>, vector<1x1x128x128xf32>
    %23 = vector.shape_cast %22 : vector<1x1x128x128xf32> to vector<128x128xf32>
    %cst_25 = arith.constant dense<0.000000e+00> : vector<256x128xf32>
    %24 = tpu.matmul %20, %23, %cst_25 {dimension_numbers = #tpu.dot_dimension_numbers<[1], [0], [0], [1], [0, 0, 1, 1], [], []>} : vector<256x128xf32>, vector<128x128xf32>, vector<256x128xf32> -> vector<256x128xf32>
    %25 = arith.addf %21, %24 : vector<256x128xf32>
    %c0_26 = arith.constant 0 : index
    %c0_27 = arith.constant 0 : index
    %26 = vector.load %arg8[%c0_26, %c0_27] : memref<256x128xf32, #tpu.memory_space<vmem>>, vector<256x128xf32>
    tpu.vector_store %arg8[%c0_26, %c0_27], %25 {strides = array<i32>} : memref<256x128xf32, #tpu.memory_space<vmem>>, vector<256x128xf32>,
    %c0_28 = arith.constant 0 : index
    %c1_29 = arith.constant 1 : index
    %c0_30 = arith.constant 0 : index
    %27 = vector.load %arg7[%c0_28, %c1_29, %c0_30] : memref<18x18x128xf32, #tpu.memory_space<vmem>>, vector<16x16x128xf32>
    %28 = vector.shape_cast %27 : vector<16x16x128xf32> to vector<256x128xf32>
    %c0_31 = arith.constant 0 : index
    %c0_32 = arith.constant 0 : index
    %29 = vector.load %arg8[%c0_31, %c0_32] : memref<256x128xf32, #tpu.memory_space<vmem>>, vector<256x128xf32>
    %c0_33 = arith.constant 0 : index
    %c1_34 = arith.constant 1 : index
    %c0_35 = arith.constant 0 : index
    %c0_36 = arith.constant 0 : index
    %30 = vector.load %arg4[%c0_33, %c1_34, %c0_35, %c0_36] : memref<3x3x128x128xf32, #tpu.memory_space<vmem>>, vector<1x1x128x128xf32>
    %31 = vector.shape_cast %30 : vector<1x1x128x128xf32> to vector<128x128xf32>
    %cst_37 = arith.constant dense<0.000000e+00> : vector<256x128xf32>
    %32 = tpu.matmul %28, %31, %cst_37 {dimension_numbers = #tpu.dot_dimension_numbers<[1], [0], [0], [1], [0, 0, 1, 1], [], []>} : vector<256x128xf32>, vector<128x128xf32>, vector<256x128xf32> -> vector<256x128xf32>
    %33 = arith.addf %29, %32 : vector<256x128xf32>
    %c0_38 = arith.constant 0 : index
    %c0_39 = arith.constant 0 : index
    %34 = vector.load %arg8[%c0_38, %c0_39] : memref<256x128xf32, #tpu.memory_space<vmem>>, vector<256x128xf32>
    tpu.vector_store %arg8[%c0_38, %c0_39], %33 {strides = array<i32>} : memref<256x128xf32, #tpu.memory_space<vmem>>, vector<256x128xf32>,
    %c0_40 = arith.constant 0 : index
    %c2 = arith.constant 2 : index
    %c0_41 = arith.constant 0 : index
    %35 = vector.load %arg7[%c0_40, %c2, %c0_41] : memref<18x18x128xf32, #tpu.memory_space<vmem>>, vector<16x16x128xf32>
    %36 = vector.shape_cast %35 : vector<16x16x128xf32> to vector<256x128xf32>
    %c0_42 = arith.constant 0 : index
    %c0_43 = arith.constant 0 : index
    %37 = vector.load %arg8[%c0_42, %c0_43] : memref<256x128xf32, #tpu.memory_space<vmem>>, vector<256x128xf32>
    %c0_44 = arith.constant 0 : index
    %c2_45 = arith.constant 2 : index
    %c0_46 = arith.constant 0 : index
    %c0_47 = arith.constant 0 : index
    %38 = vector.load %arg4[%c0_44, %c2_45, %c0_46, %c0_47] : memref<3x3x128x128xf32, #tpu.memory_space<vmem>>, vector<1x1x128x128xf32>
    %39 = vector.shape_cast %38 : vector<1x1x128x128xf32> to vector<128x128xf32>
    %cst_48 = arith.constant dense<0.000000e+00> : vector<256x128xf32>
    %40 = tpu.matmul %36, %39, %cst_48 {dimension_numbers = #tpu.dot_dimension_numbers<[1], [0], [0], [1], [0, 0, 1, 1], [], []>} : vector<256x128xf32>, vector<128x128xf32>, vector<256x128xf32> -> vector<256x128xf32>
    %41 = arith.addf %37, %40 : vector<256x128xf32>
    %c0_49 = arith.constant 0 : index
    %c0_50 = arith.constant 0 : index
    %42 = vector.load %arg8[%c0_49, %c0_50] : memref<256x128xf32, #tpu.memory_space<vmem>>, vector<256x128xf32>
    tpu.vector_store %arg8[%c0_49, %c0_50], %41 {strides = array<i32>} : memref<256x128xf32, #tpu.memory_space<vmem>>, vector<256x128xf32>,
    %c1_51 = arith.constant 1 : index
    %c0_52 = arith.constant 0 : index
    %c0_53 = arith.constant 0 : index
    %43 = vector.load %arg7[%c1_51, %c0_52, %c0_53] : memref<18x18x128xf32, #tpu.memory_space<vmem>>, vector<16x16x128xf32>
    %44 = vector.shape_cast %43 : vector<16x16x128xf32> to vector<256x128xf32>
    %c0_54 = arith.constant 0 : index
    %c0_55 = arith.constant 0 : index
    %45 = vector.load %arg8[%c0_54, %c0_55] : memref<256x128xf32, #tpu.memory_space<vmem>>, vector<256x128xf32>
    %c1_56 = arith.constant 1 : index
    %c0_57 = arith.constant 0 : index
    %c0_58 = arith.constant 0 : index
    %c0_59 = arith.constant 0 : index
    %46 = vector.load %arg4[%c1_56, %c0_57, %c0_58, %c0_59] : memref<3x3x128x128xf32, #tpu.memory_space<vmem>>, vector<1x1x128x128xf32>
    %47 = vector.shape_cast %46 : vector<1x1x128x128xf32> to vector<128x128xf32>
    %cst_60 = arith.constant dense<0.000000e+00> : vector<256x128xf32>
    %48 = tpu.matmul %44, %47, %cst_60 {dimension_numbers = #tpu.dot_dimension_numbers<[1], [0], [0], [1], [0, 0, 1, 1], [], []>} : vector<256x128xf32>, vector<128x128xf32>, vector<256x128xf32> -> vector<256x128xf32>
    %49 = arith.addf %45, %48 : vector<256x128xf32>
    %c0_61 = arith.constant 0 : index
    %c0_62 = arith.constant 0 : index
    %50 = vector.load %arg8[%c0_61, %c0_62] : memref<256x128xf32, #tpu.memory_space<vmem>>, vector<256x128xf32>
    tpu.vector_store %arg8[%c0_61, %c0_62], %49 {strides = array<i32>} : memref<256x128xf32, #tpu.memory_space<vmem>>, vector<256x128xf32>,
    %c1_63 = arith.constant 1 : index
    %c1_64 = arith.constant 1 : index
    %c0_65 = arith.constant 0 : index
    %51 = vector.load %arg7[%c1_63, %c1_64, %c0_65] : memref<18x18x128xf32, #tpu.memory_space<vmem>>, vector<16x16x128xf32>
    %52 = vector.shape_cast %51 : vector<16x16x128xf32> to vector<256x128xf32>
    %c0_66 = arith.constant 0 : index
    %c0_67 = arith.constant 0 : index
    %53 = vector.load %arg8[%c0_66, %c0_67] : memref<256x128xf32, #tpu.memory_space<vmem>>, vector<256x128xf32>
    %c1_68 = arith.constant 1 : index
    %c1_69 = arith.constant 1 : index
    %c0_70 = arith.constant 0 : index
    %c0_71 = arith.constant 0 : index
    %54 = vector.load %arg4[%c1_68, %c1_69, %c0_70, %c0_71] : memref<3x3x128x128xf32, #tpu.memory_space<vmem>>, vector<1x1x128x128xf32>
    %55 = vector.shape_cast %54 : vector<1x1x128x128xf32> to vector<128x128xf32>
    %cst_72 = arith.constant dense<0.000000e+00> : vector<256x128xf32>
    %56 = tpu.matmul %52, %55, %cst_72 {dimension_numbers = #tpu.dot_dimension_numbers<[1], [0], [0], [1], [0, 0, 1, 1], [], []>} : vector<256x128xf32>, vector<128x128xf32>, vector<256x128xf32> -> vector<256x128xf32>
    %57 = arith.addf %53, %56 : vector<256x128xf32>
    %c0_73 = arith.constant 0 : index
    %c0_74 = arith.constant 0 : index
    %58 = vector.load %arg8[%c0_73, %c0_74] : memref<256x128xf32, #tpu.memory_space<vmem>>, vector<256x128xf32>
    tpu.vector_store %arg8[%c0_73, %c0_74], %57 {strides = array<i32>} : memref<256x128xf32, #tpu.memory_space<vmem>>, vector<256x128xf32>,
    %c1_75 = arith.constant 1 : index
    %c2_76 = arith.constant 2 : index
    %c0_77 = arith.constant 0 : index
    %59 = vector.load %arg7[%c1_75, %c2_76, %c0_77] : memref<18x18x128xf32, #tpu.memory_space<vmem>>, vector<16x16x128xf32>
    %60 = vector.shape_cast %59 : vector<16x16x128xf32> to vector<256x128xf32>
    %c0_78 = arith.constant 0 : index
    %c0_79 = arith.constant 0 : index
    %61 = vector.load %arg8[%c0_78, %c0_79] : memref<256x128xf32, #tpu.memory_space<vmem>>, vector<256x128xf32>
    %c1_80 = arith.constant 1 : index
    %c2_81 = arith.constant 2 : index
    %c0_82 = arith.constant 0 : index
    %c0_83 = arith.constant 0 : index
    %62 = vector.load %arg4[%c1_80, %c2_81, %c0_82, %c0_83] : memref<3x3x128x128xf32, #tpu.memory_space<vmem>>, vector<1x1x128x128xf32>
    %63 = vector.shape_cast %62 : vector<1x1x128x128xf32> to vector<128x128xf32>
    %cst_84 = arith.constant dense<0.000000e+00> : vector<256x128xf32>
    %64 = tpu.matmul %60, %63, %cst_84 {dimension_numbers = #tpu.dot_dimension_numbers<[1], [0], [0], [1], [0, 0, 1, 1], [], []>} : vector<256x128xf32>, vector<128x128xf32>, vector<256x128xf32> -> vector<256x128xf32>
    %65 = arith.addf %61, %64 : vector<256x128xf32>
    %c0_85 = arith.constant 0 : index
    %c0_86 = arith.constant 0 : index
    %66 = vector.load %arg8[%c0_85, %c0_86] : memref<256x128xf32, #tpu.memory_space<vmem>>, vector<256x128xf32>
    tpu.vector_store %arg8[%c0_85, %c0_86], %65 {strides = array<i32>} : memref<256x128xf32, #tpu.memory_space<vmem>>, vector<256x128xf32>,
    %c2_87 = arith.constant 2 : index
    %c0_88 = arith.constant 0 : index
    %c0_89 = arith.constant 0 : index
    %67 = vector.load %arg7[%c2_87, %c0_88, %c0_89] : memref<18x18x128xf32, #tpu.memory_space<vmem>>, vector<16x16x128xf32>
    %68 = vector.shape_cast %67 : vector<16x16x128xf32> to vector<256x128xf32>
    %c0_90 = arith.constant 0 : index
    %c0_91 = arith.constant 0 : index
    %69 = vector.load %arg8[%c0_90, %c0_91] : memref<256x128xf32, #tpu.memory_space<vmem>>, vector<256x128xf32>
    %c2_92 = arith.constant 2 : index
    %c0_93 = arith.constant 0 : index
    %c0_94 = arith.constant 0 : index
    %c0_95 = arith.constant 0 : index
    %70 = vector.load %arg4[%c2_92, %c0_93, %c0_94, %c0_95] : memref<3x3x128x128xf32, #tpu.memory_space<vmem>>, vector<1x1x128x128xf32>
    %71 = vector.shape_cast %70 : vector<1x1x128x128xf32> to vector<128x128xf32>
    %cst_96 = arith.constant dense<0.000000e+00> : vector<256x128xf32>
    %72 = tpu.matmul %68, %71, %cst_96 {dimension_numbers = #tpu.dot_dimension_numbers<[1], [0], [0], [1], [0, 0, 1, 1], [], []>} : vector<256x128xf32>, vector<128x128xf32>, vector<256x128xf32> -> vector<256x128xf32>
    %73 = arith.addf %69, %72 : vector<256x128xf32>
    %c0_97 = arith.constant 0 : index
    %c0_98 = arith.constant 0 : index
    %74 = vector.load %arg8[%c0_97, %c0_98] : memref<256x128xf32, #tpu.memory_space<vmem>>, vector<256x128xf32>
    tpu.vector_store %arg8[%c0_97, %c0_98], %73 {strides = array<i32>} : memref<256x128xf32, #tpu.memory_space<vmem>>, vector<256x128xf32>,
    %c2_99 = arith.constant 2 : index
    %c1_100 = arith.constant 1 : index
    %c0_101 = arith.constant 0 : index
    %75 = vector.load %arg7[%c2_99, %c1_100, %c0_101] : memref<18x18x128xf32, #tpu.memory_space<vmem>>, vector<16x16x128xf32>
    %76 = vector.shape_cast %75 : vector<16x16x128xf32> to vector<256x128xf32>
    %c0_102 = arith.constant 0 : index
    %c0_103 = arith.constant 0 : index
    %77 = vector.load %arg8[%c0_102, %c0_103] : memref<256x128xf32, #tpu.memory_space<vmem>>, vector<256x128xf32>
    %c2_104 = arith.constant 2 : index
    %c1_105 = arith.constant 1 : index
    %c0_106 = arith.constant 0 : index
    %c0_107 = arith.constant 0 : index
    %78 = vector.load %arg4[%c2_104, %c1_105, %c0_106, %c0_107] : memref<3x3x128x128xf32, #tpu.memory_space<vmem>>, vector<1x1x128x128xf32>
    %79 = vector.shape_cast %78 : vector<1x1x128x128xf32> to vector<128x128xf32>
    %cst_108 = arith.constant dense<0.000000e+00> : vector<256x128xf32>
    %80 = tpu.matmul %76, %79, %cst_108 {dimension_numbers = #tpu.dot_dimension_numbers<[1], [0], [0], [1], [0, 0, 1, 1], [], []>} : vector<256x128xf32>, vector<128x128xf32>, vector<256x128xf32> -> vector<256x128xf32>
    %81 = arith.addf %77, %80 : vector<256x128xf32>
    %c0_109 = arith.constant 0 : index
    %c0_110 = arith.constant 0 : index
    %82 = vector.load %arg8[%c0_109, %c0_110] : memref<256x128xf32, #tpu.memory_space<vmem>>, vector<256x128xf32>
    tpu.vector_store %arg8[%c0_109, %c0_110], %81 {strides = array<i32>} : memref<256x128xf32, #tpu.memory_space<vmem>>, vector<256x128xf32>,
    %c2_111 = arith.constant 2 : index
    %c2_112 = arith.constant 2 : index
    %c0_113 = arith.constant 0 : index
    %83 = vector.load %arg7[%c2_111, %c2_112, %c0_113] : memref<18x18x128xf32, #tpu.memory_space<vmem>>, vector<16x16x128xf32>
    %84 = vector.shape_cast %83 : vector<16x16x128xf32> to vector<256x128xf32>
    %c0_114 = arith.constant 0 : index
    %c0_115 = arith.constant 0 : index
    %85 = vector.load %arg8[%c0_114, %c0_115] : memref<256x128xf32, #tpu.memory_space<vmem>>, vector<256x128xf32>
    %c2_116 = arith.constant 2 : index
    %c2_117 = arith.constant 2 : index
    %c0_118 = arith.constant 0 : index
    %c0_119 = arith.constant 0 : index
    %86 = vector.load %arg4[%c2_116, %c2_117, %c0_118, %c0_119] : memref<3x3x128x128xf32, #tpu.memory_space<vmem>>, vector<1x1x128x128xf32>
    %87 = vector.shape_cast %86 : vector<1x1x128x128xf32> to vector<128x128xf32>
    %cst_120 = arith.constant dense<0.000000e+00> : vector<256x128xf32>
    %88 = tpu.matmul %84, %87, %cst_120 {dimension_numbers = #tpu.dot_dimension_numbers<[1], [0], [0], [1], [0, 0, 1, 1], [], []>} : vector<256x128xf32>, vector<128x128xf32>, vector<256x128xf32> -> vector<256x128xf32>
    %89 = arith.addf %85, %88 : vector<256x128xf32>
    %c0_121 = arith.constant 0 : index
    %c0_122 = arith.constant 0 : index
    %90 = vector.load %arg8[%c0_121, %c0_122] : memref<256x128xf32, #tpu.memory_space<vmem>>, vector<256x128xf32>
    tpu.vector_store %arg8[%c0_121, %c0_122], %89 {strides = array<i32>} : memref<256x128xf32, #tpu.memory_space<vmem>>, vector<256x128xf32>,
    %c0_123 = arith.constant 0 : index
    %c0_124 = arith.constant 0 : index
    %91 = vector.load %arg8[%c0_123, %c0_124] : memref<256x128xf32, #tpu.memory_space<vmem>>, vector<256x128xf32>
    %92 = vector.shape_cast %91 : vector<256x128xf32> to vector<16x16x128xf32>
    %c0_125 = arith.constant 0 : index
    %c0_126 = arith.constant 0 : index
    %c0_127 = arith.constant 0 : index
    %c0_128 = arith.constant 0 : index
    %93 = vector.load %arg5[%c0_125, %c0_126, %c0_127, %c0_128] : memref<1x16x16x128xf32, #tpu.memory_space<vmem>>, vector<1x16x16x128xf32>
    %94 = vector.shape_cast %93 : vector<1x16x16x128xf32> to vector<16x16x128xf32>
    %95 = vector.shape_cast %92 : vector<16x16x128xf32> to vector<1x16x16x128xf32>
    tpu.vector_store %arg5[%c0_125, %c0_126, %c0_127, %c0_128], %95 {strides = array<i32>} : memref<1x16x16x128xf32, #tpu.memory_space<vmem>>, vector<1x16x16x128xf32>,
    %cst_129 = arith.constant dense<0.000000e+00> : vector<128xf32>
    %96 = vector.multi_reduction <add>, %91, %cst_129 [0] : vector<256x128xf32> to vector<128xf32>
    %97 = vector.shape_cast %96 : vector<128xf32> to vector<1x128xf32>
    %c0_130 = arith.constant 0 : index
    %c0_131 = arith.constant 0 : index
    %c0_132 = arith.constant 0 : index
    %98 = vector.load %arg6[%c0_130, %c0_131, %c0_132] : memref<1x2x128xf32, #tpu.memory_space<vmem>>, vector<1x1x128xf32>
    %99 = vector.shape_cast %98 : vector<1x1x128xf32> to vector<1x128xf32>
    %100 = vector.shape_cast %97 : vector<1x128xf32> to vector<1x1x128xf32>
    tpu.vector_store %arg6[%c0_130, %c0_131, %c0_132], %100 {strides = array<i32>} : memref<1x2x128xf32, #tpu.memory_space<vmem>>, vector<1x1x128xf32>,
    %101 = arith.mulf %91, %91 : vector<256x128xf32>
    %cst_133 = arith.constant dense<0.000000e+00> : vector<128xf32>
    %102 = vector.multi_reduction <add>, %101, %cst_133 [0] : vector<256x128xf32> to vector<128xf32>
    %103 = vector.shape_cast %102 : vector<128xf32> to vector<1x128xf32>
    %c0_134 = arith.constant 0 : index
    %c1_135 = arith.constant 1 : index
    %c0_136 = arith.constant 0 : index
    %104 = vector.load %arg6[%c0_134, %c1_135, %c0_136] : memref<1x2x128xf32, #tpu.memory_space<vmem>>, vector<1x1x128xf32>
    %105 = vector.shape_cast %104 : vector<1x1x128xf32> to vector<1x128xf32>
    %106 = vector.shape_cast %103 : vector<1x128xf32> to vector<1x1x128xf32>
    tpu.vector_store %arg6[%c0_134, %c1_135, %c0_136], %106 {strides = array<i32>} : memref<1x2x128xf32, #tpu.memory_space<vmem>>, vector<1x1x128xf32>,
    return
  }
  func.func @transform_0(%arg0: i32) -> (i32, i32, i32, i32) {
    %c0_i32 = arith.constant 0 : i32
    %c0_i32_0 = arith.constant 0 : i32
    %c0_i32_1 = arith.constant 0 : i32
    %c0_i32_2 = arith.constant 0 : i32
    return %arg0, %c0_i32, %c0_i32_0, %c0_i32_1 : i32, i32, i32, i32
  }
  func.func @transform_1(%arg0: i32) -> (i32, i32) {
    %c0_i32 = arith.constant 0 : i32
    %c0_i32_0 = arith.constant 0 : i32
    %c0_i32_1 = arith.constant 0 : i32
    return %c0_i32, %c0_i32_0 : i32, i32
  }
  func.func @transform_2(%arg0: i32) -> (i32, i32) {
    %c0_i32 = arith.constant 0 : i32
    %c0_i32_0 = arith.constant 0 : i32
    %c0_i32_1 = arith.constant 0 : i32
    return %c0_i32, %c0_i32_0 : i32, i32
  }
  func.func @transform_3(%arg0: i32) -> (i32, i32, i32, i32) {
    %c0_i32 = arith.constant 0 : i32
    %c0_i32_0 = arith.constant 0 : i32
    %c0_i32_1 = arith.constant 0 : i32
    %c0_i32_2 = arith.constant 0 : i32
    %c0_i32_3 = arith.constant 0 : i32
    return %c0_i32, %c0_i32_0, %c0_i32_1, %c0_i32_2 : i32, i32, i32, i32
  }
  func.func @transform_4(%arg0: i32) -> (i32, i32, i32, i32) {
    %c0_i32 = arith.constant 0 : i32
    %c0_i32_0 = arith.constant 0 : i32
    %c0_i32_1 = arith.constant 0 : i32
    %c0_i32_2 = arith.constant 0 : i32
    return %arg0, %c0_i32, %c0_i32_0, %c0_i32_1 : i32, i32, i32, i32
  }
  func.func @transform_5(%arg0: i32) -> (i32, i32, i32) {
    %c0_i32 = arith.constant 0 : i32
    %c0_i32_0 = arith.constant 0 : i32
    %c0_i32_1 = arith.constant 0 : i32
    return %arg0, %c0_i32, %c0_i32_0 : i32, i32, i32
  }
}

module attributes {stable_mosaic.version = 11 : i64} {
  func.func @_bn_residual_kernel(%arg0: i32, %arg1: memref<1x16x16x128xf32, #tpu.memory_space<vmem>>, %arg2: memref<1x128xf32, #tpu.memory_space<vmem>>, %arg3: memref<1x128xf32, #tpu.memory_space<vmem>>, %arg4: memref<1x16x16x128xf32, #tpu.memory_space<vmem>>, %arg5: memref<1x16x16x128xf32, #tpu.memory_space<vmem>>) attributes {dimension_semantics = [#tpu.dimension_semantics<parallel>], iteration_bounds = array<i64: 2>, scalar_prefetch = 0 : i64, scratch_operands = 0 : i64, tpu.core_type = #tpu.core_type<tc>, window_params = [{transform_indices = @transform_0, window_bounds = array<i64: 1, 16, 16, 128>}, {pipeline_mode = #tpu.pipeline_mode<synchronous>, transform_indices = @transform_1, window_bounds = array<i64: 1, 128>}, {pipeline_mode = #tpu.pipeline_mode<synchronous>, transform_indices = @transform_2, window_bounds = array<i64: 1, 128>}, {transform_indices = @transform_3, window_bounds = array<i64: 1, 16, 16, 128>}, {transform_indices = @transform_4, window_bounds = array<i64: 1, 16, 16, 128>}]} {
    %c0 = arith.constant 0 : index
    %c0_0 = arith.constant 0 : index
    %c0_1 = arith.constant 0 : index
    %c0_2 = arith.constant 0 : index
    %0 = vector.load %arg1[%c0, %c0_0, %c0_1, %c0_2] : memref<1x16x16x128xf32, #tpu.memory_space<vmem>>, vector<1x16x16x128xf32>
    %c0_3 = arith.constant 0 : index
    %c0_4 = arith.constant 0 : index
    %1 = vector.load %arg2[%c0_3, %c0_4] : memref<1x128xf32, #tpu.memory_space<vmem>>, vector<1x128xf32>
    %2 = vector.shape_cast %1 : vector<1x128xf32> to vector<128xf32>
    %3 = vector.shape_cast %2 : vector<128xf32> to vector<1x1x1x128xf32>
    %4 = vector.broadcast %3 : vector<1x1x1x128xf32> to vector<1x16x16x128xf32>
    %5 = arith.mulf %0, %4 : vector<1x16x16x128xf32>
    %c0_5 = arith.constant 0 : index
    %c0_6 = arith.constant 0 : index
    %6 = vector.load %arg3[%c0_5, %c0_6] : memref<1x128xf32, #tpu.memory_space<vmem>>, vector<1x128xf32>
    %7 = vector.shape_cast %6 : vector<1x128xf32> to vector<128xf32>
    %8 = vector.shape_cast %7 : vector<128xf32> to vector<1x1x1x128xf32>
    %9 = vector.broadcast %8 : vector<1x1x1x128xf32> to vector<1x16x16x128xf32>
    %10 = arith.addf %5, %9 : vector<1x16x16x128xf32>
    %c0_7 = arith.constant 0 : index
    %c0_8 = arith.constant 0 : index
    %c0_9 = arith.constant 0 : index
    %c0_10 = arith.constant 0 : index
    %11 = vector.load %arg4[%c0_7, %c0_8, %c0_9, %c0_10] : memref<1x16x16x128xf32, #tpu.memory_space<vmem>>, vector<1x16x16x128xf32>
    %12 = arith.addf %10, %11 : vector<1x16x16x128xf32>
    %c0_11 = arith.constant 0 : index
    %c0_12 = arith.constant 0 : index
    %c0_13 = arith.constant 0 : index
    %c0_14 = arith.constant 0 : index
    %13 = vector.load %arg5[%c0_11, %c0_12, %c0_13, %c0_14] : memref<1x16x16x128xf32, #tpu.memory_space<vmem>>, vector<1x16x16x128xf32>
    tpu.vector_store %arg5[%c0_11, %c0_12, %c0_13, %c0_14], %12 {strides = array<i32>} : memref<1x16x16x128xf32, #tpu.memory_space<vmem>>, vector<1x16x16x128xf32>,
    return
  }
  func.func @transform_0(%arg0: i32) -> (i32, i32, i32, i32) {
    %c0_i32 = arith.constant 0 : i32
    %c0_i32_0 = arith.constant 0 : i32
    %c0_i32_1 = arith.constant 0 : i32
    %c0_i32_2 = arith.constant 0 : i32
    return %arg0, %c0_i32, %c0_i32_0, %c0_i32_1 : i32, i32, i32, i32
  }
  func.func @transform_1(%arg0: i32) -> (i32, i32) {
    %c0_i32 = arith.constant 0 : i32
    %c0_i32_0 = arith.constant 0 : i32
    %c0_i32_1 = arith.constant 0 : i32
    return %c0_i32, %c0_i32_0 : i32, i32
  }
  func.func @transform_2(%arg0: i32) -> (i32, i32) {
    %c0_i32 = arith.constant 0 : i32
    %c0_i32_0 = arith.constant 0 : i32
    %c0_i32_1 = arith.constant 0 : i32
    return %c0_i32, %c0_i32_0 : i32, i32
  }
  func.func @transform_3(%arg0: i32) -> (i32, i32, i32, i32) {
    %c0_i32 = arith.constant 0 : i32
    %c0_i32_0 = arith.constant 0 : i32
    %c0_i32_1 = arith.constant 0 : i32
    %c0_i32_2 = arith.constant 0 : i32
    return %arg0, %c0_i32, %c0_i32_0, %c0_i32_1 : i32, i32, i32, i32
  }
  func.func @transform_4(%arg0: i32) -> (i32, i32, i32, i32) {
    %c0_i32 = arith.constant 0 : i32
    %c0_i32_0 = arith.constant 0 : i32
    %c0_i32_1 = arith.constant 0 : i32
    %c0_i32_2 = arith.constant 0 : i32
    return %arg0, %c0_i32, %c0_i32_0, %c0_i32_1 : i32, i32, i32, i32
  }
}

</mosaic_0001>

<bundles_post_ra>
// kernel: res_block.5
= control target key start
LH: loop header
LB: loop body
LE: loop exit
PB: predicated region body
PF: predicated region fallthrough
CT: control target
= control target key end

     0   :  { %s544_s15 = smov 0   ;;  %s740_s0 = inlined_call_operand.vmem [shape: f32[2,16,16,128], index: 0, kind: input, shape index: {}]   ;;  %s741_s1 = inlined_call_operand.vmem [shape: f32[1,128], index: 1, kind: input, shape index: {}]   ;;  %s742_s2 = inlined_call_operand.vmem [shape: f32[1,128], index: 2, kind: input, shape index: {}]   ;;  %s743_s3 = inlined_call_operand.vmem [shape: f32[2,16,16,128], index: 3, kind: input, shape index: {}]   ;;  %s744_s4 = inlined_call_operand.vmem [shape: f32[2,16,16,128], index: 4, kind: output, shape index: {}]  }
   0x1 LB: > { %s485_s16 = sadd.s32 4294967295, %s517_s15   ;;  %p489_p0 = scmp.ge.s32.totalorder %s517_s15, 1  ;;  %s517_s15 = sphi %s544_s15, %s14_s15  }
   0x2   : > { %p172_p1 = scmp.lt.s32.totalorder %s517_s15, 3 }
   0x4   : > { %p173_p2 = pnand %p489_p0, %p172_p1 }
   0x5   : > { %p203_p3 = scmp.lt.s32.totalorder (!%p173_p2), %s485_s16, 1 }
   0x6   : > { %176 = sbr.rel (%p173_p2) target bundleno = 53 (0x35), region = 36 }
   0xb   : > { %s746_s16 = smov (!%p203_p3, %s485_s16), 1  ;;  %v555_v0 = vld [vmem:[%s741_s1] ss:$0 sm:$0xff] }
   0xc   : > { %s498_s19 = sshll.u32 %s746_s16, 8  ;;  %v570_v1 = vld [vmem:[%s742_s2] ss:$0 sm:$0xff] }
   0xd   : > { %s560_s22 = scalar_lea.vmem %s740_s0, %s498_s19  ;;  %s565_s25 = scalar_lea.vmem %s743_s3, %s498_s19 }
   0xe   : > { %v218_v2 = vld [vmem:[%s560_s22] sm:$0xff]  ;;  %v219_v3 = vld [vmem:[%s560_s22 + $0x8] sm:$0xff]  ;;  %v220_v7 = vld [vmem:[%s560_s22 + $0x10] sm:$0xff]  ;;  %s592_s30 = scalar_lea.vmem %s744_s4, %s498_s19 }
   0xf   : > { %v254_v4 = vmul.f32 %v555_v0, %v218_v2  ;;  %v322_v5 = vld [vmem:[%s565_s25] sm:$0xff]  ;;  %v255_v6 = vmul.f32 %v555_v0, %v219_v3  ;;  %v323_v8 = vld [vmem:[%s565_s25 + $0x8] sm:$0xff]  ;;  %v256_v9 = vmul.f32 %v555_v0, %v220_v7  ;;  %v221_v10 = vld [vmem:[%s560_s22 + $0x18] sm:$0xff] }
  0x10   : > { %v222_v11 = vld [vmem:[%s560_s22 + $0x20] sm:$0xff]  ;;  %v324_v14 = vld [vmem:[%s565_s25 + $0x10] sm:$0xff]  ;;  %v257_v15 = vmul.f32 %v555_v0, %v221_v10  ;;  %v325_v16 = vld [vmem:[%s565_s25 + $0x18] sm:$0xff] }
  0x11   : > { %v290_v12 = vadd.f32 %v570_v1, %v254_v4  ;;  %v291_v13 = vadd.f32 %v570_v1, %v255_v6  ;;  %v258_v17 = vmul.f32 %v555_v0, %v222_v11  ;;  %v223_v18 = vld [vmem:[%s560_s22 + $0x28] sm:$0xff]  ;;  %v292_v19 = vadd.f32 %v570_v1, %v256_v9  ;;  %v326_v20 = vld [vmem:[%s565_s25 + $0x20] sm:$0xff]  ;;  %v224_v22 = vld [vmem:[%s560_s22 + $0x30] sm:$0xff] }
  0x12   : > { %v259_v21 = vmul.f32 %v555_v0, %v223_v18  ;;  %v225_v23 = vld [vmem:[%s560_s22 + $0x38] sm:$0xff]  ;;  %v293_v26 = vadd.f32 %v570_v1, %v257_v15  ;;  %v327_v28 = vld [vmem:[%s565_s25 + $0x28] sm:$0xff]  ;;  %v226_v29 = vld [vmem:[%s560_s22 + $0x40] sm:$0xff]  ;;  %v260_v32 = vmul.f32 %v555_v0, %v224_v22 }
  0x13   : > { %v354_v24 = vadd.f32 %v322_v5, %v290_v12  ;;  %v355_v25 = vadd.f32 %v323_v8, %v291_v13  ;;  %v294_v27 = vadd.f32 %v570_v1, %v258_v17  ;;  %v356_v30 = vadd.f32 %v324_v14, %v292_v19  ;;  %v227_v34 = vld [vmem:[%s560_s22 + $0x48] sm:$0xff]  ;;  %v228_v35 = vld [vmem:[%s560_s22 + $0x50] sm:$0xff]  ;;  %v329_v39 = vld [vmem:[%s565_s25 + $0x38] sm:$0xff] }
  0x14   : > { %v295_v31 = vadd.f32 %v570_v1, %v259_v21  ;;  %v261_v33 = vmul.f32 %v555_v0, %v225_v23  ;;  %v357_v36 = vadd.f32 %v325_v16, %v293_v26  ;;  %v328_v38 = vld [vmem:[%s565_s25 + $0x30] sm:$0xff]  ;;  %v262_v40 = vmul.f32 %v555_v0, %v226_v29  ;;  %v229_v42 = vld [vmem:[%s560_s22 + $0x58] sm:$0xff]  ;;  %v330_v46 = vld [vmem:[%s565_s25 + $0x40] sm:$0xff] }
  0x15   : > { %386 = vst [vmem:[%s592_s30] sm:$0xff] %v354_v24  ;;  %v358_v37 = vadd.f32 %v326_v20, %v294_v27  ;;  %v263_v41 = vmul.f32 %v555_v0, %v227_v34  ;;  %v296_v44 = vadd.f32 %v570_v1, %v260_v32  ;;  %v264_v47 = vmul.f32 %v555_v0, %v228_v35  ;;  %v230_v48 = vld [vmem:[%s560_s22 + $0x60] sm:$0xff]  ;;  %v231_v49 = vld [vmem:[%s560_s22 + $0x68] sm:$0xff]  ;;  %v232_v55 = vld [vmem:[%s560_s22 + $0x70] sm:$0xff] }
  0x16   : > { %387 = vst [vmem:[%s592_s30 + $0x8] sm:$0xff] %v355_v25  ;;  %v359_v43 = vadd.f32 %v327_v28, %v295_v31  ;;  %v297_v45 = vadd.f32 %v570_v1, %v261_v33  ;;  %v298_v50 = vadd.f32 %v570_v1, %v262_v40  ;;  %v331_v52 = vld [vmem:[%s565_s25 + $0x48] sm:$0xff]  ;;  %v265_v53 = vmul.f32 %v555_v0, %v229_v42  ;;  %v332_v59 = vld [vmem:[%s565_s25 + $0x50] sm:$0xff]  ;;  %v233_v61 = vld [vmem:[%s560_s22 + $0x78] sm:$0xff] }
  0x17   : > { %388 = vst [vmem:[%s592_s30 + $0x10] sm:$0xff] %v356_v30  ;;  %v299_v51 = vadd.f32 %v570_v1, %v263_v41  ;;  %v266_v54 = vmul.f32 %v555_v0, %v230_v48  ;;  %v360_v56 = vadd.f32 %v328_v38, %v296_v44  ;;  %v300_v58 = vadd.f32 %v570_v1, %v264_v47  ;;  %v234_v62 = vld [vmem:[%s560_s22 + $0x80] sm:$0xff]  ;;  %v333_v3 = vld [vmem:[%s565_s25 + $0x58] sm:$0xff]  ;;  %v235_v5 = vld [vmem:[%s560_s22 + $0x88] sm:$0xff] }
  0x18   : > { %389 = vst [vmem:[%s592_s30 + $0x18] sm:$0xff] %v357_v36  ;;  %v361_v57 = vadd.f32 %v329_v39, %v297_v45  ;;  %v267_v60 = vmul.f32 %v555_v0, %v231_v49  ;;  %v362_v63 = vadd.f32 %v330_v46, %v298_v50  ;;  %v301_v2 = vadd.f32 %v570_v1, %v265_v53  ;;  %v334_v7 = vld [vmem:[%s565_s25 + $0x60] sm:$0xff]  ;;  %v236_v11 = vld [vmem:[%s560_s22 + $0x90] sm:$0xff]  ;;  %v237_v12 = vld [vmem:[%s560_s22 + $0x98] sm:$0xff] }
  0x19   : > { %390 = vst [vmem:[%s592_s30 + $0x20] sm:$0xff] %v358_v37  ;;  %v302_v4 = vadd.f32 %v570_v1, %v266_v54  ;;  %v363_v6 = vadd.f32 %v331_v52, %v299_v51  ;;  %v268_v9 = vmul.f32 %v555_v0, %v232_v55  ;;  %v269_v10 = vmul.f32 %v555_v0, %v233_v61  ;;  %v335_v14 = vld [vmem:[%s565_s25 + $0x68] sm:$0xff]  ;;  %v238_v17 = vld [vmem:[%s560_s22 + $0xa0] sm:$0xff]  ;;  %v336_v20 = vld [vmem:[%s565_s25 + $0x70] sm:$0xff] }
  0x1a   : > { %391 = vst [vmem:[%s592_s30 + $0x28] sm:$0xff] %v359_v43  ;;  %v303_v8 = vadd.f32 %v570_v1, %v267_v60  ;;  %v364_v13 = vadd.f32 %v332_v59, %v300_v58  ;;  %v270_v15 = vmul.f32 %v555_v0, %v234_v62  ;;  %v271_v16 = vmul.f32 %v555_v0, %v235_v5  ;;  %v239_v23 = vld [vmem:[%s560_s22 + $0xa8] sm:$0xff]  ;;  %v337_v25 = vld [vmem:[%s565_s25 + $0x78] sm:$0xff]  ;;  %v240_v29 = vld [vmem:[%s560_s22 + $0xb0] sm:$0xff] }
  0x1b   : > { %392 = vst [vmem:[%s592_s30 + $0x30] sm:$0xff] %v360_v56  ;;  %v365_v18 = vadd.f32 %v333_v3, %v301_v2  ;;  %v304_v19 = vadd.f32 %v570_v1, %v268_v9  ;;  %v305_v21 = vadd.f32 %v570_v1, %v269_v10  ;;  %v272_v22 = vmul.f32 %v555_v0, %v236_v11  ;;  %v241_v30 = vld [vmem:[%s560_s22 + $0xb8] sm:$0xff]  ;;  %v338_v32 = vld [vmem:[%s565_s25 + $0x80] sm:$0xff]  ;;  %v339_v37 = vld [vmem:[%s565_s25 + $0x88] sm:$0xff] }
  0x1c   : > { %393 = vst [vmem:[%s592_s30 + $0x38] sm:$0xff] %v361_v57  ;;  %v366_v24 = vadd.f32 %v334_v7, %v302_v4  ;;  %v306_v26 = vadd.f32 %v570_v1, %v270_v15  ;;  %v273_v27 = vmul.f32 %v555_v0, %v237_v12  ;;  %v274_v28 = vmul.f32 %v555_v0, %v238_v17  ;;  %v242_v35 = vld [vmem:[%s560_s22 + $0xc0] sm:$0xff]  ;;  %v243_v39 = vld [vmem:[%s560_s22 + $0xc8] sm:$0xff]  ;;  %v340_v41 = vld [vmem:[%s565_s25 + $0x90] sm:$0xff] }
  0x1d   : > { %394 = vst [vmem:[%s592_s30 + $0x40] sm:$0xff] %v362_v63  ;;  %v367_v31 = vadd.f32 %v335_v14, %v303_v8  ;;  %v307_v33 = vadd.f32 %v570_v1, %v271_v16  ;;  %v275_v34 = vmul.f32 %v555_v0, %v239_v23  ;;  %v368_v36 = vadd.f32 %v336_v20, %v304_v19  ;;  %v244_v45 = vld [vmem:[%s560_s22 + $0xd0] sm:$0xff]  ;;  %v341_v47 = vld [vmem:[%s565_s25 + $0x98] sm:$0xff]  ;;  %v342_v52 = vld [vmem:[%s565_s25 + $0xa0] sm:$0xff] }
  0x1e   : > { %395 = vst [vmem:[%s592_s30 + $0x48] sm:$0xff] %v363_v6  ;;  %v308_v38 = vadd.f32 %v570_v1, %v272_v22  ;;  %v369_v40 = vadd.f32 %v337_v25, %v305_v21  ;;  %v309_v42 = vadd.f32 %v570_v1, %v273_v27  ;;  %v276_v43 = vmul.f32 %v555_v0, %v240_v29  ;;  %v245_v50 = vld [vmem:[%s560_s22 + $0xd8] sm:$0xff]  ;;  %v246_v55 = vld [vmem:[%s560_s22 + $0xe0] sm:$0xff]  ;;  %v343_v57 = vld [vmem:[%s565_s25 + $0xa8] sm:$0xff] }
  0x1f   : > { %396 = vst [vmem:[%s592_s30 + $0x50] sm:$0xff] %v364_v13  ;;  %v277_v44 = vmul.f32 %v555_v0, %v241_v30  ;;  %v370_v46 = vadd.f32 %v338_v32, %v306_v26  ;;  %v310_v48 = vadd.f32 %v570_v1, %v274_v28  ;;  %v278_v49 = vmul.f32 %v555_v0, %v242_v35  ;;  %v247_v60 = vld [vmem:[%s560_s22 + $0xe8] sm:$0xff]  ;;  %v344_v62 = vld [vmem:[%s565_s25 + $0xb0] sm:$0xff]  ;;  %v345_v5 = vld [vmem:[%s565_s25 + $0xb8] sm:$0xff] }
  0x20   : > { %397 = vst [vmem:[%s592_s30 + $0x58] sm:$0xff] %v365_v18  ;;  %v371_v51 = vadd.f32 %v339_v37, %v307_v33  ;;  %v311_v53 = vadd.f32 %v570_v1, %v275_v34  ;;  %v279_v54 = vmul.f32 %v555_v0, %v243_v39  ;;  %v372_v56 = vadd.f32 %v340_v41, %v308_v38  ;;  %v248_v3 = vld [vmem:[%s560_s22 + $0xf0] sm:$0xff]  ;;  %v249_v8 = vld [vmem:[%s560_s22 + $0xf8] sm:$0xff]  ;;  %v346_v10 = vld [vmem:[%s565_s25 + $0xc0] sm:$0xff] }
  0x21   : > { %398 = vst [vmem:[%s592_s30 + $0x60] sm:$0xff] %v366_v24  ;;  %v312_v58 = vadd.f32 %v570_v1, %v276_v43  ;;  %v280_v59 = vmul.f32 %v555_v0, %v244_v45  ;;  %v373_v61 = vadd.f32 %v341_v47, %v309_v42  ;;  %v313_v63 = vadd.f32 %v570_v1, %v277_v44  ;;  %v347_v14 = vld [vmem:[%s565_s25 + $0xc8] sm:$0xff]  ;;  %v348_v18 = vld [vmem:[%s565_s25 + $0xd0] sm:$0xff]  ;;  %v349_v22 = vld [vmem:[%s565_s25 + $0xd8] sm:$0xff] }
  0x22   : > { %399 = vst [vmem:[%s592_s30 + $0x68] sm:$0xff] %v367_v31  ;;  %v281_v2 = vmul.f32 %v555_v0, %v245_v50  ;;  %v374_v4 = vadd.f32 %v342_v52, %v310_v48  ;;  %v314_v6 = vadd.f32 %v570_v1, %v278_v49  ;;  %v282_v7 = vmul.f32 %v555_v0, %v246_v55  ;;  %v350_v25 = vld [vmem:[%s565_s25 + $0xe0] sm:$0xff]  ;;  %v351_v28 = vld [vmem:[%s565_s25 + $0xe8] sm:$0xff]  ;;  %v352_v30 = vld [vmem:[%s565_s25 + $0xf0] sm:$0xff] }
  0x23   : > { %400 = vst [vmem:[%s592_s30 + $0x70] sm:$0xff] %v368_v36  ;;  %v375_v9 = vadd.f32 %v343_v57, %v311_v53  ;;  %v315_v11 = vadd.f32 %v570_v1, %v279_v54  ;;  %v283_v12 = vmul.f32 %v555_v0, %v247_v60  ;;  %v376_v13 = vadd.f32 %v344_v62, %v312_v58  ;;  %v353_v33 = vld [vmem:[%s565_s25 + $0xf8] sm:$0xff] }
  0x24   : > { %401 = vst [vmem:[%s592_s30 + $0x78] sm:$0xff] %v369_v40  ;;  %v316_v15 = vadd.f32 %v570_v1, %v280_v59  ;;  %v284_v16 = vmul.f32 %v555_v0, %v248_v3  ;;  %v377_v17 = vadd.f32 %v345_v5, %v313_v63  ;;  %v317_v19 = vadd.f32 %v570_v1, %v281_v2 }
  0x25   : > { %402 = vst [vmem:[%s592_s30 + $0x80] sm:$0xff] %v370_v46  ;;  %v285_v20 = vmul.f32 %v555_v0, %v249_v8  ;;  %v378_v21 = vadd.f32 %v346_v10, %v314_v6  ;;  %v318_v23 = vadd.f32 %v570_v1, %v282_v7  ;;  %v379_v24 = vadd.f32 %v347_v14, %v315_v11 }
  0x26   : > { %403 = vst [vmem:[%s592_s30 + $0x88] sm:$0xff] %v371_v51  ;;  %v319_v26 = vadd.f32 %v570_v1, %v283_v12  ;;  %v380_v27 = vadd.f32 %v348_v18, %v316_v15  ;;  %v320_v0 = vadd.f32 %v570_v1, %v284_v16  ;;  %v381_v29 = vadd.f32 %v349_v22, %v317_v19 }
  0x27   : > { %404 = vst [vmem:[%s592_s30 + $0x90] sm:$0xff] %v372_v56  ;;  %v321_v31 = vadd.f32 %v570_v1, %v285_v20  ;;  %v382_v32 = vadd.f32 %v350_v25, %v318_v23 }
  0x28   : > { %405 = vst [vmem:[%s592_s30 + $0x98] sm:$0xff] %v373_v61  ;;  %v383_v34 = vadd.f32 %v351_v28, %v319_v26  ;;  %v384_v35 = vadd.f32 %v352_v30, %v320_v0 }
  0x29   : > { %406 = vst [vmem:[%s592_s30 + $0xa0] sm:$0xff] %v374_v4  ;;  %v385_v36 = vadd.f32 %v353_v33, %v321_v31 }
  0x2a   : > { %407 = vst [vmem:[%s592_s30 + $0xa8] sm:$0xff] %v375_v9 }
  0x2b   : > { %408 = vst [vmem:[%s592_s30 + $0xb0] sm:$0xff] %v376_v13 }
  0x2c   : > { %409 = vst [vmem:[%s592_s30 + $0xb8] sm:$0xff] %v377_v17 }
  0x2d   : > { %410 = vst [vmem:[%s592_s30 + $0xc0] sm:$0xff] %v378_v21 }
  0x2e   : > { %411 = vst [vmem:[%s592_s30 + $0xc8] sm:$0xff] %v379_v24 }
  0x2f   : > { %412 = vst [vmem:[%s592_s30 + $0xd0] sm:$0xff] %v380_v27 }
  0x30   : > { %413 = vst [vmem:[%s592_s30 + $0xd8] sm:$0xff] %v381_v29 }
  0x31   : > { %414 = vst [vmem:[%s592_s30 + $0xe0] sm:$0xff] %v382_v32 }
  0x32   : > { %415 = vst [vmem:[%s592_s30 + $0xe8] sm:$0xff] %v383_v34 }
  0x33   : > { %416 = vst [vmem:[%s592_s30 + $0xf0] sm:$0xff] %v384_v35 }
  0x34   : > { %417 = vst [vmem:[%s592_s30 + $0xf8] sm:$0xff] %v385_v36 }
  0x35 PF: > { %s14_s15 = sadd.s32 1, %s517_s15  }
  0x36   : > { %p11_p4 = scmp.ge.s32.totalorder %s14_s15, 4  }
  0x38   :  { %13 = sbr.rel (!%p11_p4) target bundleno = 1 (0x1), region = 69 }

// kernel: res_block.3
= control target key start
LH: loop header
LB: loop body
LE: loop exit
PB: predicated region body
PF: predicated region fallthrough
CT: control target
= control target key end

     0   :  { %s3142_s12 = smov 0   ;;  %s4124_s0 = inlined_call_operand.vmem [shape: f32[2,16,16,128], index: 0, kind: input, shape index: {}]   ;;  %s4125_s1 = inlined_call_operand.vmem [shape: f32[3,3,128,128], index: 1, kind: input, shape index: {}]   ;;  %s4126_s2 = inlined_call_operand.vmem [shape: f32[2,16,16,128], index: 2, kind: output, shape index: {0}]   ;;  %s4127_s3 = inlined_call_operand.vmem [shape: f32[2,2,128], index: 3, kind: output, shape index: {1}]  }
   0x1 LB: > { %s2913_s13 = sadd.s32 4294967295, %s3119_s12   ;;  %p2917_p0 = scmp.ge.s32.totalorder %s3119_s12, 1  ;;  %s3119_s12 = sphi %s3142_s12, %s14_s12  }
   0x2   : > { %p140_p1 = scmp.lt.s32.totalorder %s3119_s12, 3 }
   0x4   : > { %p141_p2 = pnand %p2917_p0, %p140_p1 }
   0x5   : > { %p168_p3 = scmp.lt.s32.totalorder (!%p141_p2), %s2913_s13, 1 }
   0x6   : > { %144 = sbr.rel (%p141_p2) target bundleno = 798 (0x31e), region = 28 }
   0xb   : > { %v412_v0 = vld [vmem:[%s4125_s1 + $0x78] sm:$0xff]  ;;  %v411_v1 = vld [vmem:[%s4125_s1 + $0x70] sm:$0xff]  ;;  %v3121_v2 = vmov 0.0   ;;  %v410_v3 = vld [vmem:[%s4125_s1 + $0x68] sm:$0xff]  ;;  %s4129_s13 = smov (!%p168_p3, %s2913_s13), 1 }
   0xc   : > { %3055 = vmatpush.msra.mxu1 %v412_v0  ;;  %3056 = vmatpush.msra.mxu2 %v412_v0  ;;  %226 = vst [vmem:[#allocation2 + $0x60] sm:$0xff] %v3121_v2  ;;  %v409_v4 = vld [vmem:[%s4125_s1 + $0x60] sm:$0xff]  ;;  %s3053_s22 = sshll.u32 %s4129_s13, 8  ;;  %v408_v5 = vld [vmem:[%s4125_s1 + $0x58] sm:$0xff]  ;;  %v407_v7 = vld [vmem:[%s4125_s1 + $0x50] sm:$0xff] }
   0xd   : > { %3057 = vmatpush.msra.mxu3 %v412_v0  ;;  %413 = vmatpush.msra.mxu0 %v412_v0  ;;  %227 = vst [vmem:[#allocation2 + $0x68] sm:$0xff] %v3121_v2  ;;  %s3174_s25 = scalar_lea.vmem %s4124_s0, %s3053_s22  ;;  %v406_v8 = vld [vmem:[%s4125_s1 + $0x48] sm:$0xff]  ;;  %v405_v9 = vld [vmem:[%s4125_s1 + $0x40] sm:$0xff]  ;;  %v404_v10 = vld [vmem:[%s4125_s1 + $0x38] sm:$0xff]  ;;  %s4052_s4 = scalar_lea.vmem %s4126_s2, %s3053_s22 }
   0xe   : > { %3058 = vmatpush.msra.mxu1 %v411_v1  ;;  %3059 = vmatpush.msra.mxu2 %v411_v1  ;;  %214 = vst [vmem:[#allocation2] sm:$0xff] %v3121_v2  ;;  %v3181_v6 = vld [vmem:[%s3174_s25 + $0x30] sm:$0xff]  ;;  %v402_v12 = vld [vmem:[%s4125_s1 + $0x28] sm:$0xff]  ;;  %v401_v13 = vld [vmem:[%s4125_s1 + $0x20] sm:$0xff]  ;;  %s2922_s22 = sshll.u32 %s4129_s13, 1 }
   0xf   : > { %3060 = vmatpush.msra.mxu3 %v411_v1  ;;  %414 = vmatpush.msra.mxu0 %v411_v1  ;;  %215 = vst [vmem:[#allocation2 + $0x8] sm:$0xff] %v3121_v2  ;;  %v403_v11 = vld [vmem:[%s4125_s1 + $0x30] sm:$0xff]  ;;  %v400_v14 = vld [vmem:[%s4125_s1 + $0x18] sm:$0xff]  ;;  %v398_v16 = vld [vmem:[%s4125_s1 + $0x8] sm:$0xff]  ;;  %s181_s7 = scalar_lea.vmem %s4127_s3, %s2922_s22 }
  0x10   : > { %3061 = vmatpush.msra.mxu1 %v410_v3  ;;  %3062 = vmatpush.msra.mxu2 %v410_v3  ;;  %216 = vst [vmem:[#allocation2 + $0x10] sm:$0x3] %v3121_v2  ;;  %v399_v15 = vld [vmem:[%s4125_s1 + $0x10] sm:$0xff]  ;;  %v397_v17 = vld [vmem:[%s4125_s1] sm:$0xff]  ;;  %v2954_v19 = vld [vmem:[%s4125_s1 + $0x178] sm:$0xff] }
  0x11   : > { %3063 = vmatpush.msra.mxu3 %v410_v3  ;;  %415 = vmatpush.msra.mxu0 %v410_v3  ;;  %217 = vst [vmem:[#allocation2 + $0x18] sm:$0xff] %v3121_v2  ;;  %v2970_v20 = vld [vmem:[%s4125_s1 + $0x1f8] sm:$0xff]  ;;  %v2953_v22 = vld [vmem:[%s4125_s1 + $0x170] sm:$0xff]  ;;  %v2952_v25 = vld [vmem:[%s4125_s1 + $0x168] sm:$0xff] }
  0x12   : > { %3064 = vmatpush.msra.mxu1 %v409_v4  ;;  %3065 = vmatpush.msra.mxu2 %v409_v4  ;;  %275 = vst [vmem:[#allocation2 + $0x61] sm:$0xff] %v3181_v6  ;;  %v2938_v21 = vld [vmem:[%s4125_s1 + $0xf8] sm:$0xff]  ;;  %v2969_v23 = vld [vmem:[%s4125_s1 + $0x1f0] sm:$0xff]  ;;  %v2968_v26 = vld [vmem:[%s4125_s1 + $0x1e8] sm:$0xff] }
  0x13   : > { %3066 = vmatpush.msra.mxu3 %v409_v4  ;;  %416 = vmatpush.msra.mxu0 %v409_v4  ;;  %218 = vst [vmem:[#allocation2 + $0x20] sm:$0xff] %v3121_v2  ;;  %v2937_v24 = vld [vmem:[%s4125_s1 + $0xf0] sm:$0xff]  ;;  %v2986_v27 = vld [vmem:[%s4125_s1 + $0x278] sm:$0xff]  ;;  %v2936_v28 = vld [vmem:[%s4125_s1 + $0xe8] sm:$0xff] }
  0x14   : > { %3067 = vmatpush.msra.mxu1 %v408_v5  ;;  %3068 = vmatpush.msra.mxu2 %v408_v5  ;;  %219 = vst [vmem:[#allocation2 + $0x28] sm:$0x3] %v3121_v2  ;;  %v2951_v29 = vld [vmem:[%s4125_s1 + $0x160] sm:$0xff]  ;;  %v2985_v31 = vld [vmem:[%s4125_s1 + $0x270] sm:$0xff]  ;;  %v2950_v33 = vld [vmem:[%s4125_s1 + $0x158] sm:$0xff] }
  0x15   : > { %3069 = vmatpush.msra.mxu3 %v408_v5  ;;  %417 = vmatpush.msra.mxu0 %v408_v5  ;;  %220 = vst [vmem:[#allocation2 + $0x30] sm:$0xff] %v3121_v2  ;;  %v2967_v30 = vld [vmem:[%s4125_s1 + $0x1e0] sm:$0xff]  ;;  %v2966_v34 = vld [vmem:[%s4125_s1 + $0x1d8] sm:$0xff]  ;;  %v2984_v35 = vld [vmem:[%s4125_s1 + $0x268] sm:$0xff] }
  0x16   : > { %3070 = vmatpush.msra.mxu1 %v407_v7  ;;  %3071 = vmatpush.msra.mxu2 %v407_v7  ;;  %221 = vst [vmem:[#allocation2 + $0x38] sm:$0xff] %v3121_v2  ;;  %v2935_v32 = vld [vmem:[%s4125_s1 + $0xe0] sm:$0xff]  ;;  %v2934_v36 = vld [vmem:[%s4125_s1 + $0xd8] sm:$0xff]  ;;  %v2949_v37 = vld [vmem:[%s4125_s1 + $0x150] sm:$0xff] }
  0x17   : > { %3072 = vmatpush.msra.mxu3 %v407_v7  ;;  %418 = vmatpush.msra.mxu0 %v407_v7  ;;  %222 = vst [vmem:[#allocation2 + $0x40] sm:$0x3] %v3121_v2  ;;  %v2965_v38 = vld [vmem:[%s4125_s1 + $0x1d0] sm:$0xff]  ;;  %v2983_v39 = vld [vmem:[%s4125_s1 + $0x260] sm:$0xff]  ;;  %v3339_v42 = vld [vmem:[%s3174_s25 + $0x38] sm:$0xff] }
  0x18   : > { %3073 = vmatpush.msra.mxu1 %v406_v8  ;;  %3074 = vmatpush.msra.mxu2 %v406_v8  ;;  %223 = vst [vmem:[#allocation2 + $0x48] sm:$0xff] %v3121_v2  ;;  %v3333_v40 = vld [vmem:[%s3174_s25 + $0x70] sm:$0xff]  ;;  %v3342_v43 = vld [vmem:[%s3174_s25 + $0x78] sm:$0xff]  ;;  %v3347_v45 = vld [vmem:[%s3174_s25 + $0x40] sm:$0xff] }
  0x19   : > { %3075 = vmatpush.msra.mxu3 %v406_v8  ;;  %419 = vmatpush.msra.mxu0 %v406_v8  ;;  %224 = vst [vmem:[#allocation2 + $0x50] sm:$0xff] %v3121_v2  ;;  %v3239_v18 = vld [vmem:[#allocation2 + $0x60] sm:$0xff]  ;;  %v204_v41 = vld [vmem:[%s3174_s25 + $0xb0] sm:$0xff]  ;;  %v205_v44 = vld [vmem:[%s3174_s25 + $0xb8] sm:$0xff] }
  0x1a   : > { %3076 = vmatpush.msra.mxu1 %v405_v9  ;;  %3077 = vmatpush.msra.mxu2 %v405_v9  ;;  %225 = vst [vmem:[#allocation2 + $0x58] sm:$0x3] %v3121_v2  ;;  %v2933_v46 = vld [vmem:[%s4125_s1 + $0xd0] sm:$0xff]  ;;  %v2948_v47 = vld [vmem:[%s4125_s1 + $0x148] sm:$0xff]  ;;  %v2982_v49 = vld [vmem:[%s4125_s1 + $0x258] sm:$0xff] }
  0x1b   : > { %3078 = vmatpush.msra.mxu3 %v405_v9  ;;  %420 = vmatpush.msra.mxu0 %v405_v9  ;;  %228 = vst [vmem:[#allocation2 + $0x70] sm:$0x3] %v3121_v2  ;;  %v2964_v48 = vld [vmem:[%s4125_s1 + $0x1c8] sm:$0xff]  ;;  %v2947_v51 = vld [vmem:[%s4125_s1 + $0x140] sm:$0xff]  ;;  %v2981_v53 = vld [vmem:[%s4125_s1 + $0x250] sm:$0xff] }
  0x1c   : > { %3079 = vmatpush.msra.mxu1 %v404_v10  ;;  %3080 = vmatpush.msra.mxu2 %v404_v10  ;;  %229 = vst [vmem:[#allocation2 + $0x78] sm:$0xff] %v3121_v2  ;;  %v2932_v50 = vld [vmem:[%s4125_s1 + $0xc8] sm:$0xff]  ;;  %v2963_v52 = vld [vmem:[%s4125_s1 + $0x1c0] sm:$0xff]  ;;  %v3394_v61 = vld [vmem:[%s3174_s25 + $0x50] sm:$0xff] }
  0x1d   : > { %3081 = vmatpush.msra.mxu3 %v404_v10  ;;  %421 = vmatpush.msra.mxu0 %v404_v10  ;;  %230 = vst [vmem:[#allocation2 + $0x80] sm:$0xff] %v3121_v2  ;;  %v3376_v54 = vld [vmem:[%s3174_s25 + $0x80] sm:$0xff]  ;;  %v3381_v56 = vld [vmem:[%s3174_s25 + $0x48] sm:$0xff]  ;;  %v2946_v0 = vld [vmem:[%s4125_s1 + $0x138] sm:$0xff] }
  0x1e   : > { %3082 = vmatpush.msra.mxu1 %v403_v11  ;;  %3083 = vmatpush.msra.mxu2 %v403_v11  ;;  %231 = vst [vmem:[#allocation2 + $0x88] sm:$0x3] %v3121_v2  ;;  %v206_v55 = vld [vmem:[%s3174_s25 + $0xc0] sm:$0xff]  ;;  %v3385_v57 = vld [vmem:[%s3174_s25 + $0x88] sm:$0xff]  ;;  %v3416_v4 = vld [vmem:[%s3174_s25 + $0x90] sm:$0xff] }
  0x1f   : > { %3084 = vmatpush.msra.mxu3 %v403_v11  ;;  %422 = vmatpush.msra.mxu0 %v403_v11  ;;  %232 = vst [vmem:[#allocation2 + $0x90] sm:$0xff] %v3121_v2  ;;  %v3388_v58 = vld [vmem:[%s3174_s25] sm:$0xff]  ;;  %v207_v60 = vld [vmem:[%s3174_s25 + $0xc8] sm:$0xff]  ;;  %v2930_v5 = vld [vmem:[%s4125_s1 + $0xb8] sm:$0xff] }
  0x20   : > { %3085 = vmatpush.msra.mxu1 %v402_v12  ;;  %3086 = vmatpush.msra.mxu2 %v402_v12  ;;  %233 = vst [vmem:[#allocation2 + $0x98] sm:$0xff] %v3121_v2  ;;  %v2931_v63 = vld [vmem:[%s4125_s1 + $0xc0] sm:$0xff]  ;;  %v2980_v3 = vld [vmem:[%s4125_s1 + $0x248] sm:$0xff]  ;;  %v2945_v7 = vld [vmem:[%s4125_s1 + $0x130] sm:$0xff] }
  0x21   : > { %3087 = vmatpush.msra.mxu3 %v402_v12  ;;  %423 = vmatpush.msra.mxu0 %v402_v12  ;;  %234 = vst [vmem:[#allocation2 + $0xa0] sm:$0x3] %v3121_v2  ;;  %v3425_v8 = vld [vmem:[%s3174_s25 + $0x8] sm:$0xff]  ;;  %v2961_v9 = vld [vmem:[%s4125_s1 + $0x1b0] sm:$0xff]  ;;  %v2979_v10 = vld [vmem:[%s4125_s1 + $0x240] sm:$0xff] }
  0x22   : > { %3088 = vmatpush.msra.mxu1 %v401_v13  ;;  %3089 = vmatpush.msra.mxu2 %v401_v13  ;;  %235 = vst [vmem:[#allocation2 + $0xa8] sm:$0xff] %v3121_v2  ;;  %v208_v11 = vld [vmem:[%s3174_s25 + $0xd0] sm:$0xff] }
  0x23   : > { %3090 = vmatpush.msra.mxu3 %v401_v13  ;;  %236 = vst [vmem:[#allocation2 + $0xb0] sm:$0xff] %v3121_v2  ;;  %424 = vmatpush.msra.mxu0 %v401_v13  ;;  %v3439_v13 = vld [vmem:[%s3174_s25 + $0x58] sm:$0xff] }
  0x24   : > { %3091 = vmatpush.msra.mxu1 %v400_v14  ;;  %3092 = vmatpush.msra.mxu2 %v400_v14  ;;  %237 = vst [vmem:[#allocation2 + $0xb8] sm:$0x3] %v3121_v2 }
  0x25   : > { %3093 = vmatpush.msra.mxu3 %v400_v14  ;;  %238 = vst [vmem:[#allocation2 + $0xc0] sm:$0xff] %v3121_v2  ;;  %425 = vmatpush.msra.mxu0 %v400_v14 }
  0x26   : > { %3094 = vmatpush.msra.mxu1 %v399_v15  ;;  %3095 = vmatpush.msra.mxu2 %v399_v15  ;;  %239 = vst [vmem:[#allocation2 + $0xc8] sm:$0xff] %v3121_v2 }
  0x27   : > { %3096 = vmatpush.msra.mxu3 %v399_v15  ;;  %240 = vst [vmem:[#allocation2 + $0xd0] sm:$0x3] %v3121_v2  ;;  %426 = vmatpush.msra.mxu0 %v399_v15  ;;  %v3443_v15 = vld [vmem:[%s3174_s25 + $0x98] sm:$0xff] }
  0x28   : > { %3097 = vmatpush.msra.mxu1 %v398_v16  ;;  %3098 = vmatpush.msra.mxu2 %v398_v16  ;;  %241 = vst [vmem:[#allocation2 + $0xd8] sm:$0xff] %v3121_v2 }
  0x29   : > { %3099 = vmatpush.msra.mxu3 %v398_v16  ;;  %242 = vst [vmem:[#allocation2 + $0xe0] sm:$0xff] %v3121_v2  ;;  %427 = vmatpush.msra.mxu0 %v398_v16 }
  0x2a   : > { %3100 = vmatpush.msra.mxu1 %v397_v17  ;;  %3101 = vmatpush.msra.mxu2 %v397_v17  ;;  %243 = vst [vmem:[#allocation2 + $0xe8] sm:$0x3] %v3121_v2 }
  0x2b   : > { %453 = vmatmul.f32.vlgmr.msra.gmra.mxu1 %v3239_v18  ;;  %244 = vst [vmem:[#allocation2 + $0xf0] sm:$0xff] %v3121_v2  ;;  %3102 = vmatpush.msra.mxu3 %v397_v17 }
  0x2c   : > { %245 = vst [vmem:[#allocation2 + $0xf8] sm:$0xff] %v3121_v2  ;;  %929 = vmatpush.msrb.mxu2 %v2954_v19  ;;  %428 = vmatpush.msra.mxu0 %v397_v17  ;;  %v3448_v17 = vld [vmem:[%s3174_s25 + $0x10] sm:$0xff]  ;;  %v209_v19 = vld [vmem:[%s3174_s25 + $0xd8] sm:$0xff] }
  0x2d   : > { %246 = vst [vmem:[#allocation2 + $0x100] sm:$0x3] %v3121_v2  ;;  %1187 = vmatpush.msrb.mxu3 %v2970_v20  ;;  %671 = vmatpush.msrb.mxu1 %v2938_v21  ;;  %v2929_v20 = vld [vmem:[%s4125_s1 + $0xb0] sm:$0xff]  ;;  %v2944_v21 = vld [vmem:[%s4125_s1 + $0x128] sm:$0xff] }
  0x2e   : > { %247 = vst [vmem:[#allocation2 + $0x108] sm:$0xff] %v3121_v2  ;;  %930 = vmatpush.msrb.mxu2 %v2953_v22  ;;  %429 = vmatmul.f32.vlgmr.msra.gmra.mxu0 %v3121_v2  ;;  %v3460_v22 = vld [vmem:[%s3174_s25 + $0x60] sm:$0xff] }
  0x2f   : > { %248 = vst [vmem:[#allocation2 + $0x110] sm:$0xff] %v3121_v2  ;;  %1188 = vmatpush.msrb.mxu3 %v2969_v23  ;;  %672 = vmatpush.msrb.mxu1 %v2937_v24  ;;  %v2960_v24 = vld [vmem:[%s4125_s1 + $0x1a8] sm:$0xff] }
  0x30   : > { %249 = vst [vmem:[#allocation2 + $0x118] sm:$0x3] %v3121_v2  ;;  %931 = vmatpush.msrb.mxu2 %v2952_v25  ;;  %1445 = vmatpush.msrb.mxu0 %v2986_v27  ;;  %v2978_v25 = vld [vmem:[%s4125_s1 + $0x238] sm:$0xff]  ;;  %v2943_v27 = vld [vmem:[%s4125_s1 + $0x120] sm:$0xff] }
  0x31   : > { %250 = vst [vmem:[#allocation2 + $0x120] sm:$0xff] %v3121_v2  ;;  %1189 = vmatpush.msrb.mxu3 %v2968_v26  ;;  %673 = vmatpush.msrb.mxu1 %v2936_v28  ;;  %v2928_v26 = vld [vmem:[%s4125_s1 + $0xa8] sm:$0xff]  ;;  %v3481_v28 = vld [vmem:[%s3174_s25 + $0xa0] sm:$0xff] }
  0x32   : > { %251 = vst [vmem:[#allocation2 + $0x128] sm:$0xff] %v3121_v2  ;;  %932 = vmatpush.msrb.mxu2 %v2951_v29  ;;  %1446 = vmatpush.msrb.mxu0 %v2985_v31  ;;  %v2959_v29 = vld [vmem:[%s4125_s1 + $0x1a0] sm:$0xff]  ;;  %v3491_v31 = vld [vmem:[%s3174_s25 + $0x18] sm:$0xff] }
  0x33   : > { %252 = vst [vmem:[#allocation2 + $0x130] sm:$0x3] %v3121_v2  ;;  %1190 = vmatpush.msrb.mxu3 %v2967_v30  ;;  %674 = vmatpush.msrb.mxu1 %v2935_v32  ;;  %v2977_v30 = vld [vmem:[%s4125_s1 + $0x230] sm:$0xff]  ;;  %v210_v32 = vld [vmem:[%s3174_s25 + $0xe0] sm:$0xff] }
  0x34   : > { %253 = vst [vmem:[#allocation2 + $0x138] sm:$0xff] %v3121_v2  ;;  %933 = vmatpush.msrb.mxu2 %v2950_v33  ;;  %1447 = vmatpush.msrb.mxu0 %v2984_v35 }
  0x35   : > { %254 = vst [vmem:[#allocation2 + $0x140] sm:$0xff] %v3121_v2  ;;  %1191 = vmatpush.msrb.mxu3 %v2966_v34  ;;  %675 = vmatpush.msrb.mxu1 %v2934_v36 }
  0x36   : > { %255 = vst [vmem:[#allocation2 + $0x148] sm:$0x3] %v3121_v2  ;;  %432 = vmatmul.f32.gmra.mxu0 %v3121_v2  ;;  %934 = vmatpush.msrb.mxu2 %v2949_v37  ;;  %v3503_v37 = vld [vmem:[%s3174_s25 + $0x68] sm:$0xff] }
  0x37   : > { %256 = vst [vmem:[#allocation2 + $0x150] sm:$0xff] %v3121_v2  ;;  %1192 = vmatpush.msrb.mxu3 %v2965_v38  ;;  %1448 = vmatpush.msrb.mxu0 %v2983_v39  ;;  %v3506_v38 = vld [vmem:[%s3174_s25 + $0xa8] sm:$0xff]  ;;  %v2927_v39 = vld [vmem:[%s4125_s1 + $0xa0] sm:$0xff] }
  0x38   : > { %257 = vst [vmem:[#allocation2 + $0x158] sm:$0xff] %v3121_v2  ;;  %676 = vmatpush.msrb.mxu1 %v2933_v46  ;;  %935 = vmatpush.msrb.mxu2 %v2948_v47  ;;  %v2976_v46 = vld [vmem:[%s4125_s1 + $0x228] sm:$0xff]  ;;  %v2926_v47 = vld [vmem:[%s4125_s1 + $0x98] sm:$0xff] }
  0x39   : > { %258 = vst [vmem:[#allocation2 + $0x160] sm:$0x3] %v3121_v2  ;;  %1193 = vmatpush.msrb.mxu3 %v2964_v48  ;;  %1449 = vmatpush.msrb.mxu0 %v2982_v49  ;;  %v2941_v48 = vld [vmem:[%s4125_s1 + $0x110] sm:$0xff] }
  0x3a   : > { %259 = vst [vmem:[#allocation2 + $0x168] sm:$0xff] %v3121_v2  ;;  %677 = vmatpush.msrb.mxu1 %v2932_v50  ;;  %936 = vmatpush.msrb.mxu2 %v2947_v51  ;;  %v2957_v49 = vld [vmem:[%s4125_s1 + $0x190] sm:$0xff]  ;;  %v2975_v50 = vld [vmem:[%s4125_s1 + $0x220] sm:$0xff] }
  0x3b   : > { %260 = vst [vmem:[#allocation2 + $0x170] sm:$0xff] %v3121_v2  ;;  %1194 = vmatpush.msrb.mxu3 %v2963_v52  ;;  %1450 = vmatpush.msrb.mxu0 %v2981_v53  ;;  %v3538_v51 = vld [vmem:[%s3174_s25 + $0x20] sm:$0xff]  ;;  %v211_v52 = vld [vmem:[%s3174_s25 + $0xe8] sm:$0xff] }
  0x3c   : > { %261 = vst [vmem:[#allocation2 + $0x178] sm:$0x3] %v3121_v2  ;;  %678 = vmatpush.msrb.mxu1 %v2931_v63  ;;  %937 = vmatpush.msrb.mxu2 %v2946_v0  ;;  %v2925_v63 = vld [vmem:[%s4125_s1 + $0x90] sm:$0xff]  ;;  %v2940_v0 = vld [vmem:[%s4125_s1 + $0x108] sm:$0xff] }
  0x3d   : > { %262 = vst [vmem:[#allocation2 + $0x180] sm:$0xff] %v3121_v2  ;;  %1451 = vmatpush.msrb.mxu0 %v2980_v3  ;;  %v2974_v3 = vld [vmem:[%s4125_s1 + $0x218] sm:$0xff] }
  0x3e   : > { %263 = vst [vmem:[#allocation2 + $0x188] sm:$0xff] %v3121_v2  ;;  %679 = vmatpush.msrb.mxu1 %v2930_v5  ;;  %938 = vmatpush.msrb.mxu2 %v2945_v7  ;;  %v2924_v5 = vld [vmem:[%s4125_s1 + $0x88] sm:$0xff]  ;;  %v2939_v7 = vld [vmem:[%s4125_s1 + $0x100] sm:$0xff] }
  0x3f   : > { %264 = vst [vmem:[#allocation2 + $0x190] sm:$0x3] %v3121_v2  ;;  %1452 = vmatpush.msrb.mxu0 %v2979_v10  ;;  %v2973_v10 = vld [vmem:[%s4125_s1 + $0x210] sm:$0xff] }
  0x40   : > { %265 = vst [vmem:[#allocation2 + $0x198] sm:$0xff] %v3121_v2  ;;  %680 = vmatpush.msrb.mxu1 %v2929_v20  ;;  %939 = vmatpush.msrb.mxu2 %v2944_v21 }
  0x41   : > { %266 = vst [vmem:[#allocation2 + $0x1a0] sm:$0xff] %v3121_v2  ;;  %1453 = vmatpush.msrb.mxu0 %v2978_v25  ;;  %v3018_v25 = vld [vmem:[%s4125_s1 + $0x378] sm:$0xff] }
  0x42   : > { %267 = vst [vmem:[#allocation2 + $0x1a8] sm:$0x3] %v3121_v2  ;;  %v2962_v2 = vld [vmem:[%s4125_s1 + $0x1b8] sm:$0xff]  ;;  %681 = vmatpush.msrb.mxu1 %v2928_v26  ;;  %940 = vmatpush.msrb.mxu2 %v2943_v27  ;;  %v2972_v26 = vld [vmem:[%s4125_s1 + $0x208] sm:$0xff] }
  0x43   : > { %283 = vst [vmem:[#allocation2 + $0xc1] sm:$0xff] %v3333_v40  ;;  %1195 = vmatpush.msrb.mxu3 %v2962_v2  ;;  %1454 = vmatpush.msrb.mxu0 %v2977_v30  ;;  %v2956_v2 = vld [vmem:[%s4125_s1 + $0x188] sm:$0xff]  ;;  %v3034_v27 = vld [vmem:[%s4125_s1 + $0x3f8] sm:$0xff]  ;;  %v2971_v30 = vld [vmem:[%s4125_s1 + $0x200] sm:$0xff] }
  0x44   : > { %291 = vst [vmem:[#allocation2 + $0x121] sm:$0xff] %v204_v41  ;;  %v2942_v41 = vld [vmem:[%s4125_s1 + $0x118] sm:$0xff]  ;;  %682 = vmatpush.msrb.mxu1 %v2927_v39 }
  0x45   : > { %276 = vst [vmem:[#allocation2 + $0x69] sm:$0xff] %v3339_v42  ;;  %1196 = vmatpush.msrb.mxu3 %v2961_v9  ;;  %941 = vmatpush.msrb.mxu2 %v2942_v41  ;;  %v2955_v9 = vld [vmem:[%s4125_s1 + $0x180] sm:$0xff] }
  0x46   : > { %284 = vst [vmem:[#allocation2 + $0xc9] sm:$0xff] %v3342_v43  ;;  %1455 = vmatpush.msrb.mxu0 %v2976_v46  ;;  %683 = vmatpush.msrb.mxu1 %v2926_v47 }
  0x47   : > { %292 = vst [vmem:[#allocation2 + $0x129] sm:$0xff] %v205_v44  ;;  %1197 = vmatpush.msrb.mxu3 %v2960_v24  ;;  %v2958_v44 = vld [vmem:[%s4125_s1 + $0x198] sm:$0xff]  ;;  %942 = vmatpush.msrb.mxu2 %v2941_v48 }
  0x48   : > { %277 = vst [vmem:[#allocation2 + $0x79] sm:$0xff] %v3347_v45  ;;  %1456 = vmatpush.msrb.mxu0 %v2975_v50  ;;  %684 = vmatpush.msrb.mxu1 %v2925_v63  ;;  %v3017_v50 = vld [vmem:[%s4125_s1 + $0x370] sm:$0xff] }
  0x49   : > { %285 = vst [vmem:[#allocation2 + $0xd9] sm:$0xff] %v3376_v54  ;;  %1198 = vmatpush.msrb.mxu3 %v2959_v29  ;;  %943 = vmatpush.msrb.mxu2 %v2940_v0  ;;  %v3002_v29 = vld [vmem:[%s4125_s1 + $0x2f8] sm:$0xff] }
  0x4a   : > { %v3390_v59 = vld [vmem:[#allocation2 + $0xc0] sm:$0xff]  ;;  %293 = vst [vmem:[#allocation2 + $0x139] sm:$0xff] %v206_v55  ;;  %1457 = vmatpush.msrb.mxu0 %v2974_v3  ;;  %685 = vmatpush.msrb.mxu1 %v2924_v5  ;;  %v3049_v3 = vld [vmem:[%s4125_s1 + $0x470] sm:$0xff] }
  0x4b   : > { %477 = vmatmul.f32.vlgmr.msra.gmra.mxu2 %v3390_v59  ;;  %v357_v62 = vld [vmem:[#allocation2 + $0x120] sm:$0xff]  ;;  %278 = vst [vmem:[#allocation2 + $0x81] sm:$0xff] %v3381_v56  ;;  %1199 = vmatpush.msrb.mxu3 %v2958_v44  ;;  %v3050_v44 = vld [vmem:[%s4125_s1 + $0x478] sm:$0xff] }
  0x4c   : > { %501 = vmatmul.f32.vlgmr.msra.gmra.mxu3 %v357_v62  ;;  %v3404_v1 = vld [vmem:[#allocation2 + $0x68] sm:$0xff]  ;;  %286 = vst [vmem:[#allocation2 + $0xe1] sm:$0xff] %v3385_v57  ;;  %944 = vmatpush.msrb.mxu2 %v2939_v7 }
  0x4d   : > { %456 = vmatmul.f32.gmra.mxu1 %v3404_v1  ;;  %269 = vst [vmem:[#allocation2 + $0x19] sm:$0xff] %v3388_v58  ;;  %v3435_v12 = vld [vmem:[#allocation2 + $0xc8] sm:$0xff]  ;;  %1200 = vmatpush.msrb.mxu3 %v2957_v49 }
  0x4e   : > { %294 = vst [vmem:[#allocation2 + $0x141] sm:$0xff] %v207_v60  ;;  %v358_v14 = vld [vmem:[#allocation2 + $0x128] sm:$0xff]  ;;  %1458 = vmatpush.msrb.mxu0 %v2973_v10  ;;  %1962 = vmatpush.msra.mxu2 %v3018_v25 }
  0x4f   : > { %279 = vst [vmem:[#allocation2 + $0x91] sm:$0xff] %v3394_v61  ;;  %v3445_v16 = vld [vmem:[#allocation2 + $0x78] sm:$0xff]  ;;  %1201 = vmatpush.msrb.mxu3 %v2956_v2  ;;  %v590_v2 = vld [vmem:[#allocation2 + $0x1] sm:$0xff]  ;;  %v591_v7 = vld [vmem:[#allocation2 + $0x9] sm:$0xff] }
  0x50   : > { %287 = vst [vmem:[#allocation2 + $0xf1] sm:$0xff] %v3416_v4  ;;  %v3494_v33 = vld [vmem:[#allocation2 + $0xd8] sm:$0xff]  ;;  %1459 = vmatpush.msrb.mxu0 %v2972_v26  ;;  %1963 = vmatpush.msra.mxu2 %v3017_v50  ;;  %v848_v5 = vld [vmem:[#allocation2 + $0x2] sm:$0xff] }
  0x51   : > { %270 = vst [vmem:[#allocation2 + $0x21] sm:$0xff] %v3425_v8  ;;  %v359_v34 = vld [vmem:[#allocation2 + $0x138] sm:$0xff]  ;;  %1202 = vmatpush.msrb.mxu3 %v2955_v9  ;;  %v3016_v9 = vld [vmem:[%s4125_s1 + $0x368] sm:$0xff]  ;;  %v3015_v26 = vld [vmem:[%s4125_s1 + $0x360] sm:$0xff] }
  0x52   : > { %295 = vst [vmem:[#allocation2 + $0x151] sm:$0xff] %v208_v11  ;;  %v3497_v35 = vld [vmem:[#allocation2 + $0x80] sm:$0xff]  ;;  %1460 = vmatpush.msrb.mxu0 %v2971_v30  ;;  %1964 = vmatpush.msra.mxu2 %v3016_v9  ;;  %v3032_v10 = vld [vmem:[%s4125_s1 + $0x3e8] sm:$0xff] }
  0x53   : > { %480 = vmatmul.f32.gmra.mxu2 %v3435_v12  ;;  %280 = vst [vmem:[#allocation2 + $0x99] sm:$0xff] %v3439_v13  ;;  %v3541_v53 = vld [vmem:[#allocation2 + $0xe0] sm:$0xff]  ;;  %2220 = vmatpush.msra.mxu3 %v3034_v27 }
  0x54   : > { %504 = vmatmul.f32.gmra.mxu3 %v358_v14  ;;  %v3462_v23 = vld [vmem:[#allocation2 + $0x18] sm:$0xff]  ;;  %288 = vst [vmem:[#allocation2 + $0xf9] sm:$0xff] %v3443_v15  ;;  %v2923_v11 = vld [vmem:[%s4125_s1 + $0x80] sm:$0xff]  ;;  %v3579_v14 = vld [vmem:[%s3174_s25 + $0x28] sm:$0xff]  ;;  %2478 = vmatpush.msra.mxu0 %v3050_v44 }
  0x55   : > { %459 = vmatmul.f32.gmra.mxu1 %v3445_v16  ;;  %435 = vmatmul.f32.gmra.mxu0 %v3462_v23  ;;  %271 = vst [vmem:[#allocation2 + $0x31] sm:$0xff] %v3448_v17  ;;  %v360_v55 = vld [vmem:[#allocation2 + $0x140] sm:$0xff]  ;;  %v3029_v44 = vld [vmem:[%s4125_s1 + $0x3d0] sm:$0xff] }
  0x56   : > { %296 = vst [vmem:[#allocation2 + $0x159] sm:$0xff] %v209_v19  ;;  %v3544_v60 = vld [vmem:[#allocation2 + $0x90] sm:$0xff]  ;;  %686 = vmatpush.msrb.mxu1 %v2923_v11  ;;  %2479 = vmatpush.msra.mxu0 %v3049_v3  ;;  %v3000_v11 = vld [vmem:[%s4125_s1 + $0x2e8] sm:$0xff] }
  0x57   : > { %281 = vst [vmem:[#allocation2 + $0xa9] sm:$0xff] %v3460_v22  ;;  %v3581_v19 = vld [vmem:[#allocation2 + $0xf0] sm:$0xff]  ;;  %1965 = vmatpush.msra.mxu2 %v3015_v26  ;;  %v2995_v26 = vld [vmem:[%s4125_s1 + $0x2c0] sm:$0xff] }
  0x58   : > { %289 = vst [vmem:[#allocation2 + $0x109] sm:$0xff] %v3481_v28  ;;  %v3500_v36 = vld [vmem:[#allocation2 + $0x20] sm:$0xff]  ;;  %1703 = vmatpush.msra.mxu1 %v3002_v29 }
  0x59   : > { %272 = vst [vmem:[#allocation2 + $0x39] sm:$0xff] %v3491_v31  ;;  %v361_v20 = vld [vmem:[#allocation2 + $0x150] sm:$0xff]  ;;  %v850_v25 = vld [vmem:[#allocation2 + $0x1a] sm:$0xff]  ;;  %v851_v27 = vld [vmem:[#allocation2 + $0x22] sm:$0xff] }
  0x5a   : > { %297 = vst [vmem:[#allocation2 + $0x169] sm:$0xff] %v210_v32  ;;  %v3584_v21 = vld [vmem:[#allocation2 + $0x98] sm:$0xff] }
  0x5b   : > { %483 = vmatmul.f32.gmra.mxu2 %v3494_v33  ;;  %282 = vst [vmem:[#allocation2 + $0xb1] sm:$0xff] %v3503_v37  ;;  %v3606_v32 = vld [vmem:[#allocation2 + $0xf8] sm:$0xff] }
  0x5c   : > { %507 = vmatmul.f32.gmra.mxu3 %v359_v34  ;;  %290 = vst [vmem:[#allocation2 + $0x111] sm:$0xff] %v3506_v38  ;;  %v3546_v62 = vld [vmem:[#allocation2 + $0x30] sm:$0xff] }
  0x5d   : > { %462 = vmatmul.f32.gmra.mxu1 %v3497_v35  ;;  %438 = vmatmul.f32.gmra.mxu0 %v3500_v36  ;;  %273 = vst [vmem:[#allocation2 + $0x49] sm:$0xff] %v3538_v51  ;;  %v362_v34 = vld [vmem:[#allocation2 + $0x158] sm:$0xff] }
  0x5e   : > { %298 = vst [vmem:[#allocation2 + $0x171] sm:$0xff] %v211_v52  ;;  %v3608_v39 = vld [vmem:[#allocation2 + $0xa8] sm:$0xff]  ;;  %v3033_v52 = vld [vmem:[%s4125_s1 + $0x3f0] sm:$0xff] }
  0x5f   : > { %274 = vst [vmem:[#allocation2 + $0x51] sm:$0xff] %v3579_v14  ;;  %v3618_v46 = vld [vmem:[#allocation2 + $0x108] sm:$0xff]  ;;  %2221 = vmatpush.msra.mxu3 %v3033_v52 }
  0x60   : > { %v3586_v24 = vld [vmem:[#allocation2 + $0x38] sm:$0xff] }
  0x61   : > { %v363_v47 = vld [vmem:[#allocation2 + $0x168] sm:$0xff]  ;;  %2222 = vmatpush.msra.mxu3 %v3032_v10  ;;  %v852_v29 = vld [vmem:[#allocation2 + $0x32] sm:$0xff]  ;;  %v853_v30 = vld [vmem:[#allocation2 + $0x3a] sm:$0xff] }
  0x62   : > { %v3620_v48 = vld [vmem:[#allocation2 + $0xb0] sm:$0xff] }
  0x63   : > { %486 = vmatmul.f32.gmra.mxu2 %v3541_v53  ;;  %v3636_v63 = vld [vmem:[#allocation2 + $0x110] sm:$0xff] }
  0x64   : > { %510 = vmatmul.f32.gmra.mxu3 %v360_v55  ;;  %v3610_v41 = vld [vmem:[#allocation2 + $0x48] sm:$0xff]  ;;  %v3001_v55 = vld [vmem:[%s4125_s1 + $0x2f0] sm:$0xff] }
  0x65   : > { %465 = vmatmul.f32.gmra.mxu1 %v3544_v60  ;;  %441 = vmatmul.f32.gmra.mxu0 %v3546_v62  ;;  %v364_v0 = vld [vmem:[#allocation2 + $0x170] sm:$0xff] }
  0x66   : > { %v3622_v49 = vld [vmem:[#allocation2 + $0x50] sm:$0xff]  ;;  %1704 = vmatpush.msra.mxu1 %v3001_v55 }
  0x68   : > { %1705 = vmatpush.msra.mxu1 %v3000_v11  ;;  %v858_v11 = vld [vmem:[#allocation2 + $0x7a] sm:$0xff] }
  0x6b   : > { %489 = vmatmul.f32.gmra.mxu2 %v3581_v19 }
  0x6c   : > { %513 = vmatmul.f32.gmra.mxu3 %v361_v20  ;;  %v849_v20 = vld [vmem:[#allocation2 + $0xa] sm:$0xff] }
  0x6d   : > { %468 = vmatmul.f32.gmra.mxu1 %v3584_v21  ;;  %444 = vmatmul.f32.gmra.mxu0 %v3586_v24 }
  0x73   : > { %492 = vmatmul.f32.gmra.mxu2 %v3606_v32 }
  0x74   : > { %516 = vmatmul.f32.gmra.mxu3 %v362_v34  ;;  %v3046_v34 = vld [vmem:[%s4125_s1 + $0x458] sm:$0xff] }
  0x75   : > { %471 = vmatmul.f32.gmra.mxu1 %v3608_v39  ;;  %447 = vmatmul.f32.gmra.mxu0 %v3610_v41 }
  0x7b   : > { %495 = vmatmul.f32.gmra.mxu2 %v3618_v46 }
  0x7c   : > { %519 = vmatmul.f32.gmra.mxu3 %v363_v47  ;;  %v2997_v47 = vld [vmem:[%s4125_s1 + $0x2d0] sm:$0xff] }
  0x7d   : > { %474 = vmatmul.f32.gmra.mxu1 %v3620_v48  ;;  %450 = vmatmul.f32.gmra.mxu0 %v3622_v49 }
  0x83   : > { %498 = vmatmul.f32.gmra.mxu2 %v3636_v63 }
  0x84   : > { %522 = vmatmul.f32.gmra.mxu3 %v364_v0  ;;  %v3012_v0 = vld [vmem:[%s4125_s1 + $0x348] sm:$0xff] }
  0x85   : > { %687 = vmatmul.f32.vlgmr.msrb.gmra.mxu1 %v590_v2  ;;  %1461 = vmatmul.f32.vlgmr.msrb.gmra.mxu0 %v3388_v58  ;;  %v2996_v2 = vld [vmem:[%s4125_s1 + $0x2c8] sm:$0xff] }
  0x8b   : > { %945 = vmatmul.f32.vlgmr.msrb.gmra.mxu2 %v848_v5 }
  0x8c   : > { %1203 = vmatmul.f32.vlgmr.msrb.gmra.mxu3 %v3462_v23  ;;  %v3048_v23 = vld [vmem:[%s4125_s1 + $0x468] sm:$0xff] }
  0x8d   : > { %690 = vmatmul.f32.gmra.mxu1 %v591_v7  ;;  %1464 = vmatmul.f32.gmra.mxu0 %v3425_v8 }
  0x8e   : > { %2480 = vmatpush.msra.mxu0 %v3048_v23 }
  0x93   : > { %948 = vmatmul.f32.gmra.mxu2 %v849_v20 }
  0x94   : > { %1206 = vmatmul.f32.gmra.mxu3 %v3500_v36  ;;  %v3031_v36 = vld [vmem:[%s4125_s1 + $0x3e0] sm:$0xff] }
  0x95   : > { %693 = vmatmul.f32.gmra.mxu1 %v3388_v58  ;;  %1467 = vmatmul.f32.gmra.mxu0 %v3448_v17  ;;  %v2999_v58 = vld [vmem:[%s4125_s1 + $0x2e0] sm:$0xff] }
  0x96   : > { %2223 = vmatpush.msra.mxu3 %v3031_v36  ;;  %1706 = vmatpush.msra.mxu1 %v2999_v58 }
  0x9b   : > { %951 = vmatmul.f32.gmra.mxu2 %v850_v25 }
  0x9c   : > { %1209 = vmatmul.f32.gmra.mxu3 %v3546_v62  ;;  %v3047_v62 = vld [vmem:[%s4125_s1 + $0x460] sm:$0xff] }
  0x9d   : > { %696 = vmatmul.f32.gmra.mxu1 %v3425_v8  ;;  %1470 = vmatmul.f32.gmra.mxu0 %v3491_v31  ;;  %v3014_v8 = vld [vmem:[%s4125_s1 + $0x358] sm:$0xff] }
  0x9e   : > { %2481 = vmatpush.msra.mxu0 %v3047_v62  ;;  %1966 = vmatpush.msra.mxu2 %v3014_v8  ;;  %v860_v8 = vld [vmem:[#allocation2 + $0x92] sm:$0xff] }
  0xa0   : > { %2482 = vmatpush.msra.mxu0 %v3046_v34 }
  0xa3   : > { %954 = vmatmul.f32.gmra.mxu2 %v851_v27 }
  0xa4   : > { %1212 = vmatmul.f32.gmra.mxu3 %v3586_v24  ;;  %v3030_v24 = vld [vmem:[%s4125_s1 + $0x3d8] sm:$0xff] }
  0xa5   : > { %699 = vmatmul.f32.gmra.mxu1 %v3448_v17  ;;  %1473 = vmatmul.f32.gmra.mxu0 %v3538_v51  ;;  %v2998_v17 = vld [vmem:[%s4125_s1 + $0x2d8] sm:$0xff] }
  0xa6   : > { %2224 = vmatpush.msra.mxu3 %v3030_v24  ;;  %1707 = vmatpush.msra.mxu1 %v2998_v17 }
  0xa8   : > { %2225 = vmatpush.msra.mxu3 %v3029_v44  ;;  %1708 = vmatpush.msra.mxu1 %v2997_v47  ;;  %v3710_v50 = vpop.f32.mrf.mxu1 }
  0xaa   : > { %1709 = vmatpush.msra.mxu1 %v2996_v2 }
  0xab   : > { %957 = vmatmul.f32.gmra.mxu2 %v852_v29 }
  0xac   : > { %1215 = vmatmul.f32.gmra.mxu3 %v3610_v41  ;;  %v3013_v41 = vld [vmem:[%s4125_s1 + $0x350] sm:$0xff]  ;;  %1710 = vmatpush.msra.mxu1 %v2995_v26  ;;  %v864_v26 = vld [vmem:[#allocation2 + $0xc2] sm:$0xff] }
  0xad   : > { %702 = vmatmul.f32.gmra.mxu1 %v3491_v31  ;;  %1476 = vmatmul.f32.gmra.mxu0 %v3579_v14  ;;  %v854_v31 = vld [vmem:[#allocation2 + $0x4a] sm:$0xff] }
  0xae   : > { %1967 = vmatpush.msra.mxu2 %v3013_v41  ;;  %v861_v41 = vld [vmem:[#allocation2 + $0x9a] sm:$0xff] }
  0xb0   : > { %1968 = vmatpush.msra.mxu2 %v3012_v0 }
  0xb3   : > { %960 = vmatmul.f32.gmra.mxu2 %v853_v30 }
  0xb4   : > { %1218 = vmatmul.f32.gmra.mxu3 %v3622_v49  ;;  %v855_v49 = vld [vmem:[#allocation2 + $0x52] sm:$0xff] }
  0xb5   : > { %705 = vmatmul.f32.gmra.mxu1 %v3538_v51  ;;  %1479 = vmatmul.f32.gmra.mxu0 %v3181_v6  ;;  %v3705_v51 = vpop.f32.mrf.mxu0 }
  0xbb   : > { %963 = vmatmul.f32.gmra.mxu2 %v854_v31  ;;  %v2994_v31 = vld [vmem:[%s4125_s1 + $0x2b8] sm:$0xff] }
  0xbc   : > { %1221 = vmatmul.f32.gmra.mxu3 %v3239_v18  ;;  %v3045_v18 = vld [vmem:[%s4125_s1 + $0x450] sm:$0xff]  ;;  %1711 = vmatpush.msra.mxu1 %v2994_v31 }
  0xbd   : > { %708 = vmatmul.f32.gmra.mxu1 %v3579_v14  ;;  %1482 = vmatmul.f32.gmra.mxu0 %v3339_v42  ;;  %v856_v14 = vld [vmem:[#allocation2 + $0x62] sm:$0xff]  ;;  %v3718_v52 = vpop.f32.mrf.mxu0 }
  0xbe   : > { %2483 = vmatpush.msra.mxu0 %v3045_v18  ;;  %v862_v18 = vld [vmem:[#allocation2 + $0xaa] sm:$0xff] }
  0xc3   : > { %966 = vmatmul.f32.gmra.mxu2 %v855_v49 }
  0xc4   : > { %1224 = vmatmul.f32.gmra.mxu3 %v3404_v1 }
  0xc5   : > { %711 = vmatmul.f32.gmra.mxu1 %v3181_v6  ;;  %1485 = vmatmul.f32.gmra.mxu0 %v3347_v45  ;;  %v3028_v6 = vld [vmem:[%s4125_s1 + $0x3c8] sm:$0xff] }
  0xc6   : > { %2226 = vmatpush.msra.mxu3 %v3028_v6 }
  0xca   : > { %v3720_v55 = vpop.f32.mrf.mxu1 }
  0xcb   : > { %969 = vmatmul.f32.gmra.mxu2 %v856_v14 }
  0xcc   : > { %1227 = vmatmul.f32.gmra.mxu3 %v3445_v16  ;;  %v857_v16 = vld [vmem:[#allocation2 + $0x6a] sm:$0xff] }
  0xcd   : > { %714 = vmatmul.f32.gmra.mxu1 %v3339_v42  ;;  %1488 = vmatmul.f32.gmra.mxu0 %v3381_v56  ;;  %v3044_v42 = vld [vmem:[%s4125_s1 + $0x448] sm:$0xff] }
  0xce   : > { %v3731_v1 = vpop.f32.mrf.mxu2  ;;  %2484 = vmatpush.msra.mxu0 %v3044_v42  ;;  %v863_v42 = vld [vmem:[#allocation2 + $0xb2] sm:$0xff] }
  0xcf   : > { %v3736_v3 = vpop.f32.mrf.mxu3 }
  0xd2   : > { %v3738_v5 = vpop.f32.mrf.mxu1  ;;  %v3740_v7 = vpop.f32.mrf.mxu0 }
  0xd3   : > { %972 = vmatmul.f32.gmra.mxu2 %v857_v16  ;;  %v2993_v16 = vld [vmem:[%s4125_s1 + $0x2b0] sm:$0xff] }
  0xd4   : > { %1230 = vmatmul.f32.gmra.mxu3 %v3497_v35  ;;  %v3011_v35 = vld [vmem:[%s4125_s1 + $0x340] sm:$0xff]  ;;  %1712 = vmatpush.msra.mxu1 %v2993_v16 }
  0xd5   : > { %717 = vmatmul.f32.gmra.mxu1 %v3347_v45  ;;  %1491 = vmatmul.f32.gmra.mxu0 %v3394_v61  ;;  %v3027_v45 = vld [vmem:[%s4125_s1 + $0x3c0] sm:$0xff] }
  0xd6   : > { %v3748_v9 = vpop.f32.mrf.mxu2  ;;  %1969 = vmatpush.msra.mxu2 %v3011_v35  ;;  %2227 = vmatpush.msra.mxu3 %v3027_v45 }
  0xd7   : > { %v3750_v10 = vpop.f32.mrf.mxu3 }
  0xda   : > { %v3752_v20 = vpop.f32.mrf.mxu1  ;;  %v3754_v23 = vpop.f32.mrf.mxu0 }
  0xdb   : > { %975 = vmatmul.f32.gmra.mxu2 %v858_v11 }
  0xdc   : > { %1233 = vmatmul.f32.gmra.mxu3 %v3544_v60  ;;  %v859_v60 = vld [vmem:[#allocation2 + $0x82] sm:$0xff] }
  0xdd   : > { %720 = vmatmul.f32.gmra.mxu1 %v3381_v56  ;;  %1494 = vmatmul.f32.gmra.mxu0 %v3439_v13  ;;  %v3043_v56 = vld [vmem:[%s4125_s1 + $0x440] sm:$0xff] }
  0xde   : > { %v3765_v25 = vpop.f32.mrf.mxu2  ;;  %2485 = vmatpush.msra.mxu0 %v3043_v56 }
  0xdf   : > { %v3770_v36 = vpop.f32.mrf.mxu3 }
  0xe2   : > { %v3772_v58 = vpop.f32.mrf.mxu1  ;;  %v3774_v27 = vpop.f32.mrf.mxu0 }
  0xe3   : > { %978 = vmatmul.f32.gmra.mxu2 %v859_v60 }
  0xe4   : > { %1236 = vmatmul.f32.gmra.mxu3 %v3584_v21  ;;  %v3010_v21 = vld [vmem:[%s4125_s1 + $0x338] sm:$0xff] }
  0xe5   : > { %723 = vmatmul.f32.gmra.mxu1 %v3394_v61  ;;  %1497 = vmatmul.f32.gmra.mxu0 %v3460_v22  ;;  %v3026_v61 = vld [vmem:[%s4125_s1 + $0x3b8] sm:$0xff] }
  0xe6   : > { %v3782_v62 = vpop.f32.mrf.mxu2  ;;  %1970 = vmatpush.msra.mxu2 %v3010_v21  ;;  %2228 = vmatpush.msra.mxu3 %v3026_v61 }
  0xe7   : > { %v3784_v29 = vpop.f32.mrf.mxu3 }
  0xea   : > { %v3786_v24 = vpop.f32.mrf.mxu1  ;;  %v3788_v17 = vpop.f32.mrf.mxu0 }
  0xeb   : > { %981 = vmatmul.f32.gmra.mxu2 %v860_v8 }
  0xec   : > { %1239 = vmatmul.f32.gmra.mxu3 %v3608_v39 }
  0xed   : > { %726 = vmatmul.f32.gmra.mxu1 %v3439_v13  ;;  %1500 = vmatmul.f32.gmra.mxu0 %v3503_v37  ;;  %v3042_v13 = vld [vmem:[%s4125_s1 + $0x438] sm:$0xff] }
  0xee   : > { %v3799_v30 = vpop.f32.mrf.mxu2  ;;  %2486 = vmatpush.msra.mxu0 %v3042_v13 }
  0xef   : > { %v3801_v34 = vpop.f32.mrf.mxu3 }
  0xf2   : > { %v3806_v39 = vpop.f32.mrf.mxu1  ;;  %v3808_v44 = vpop.f32.mrf.mxu0 }
  0xf3   : > { %984 = vmatmul.f32.gmra.mxu2 %v861_v41  ;;  %v2992_v41 = vld [vmem:[%s4125_s1 + $0x2a8] sm:$0xff] }
  0xf4   : > { %1242 = vmatmul.f32.gmra.mxu3 %v3620_v48  ;;  %v3009_v48 = vld [vmem:[%s4125_s1 + $0x330] sm:$0xff]  ;;  %1713 = vmatpush.msra.mxu1 %v2992_v41 }
  0xf5   : > { %729 = vmatmul.f32.gmra.mxu1 %v3460_v22  ;;  %1503 = vmatmul.f32.gmra.mxu0 %v3333_v40  ;;  %v3025_v22 = vld [vmem:[%s4125_s1 + $0x3b0] sm:$0xff] }
  0xf6   : > { %v3816_v47 = vpop.f32.mrf.mxu2  ;;  %1971 = vmatpush.msra.mxu2 %v3009_v48  ;;  %2229 = vmatpush.msra.mxu3 %v3025_v22 }
  0xf7   : > { %v3818_v49 = vpop.f32.mrf.mxu3 }
  0xfa   : > { %v3820_v14 = vpop.f32.mrf.mxu1  ;;  %v3822_v0 = vpop.f32.mrf.mxu0 }
  0xfb   : > { %987 = vmatmul.f32.gmra.mxu2 %v862_v18 }
  0xfc   : > { %1245 = vmatmul.f32.gmra.mxu3 %v3390_v59 }
  0xfd   : > { %732 = vmatmul.f32.gmra.mxu1 %v3503_v37  ;;  %1506 = vmatmul.f32.gmra.mxu0 %v3342_v43  ;;  %v3041_v37 = vld [vmem:[%s4125_s1 + $0x430] sm:$0xff] }
  0xfe   : > { %v3833_v6 = vpop.f32.mrf.mxu2  ;;  %2487 = vmatpush.msra.mxu0 %v3041_v37  ;;  %v866_v37 = vld [vmem:[#allocation2 + $0xda] sm:$0xff] }
  0xff   : > { %v3835_v2 = vpop.f32.mrf.mxu3 }
 0x102   : > { %v688_v59 = vpop.f32.mrf.mxu1  ;;  %v1462_v11 = vpop.f32.mrf.mxu0 }
 0x103   : > { %990 = vmatmul.f32.gmra.mxu2 %v863_v42  ;;  %v784_v8 = vadd.f32 %v688_v59, %v3705_v51 }
 0x104   : > { %1248 = vmatmul.f32.gmra.mxu3 %v3435_v12  ;;  %v3008_v12 = vld [vmem:[%s4125_s1 + $0x328] sm:$0xff] }
 0x105   : > { %735 = vmatmul.f32.gmra.mxu1 %v3333_v40  ;;  %1509 = vmatmul.f32.gmra.mxu0 %v3376_v54  ;;  %v3024_v40 = vld [vmem:[%s4125_s1 + $0x3a8] sm:$0xff] }
 0x106   : > { %v3846_v35 = vpop.f32.mrf.mxu2  ;;  %1972 = vmatpush.msra.mxu2 %v3008_v12  ;;  %2230 = vmatpush.msra.mxu3 %v3024_v40 }
 0x107   : > { %v3848_v45 = vpop.f32.mrf.mxu3 }
 0x10a   : > { %v691_v60 = vpop.f32.mrf.mxu1  ;;  %v1465_v56 = vpop.f32.mrf.mxu0 }
 0x10b   : > { %993 = vmatmul.f32.gmra.mxu2 %v864_v26  ;;  %v785_v51 = vadd.f32 %v691_v60, %v3718_v52 }
 0x10c   : > { %1251 = vmatmul.f32.gmra.mxu3 %v3494_v33  ;;  %v865_v33 = vld [vmem:[#allocation2 + $0xca] sm:$0xff] }
 0x10d   : > { %738 = vmatmul.f32.gmra.mxu1 %v3342_v43  ;;  %1512 = vmatmul.f32.gmra.mxu0 %v3385_v57  ;;  %v3040_v43 = vld [vmem:[%s4125_s1 + $0x428] sm:$0xff] }
 0x10e   : > { %v946_v21 = vpop.f32.mrf.mxu2  ;;  %2488 = vmatpush.msra.mxu0 %v3040_v43 }
 0x10f   : > { %v1042_v61 = vadd.f32 %v946_v21, %v784_v8  ;;  %v1204_v31 = vpop.f32.mrf.mxu3  ;;  %v2991_v21 = vld [vmem:[%s4125_s1 + $0x2a0] sm:$0xff] }
 0x110   : > { %1714 = vmatpush.msra.mxu1 %v2991_v21 }
 0x111   : > { %v1300_v13 = vadd.f32 %v1204_v31, %v1042_v61 }
 0x112   : > { %v694_v18 = vpop.f32.mrf.mxu1  ;;  %v1468_v48 = vpop.f32.mrf.mxu0 }
 0x113   : > { %v3863_v22 = vadd.f32 %v1462_v11, %v1300_v13  ;;  %996 = vmatmul.f32.gmra.mxu2 %v865_v33  ;;  %v786_v52 = vadd.f32 %v694_v18, %v3740_v7 }
 0x114   : > { %1254 = vmatmul.f32.gmra.mxu3 %v3541_v53  ;;  %v3007_v53 = vld [vmem:[%s4125_s1 + $0x320] sm:$0xff] }
 0x115   : > { %741 = vmatmul.f32.gmra.mxu1 %v3376_v54  ;;  %1515 = vmatmul.f32.gmra.mxu0 %v3416_v4  ;;  %v3023_v54 = vld [vmem:[%s4125_s1 + $0x3a0] sm:$0xff] }
 0x116   : > { %v949_v16 = vpop.f32.mrf.mxu2  ;;  %1973 = vmatpush.msra.mxu2 %v3007_v53  ;;  %2231 = vmatpush.msra.mxu3 %v3023_v54 }
 0x117   : > { %v1043_v42 = vadd.f32 %v949_v16, %v785_v51  ;;  %v1207_v59 = vpop.f32.mrf.mxu3  ;;  %v868_v51 = vld [vmem:[#allocation2 + $0xf2] sm:$0xff] }
 0x119   : > { %v1301_v11 = vadd.f32 %v1207_v59, %v1043_v42 }
 0x11a   : > { %v697_v26 = vpop.f32.mrf.mxu1  ;;  %v1471_v12 = vpop.f32.mrf.mxu0 }
 0x11b   : > { %v3872_v40 = vadd.f32 %v1465_v56, %v1301_v11  ;;  %999 = vmatmul.f32.gmra.mxu2 %v866_v37  ;;  %v787_v7 = vadd.f32 %v697_v26, %v3754_v23 }
 0x11c   : > { %1257 = vmatmul.f32.gmra.mxu3 %v3581_v19  ;;  %v867_v19 = vld [vmem:[#allocation2 + $0xe2] sm:$0xff] }
 0x11d   : > { %744 = vmatmul.f32.gmra.mxu1 %v3385_v57  ;;  %1518 = vmatmul.f32.gmra.mxu0 %v3443_v15  ;;  %v3039_v57 = vld [vmem:[%s4125_s1 + $0x420] sm:$0xff] }
 0x11e   : > { %v952_v60 = vpop.f32.mrf.mxu2  ;;  %2489 = vmatpush.msra.mxu0 %v3039_v57 }
 0x11f   : > { %v1044_v56 = vadd.f32 %v952_v60, %v786_v52  ;;  %v1210_v8 = vpop.f32.mrf.mxu3  ;;  %v1386_v60 = vld [vmem:[#allocation2 + $0x121] sm:$0xff] }
 0x121   : > { %v1302_v61 = vadd.f32 %v1210_v8, %v1044_v56 }
 0x122   : > { %v700_v31 = vpop.f32.mrf.mxu1  ;;  %v1474_v41 = vpop.f32.mrf.mxu0 }
 0x123   : > { %v3887_v33 = vadd.f32 %v1468_v48, %v1302_v61  ;;  %1002 = vmatmul.f32.gmra.mxu2 %v867_v19  ;;  %v788_v23 = vadd.f32 %v700_v31, %v3774_v27  ;;  %v870_v61 = vld [vmem:[#allocation2 + $0x10a] sm:$0xff] }
 0x124   : > { %1260 = vmatmul.f32.gmra.mxu3 %v3606_v32  ;;  %v3006_v32 = vld [vmem:[%s4125_s1 + $0x318] sm:$0xff] }
 0x125   : > { %747 = vmatmul.f32.gmra.mxu1 %v3416_v4  ;;  %1521 = vmatmul.f32.gmra.mxu0 %v3481_v28  ;;  %v3022_v4 = vld [vmem:[%s4125_s1 + $0x398] sm:$0xff] }
 0x126   : > { %v955_v13 = vpop.f32.mrf.mxu2  ;;  %1974 = vmatpush.msra.mxu2 %v3006_v32  ;;  %2232 = vmatpush.msra.mxu3 %v3022_v4  ;;  %v1129_v4 = vld [vmem:[#allocation2 + $0x128] sm:$0xff] }
 0x127   : > { %v1045_v18 = vadd.f32 %v955_v13, %v787_v7  ;;  %v1213_v43 = vpop.f32.mrf.mxu3  ;;  %v1387_v13 = vld [vmem:[#allocation2 + $0x129] sm:$0xff] }
 0x129   : > { %v1303_v48 = vadd.f32 %v1213_v43, %v1045_v18 }
 0x12a   : > { %v703_v16 = vpop.f32.mrf.mxu1  ;;  %v1477_v42 = vpop.f32.mrf.mxu0 }
 0x12b   : > { %v3896_v59 = vadd.f32 %v1471_v12, %v1303_v48  ;;  %1005 = vmatmul.f32.gmra.mxu2 %v868_v51  ;;  %v2990_v12 = vld [vmem:[%s4125_s1 + $0x298] sm:$0xff]  ;;  %v789_v27 = vadd.f32 %v703_v16, %v3788_v17  ;;  %v3005_v17 = vld [vmem:[%s4125_s1 + $0x310] sm:$0xff] }
 0x12c   : > { %1263 = vmatmul.f32.gmra.mxu3 %v3618_v46  ;;  %v869_v46 = vld [vmem:[#allocation2 + $0xfa] sm:$0xff]  ;;  %1715 = vmatpush.msra.mxu1 %v2990_v12  ;;  %v2989_v16 = vld [vmem:[%s4125_s1 + $0x290] sm:$0xff] }
 0x12d   : > { %750 = vmatmul.f32.gmra.mxu1 %v3443_v15  ;;  %1524 = vmatmul.f32.gmra.mxu0 %v3506_v38  ;;  %v3038_v15 = vld [vmem:[%s4125_s1 + $0x418] sm:$0xff] }
 0x12e   : > { %v958_v37 = vpop.f32.mrf.mxu2  ;;  %2490 = vmatpush.msra.mxu0 %v3038_v15  ;;  %1975 = vmatpush.msra.mxu2 %v3005_v17  ;;  %v873_v17 = vld [vmem:[#allocation2 + $0x12a] sm:$0xff] }
 0x12f   : > { %v1046_v11 = vadd.f32 %v958_v37, %v788_v23  ;;  %v1216_v26 = vpop.f32.mrf.mxu3  ;;  %1716 = vmatpush.msra.mxu1 %v2989_v16 }
 0x131   : > { %v1304_v53 = vadd.f32 %v1216_v26, %v1046_v11  ;;  %v1388_v11 = vld [vmem:[#allocation2 + $0x139] sm:$0xff] }
 0x132   : > { %v706_v54 = vpop.f32.mrf.mxu1  ;;  %v1480_v52 = vpop.f32.mrf.mxu0 }
 0x133   : > { %v3911_v56 = vadd.f32 %v1474_v41, %v1304_v53  ;;  %1008 = vmatmul.f32.gmra.mxu2 %v869_v46  ;;  %v1128_v41 = vld [vmem:[#allocation2 + $0x120] sm:$0xff]  ;;  %v790_v18 = vadd.f32 %v706_v54, %v3808_v44 }
 0x134   : > { %1266 = vmatmul.f32.gmra.mxu3 %v3636_v63  ;;  %v872_v54 = vld [vmem:[#allocation2 + $0x122] sm:$0xff] }
 0x135   : > { %753 = vmatmul.f32.gmra.mxu1 %v3481_v28  ;;  %1527 = vmatmul.f32.gmra.mxu0 %v1386_v60  ;;  %v3021_v28 = vld [vmem:[%s4125_s1 + $0x390] sm:$0xff] }
 0x136   : > { %v961_v8 = vpop.f32.mrf.mxu2  ;;  %2233 = vmatpush.msra.mxu3 %v3021_v28 }
 0x137   : > { %v1047_v21 = vadd.f32 %v961_v8, %v789_v27  ;;  %v1219_v19 = vpop.f32.mrf.mxu3  ;;  %v1130_v27 = vld [vmem:[#allocation2 + $0x138] sm:$0xff] }
 0x139   : > { %v1305_v31 = vadd.f32 %v1219_v19, %v1047_v21  ;;  %v1389_v21 = vld [vmem:[#allocation2 + $0x141] sm:$0xff] }
 0x13a   : > { %v709_v57 = vpop.f32.mrf.mxu1  ;;  %v1483_v7 = vpop.f32.mrf.mxu0 }
 0x13b   : > { %v3919_v63 = vadd.f32 %v1477_v42, %v1305_v31  ;;  %1011 = vmatmul.f32.gmra.mxu2 %v870_v61  ;;  %v871_v42 = vld [vmem:[#allocation2 + $0x112] sm:$0xff]  ;;  %v791_v44 = vadd.f32 %v709_v57, %v3822_v0  ;;  %v3004_v61 = vld [vmem:[%s4125_s1 + $0x308] sm:$0xff] }
 0x13c   : > { %1269 = vmatmul.f32.gmra.mxu3 %v1128_v41  ;;  %1976 = vmatpush.msra.mxu2 %v3004_v61  ;;  %v3020_v0 = vld [vmem:[%s4125_s1 + $0x388] sm:$0xff] }
 0x13d   : > { %756 = vmatmul.f32.gmra.mxu1 %v3506_v38  ;;  %1530 = vmatmul.f32.gmra.mxu0 %v1387_v13  ;;  %v3037_v38 = vld [vmem:[%s4125_s1 + $0x410] sm:$0xff] }
 0x13e   : > { %v964_v43 = vpop.f32.mrf.mxu2  ;;  %2491 = vmatpush.msra.mxu0 %v3037_v38  ;;  %2234 = vmatpush.msra.mxu3 %v3020_v0  ;;  %v2987_v0 = vld [vmem:[%s4125_s1 + $0x280] sm:$0xff] }
 0x13f   : > { %v1048_v51 = vadd.f32 %v964_v43, %v790_v18  ;;  %v1222_v48 = vpop.f32.mrf.mxu3  ;;  %v1131_v18 = vld [vmem:[#allocation2 + $0x140] sm:$0xff] }
 0x141   : > { %v1306_v32 = vadd.f32 %v1222_v48, %v1048_v51  ;;  %v1390_v48 = vld [vmem:[#allocation2 + $0x151] sm:$0xff] }
 0x142   : > { %v712_v23 = vpop.f32.mrf.mxu1  ;;  %v1486_v37 = vpop.f32.mrf.mxu0 }
 0x143   : > { %v3932_v26 = vadd.f32 %v1480_v52, %v1306_v32  ;;  %1014 = vmatmul.f32.gmra.mxu2 %v871_v42 }
 0x144   : > { %1272 = vmatmul.f32.gmra.mxu3 %v1129_v4 }
 0x145   : > { %759 = vmatmul.f32.gmra.mxu1 %v1386_v60  ;;  %1533 = vmatmul.f32.gmra.mxu0 %v1388_v11  ;;  %v792_v60 = vadd.f32 %v712_v23, %v3710_v50  ;;  %v3036_v50 = vld [vmem:[%s4125_s1 + $0x408] sm:$0xff] }
 0x146   : > { %v967_v12 = vpop.f32.mrf.mxu2  ;;  %2492 = vmatpush.msra.mxu0 %v3036_v50 }
 0x147   : > { %v1049_v46 = vadd.f32 %v967_v12, %v791_v44  ;;  %v1225_v53 = vpop.f32.mrf.mxu3  ;;  %v1132_v44 = vld [vmem:[#allocation2 + $0x150] sm:$0xff] }
 0x149   : > { %v1307_v15 = vadd.f32 %v1225_v53, %v1049_v46  ;;  %v1391_v53 = vld [vmem:[#allocation2 + $0x159] sm:$0xff] }
 0x14a   : > { %v715_v8 = vpop.f32.mrf.mxu1  ;;  %v1489_v52 = vpop.f32.mrf.mxu0 }
 0x14b   : > { %v3938_v19 = vadd.f32 %v1483_v7, %v1307_v15  ;;  %1017 = vmatmul.f32.gmra.mxu2 %v872_v54  ;;  %v2988_v7 = vld [vmem:[%s4125_s1 + $0x288] sm:$0xff]  ;;  %v793_v42 = vadd.f32 %v715_v8, %v3720_v55  ;;  %v3003_v55 = vld [vmem:[%s4125_s1 + $0x300] sm:$0xff] }
 0x14c   : > { %1275 = vmatmul.f32.gmra.mxu3 %v1130_v27  ;;  %1717 = vmatpush.msra.mxu1 %v2988_v7  ;;  %v3970_v27 = vld [vmem:[%s3174_s25 + $0xf8] sm:$0xff] }
 0x14d   : > { %762 = vmatmul.f32.gmra.mxu1 %v1387_v13  ;;  %1536 = vmatmul.f32.gmra.mxu0 %v1389_v21  ;;  %v3956_v13 = vld [vmem:[%s3174_s25 + $0xf0] sm:$0xff]  ;;  %300 = vst [vmem:[#allocation2 + $0x189] sm:$0xff] %v3970_v27 }
 0x14e   : > { %v970_v31 = vpop.f32.mrf.mxu2  ;;  %299 = vst [vmem:[#allocation2 + $0x181] sm:$0xff] %v3956_v13  ;;  %1977 = vmatpush.msra.mxu2 %v3003_v55  ;;  %1718 = vmatpush.msra.mxu1 %v2987_v0  ;;  %v877_v55 = vld [vmem:[#allocation2 + $0x15a] sm:$0xff] }
 0x14f   : > { %v1050_v41 = vadd.f32 %v970_v31, %v792_v60  ;;  %v1228_v57 = vpop.f32.mrf.mxu3  ;;  %v875_v60 = vld [vmem:[#allocation2 + $0x142] sm:$0xff] }
 0x151   : > { %v1308_v28 = vadd.f32 %v1228_v57, %v1050_v41  ;;  %v1133_v41 = vld [vmem:[#allocation2 + $0x158] sm:$0xff] }
 0x152   : > { %v718_v43 = vpop.f32.mrf.mxu1  ;;  %v1492_v51 = vpop.f32.mrf.mxu0 }
 0x153   : > { %v3950_v16 = vadd.f32 %v1486_v37, %v1308_v28  ;;  %1020 = vmatmul.f32.gmra.mxu2 %v873_v17  ;;  %v874_v37 = vld [vmem:[#allocation2 + $0x13a] sm:$0xff]  ;;  %v794_v15 = vadd.f32 %v718_v43, %v3738_v5 }
 0x154   : > { %1278 = vmatmul.f32.gmra.mxu3 %v1131_v18  ;;  %v3035_v17 = vld [vmem:[%s4125_s1 + $0x400] sm:$0xff] }
 0x155   : > { %765 = vmatmul.f32.gmra.mxu1 %v1388_v11  ;;  %1539 = vmatmul.f32.gmra.mxu0 %v1390_v48  ;;  %v3019_v11 = vld [vmem:[%s4125_s1 + $0x380] sm:$0xff] }
 0x156   : > { %v973_v32 = vpop.f32.mrf.mxu2  ;;  %2235 = vmatpush.msra.mxu3 %v3019_v11  ;;  %2493 = vmatpush.msra.mxu0 %v3035_v17 }
 0x157   : > { %v1051_v4 = vadd.f32 %v973_v32, %v793_v42  ;;  %v1231_v23 = vpop.f32.mrf.mxu3  ;;  %v876_v42 = vld [vmem:[#allocation2 + $0x152] sm:$0xff] }
 0x159   : > { %v1309_v38 = vadd.f32 %v1231_v23, %v1051_v4  ;;  %v1134_v4 = vld [vmem:[#allocation2 + $0x168] sm:$0xff] }
 0x15a   : > { %v721_v12 = vpop.f32.mrf.mxu1  ;;  %v1495_v46 = vpop.f32.mrf.mxu0 }
 0x15b   : > { %v3960_v54 = vadd.f32 %v1489_v52, %v1309_v38  ;;  %1023 = vmatmul.f32.gmra.mxu2 %v874_v37  ;;  %v795_v28 = vadd.f32 %v721_v12, %v3752_v20  ;;  %v1393_v37 = vld [vmem:[#allocation2 + $0x171] sm:$0xff] }
 0x15c   : > { %1281 = vmatmul.f32.gmra.mxu3 %v1132_v44 }
 0x15d   : > { %768 = vmatmul.f32.gmra.mxu1 %v1389_v21  ;;  %1542 = vmatmul.f32.gmra.mxu0 %v1391_v53  ;;  %v1392_v21 = vld [vmem:[#allocation2 + $0x169] sm:$0xff] }
 0x15e   : > { %v976_v8 = vpop.f32.mrf.mxu2 }
 0x15f   : > { %v1052_v52 = vadd.f32 %v976_v8, %v794_v15  ;;  %v1234_v61 = vpop.f32.mrf.mxu3  ;;  %v1135_v15 = vld [vmem:[#allocation2 + $0x170] sm:$0xff] }
 0x161   : > { %v1310_v31 = vadd.f32 %v1234_v61, %v1052_v52 }
 0x162   : > { %v724_v57 = vpop.f32.mrf.mxu1  ;;  %v1498_v5 = vpop.f32.mrf.mxu0 }
 0x163   : > { %v3976_v7 = vadd.f32 %v1492_v51, %v1310_v31  ;;  %1026 = vmatmul.f32.gmra.mxu2 %v875_v60  ;;  %v796_v44 = vadd.f32 %v724_v57, %v3772_v58  ;;  %v878_v60 = vld [vmem:[#allocation2 + $0x16a] sm:$0xff] }
 0x164   : > { %1284 = vmatmul.f32.gmra.mxu3 %v1133_v41  ;;  %v1136_v41 = vld [vmem:[#allocation2 + $0x180] sm:$0xff] }
 0x165   : > { %771 = vmatmul.f32.gmra.mxu1 %v1390_v48  ;;  %1545 = vmatmul.f32.gmra.mxu0 %v1392_v21 }
 0x166   : > { %v979_v18 = vpop.f32.mrf.mxu2 }
 0x167   : > { %v1053_v43 = vadd.f32 %v979_v18, %v795_v28  ;;  %v1237_v50 = vpop.f32.mrf.mxu3  ;;  %v879_v18 = vld [vmem:[#allocation2 + $0x172] sm:$0xff] }
 0x169   : > { %v1311_v32 = vadd.f32 %v1237_v50, %v1053_v43  ;;  %v1137_v50 = vld [vmem:[#allocation2 + $0x188] sm:$0xff] }
 0x16a   : > { %v727_v23 = vpop.f32.mrf.mxu1  ;;  %v1501_v51 = vpop.f32.mrf.mxu0 }
 0x16b   : > { %v3982_v38 = vadd.f32 %v1495_v46, %v1311_v32  ;;  %1029 = vmatmul.f32.gmra.mxu2 %v876_v42  ;;  %v797_v46 = vadd.f32 %v727_v23, %v3786_v24  ;;  %v1622_v32 = vld [vmem:[#allocation2 + $0x1a] sm:$0xff]  ;;  %v2397_v23 = vld [vmem:[#allocation2 + $0x32] sm:$0xff] }
 0x16c   : > { %1287 = vmatmul.f32.gmra.mxu3 %v1134_v4 }
 0x16d   : > { %774 = vmatmul.f32.gmra.mxu1 %v1391_v53  ;;  %1548 = vmatmul.f32.gmra.mxu0 %v1393_v37 }
 0x16e   : > { %v982_v20 = vpop.f32.mrf.mxu2 }
 0x16f   : > { %v1054_v48 = vadd.f32 %v982_v20, %v796_v44  ;;  %v1240_v12 = vpop.f32.mrf.mxu3  ;;  %v1881_v20 = vld [vmem:[#allocation2 + $0x30] sm:$0xff] }
 0x171   : > { %v1312_v11 = vadd.f32 %v1240_v12, %v1054_v48  ;;  %v2139_v12 = vld [vmem:[#allocation2 + $0x31] sm:$0xff] }
 0x172   : > { %v730_v8 = vpop.f32.mrf.mxu1  ;;  %v1504_v52 = vpop.f32.mrf.mxu0 }
 0x173   : > { %v3985_v61 = vadd.f32 %v1498_v5, %v1312_v11  ;;  %1032 = vmatmul.f32.gmra.mxu2 %v877_v55  ;;  %v798_v5 = vadd.f32 %v730_v8, %v3806_v39  ;;  %v1623_v11 = vld [vmem:[#allocation2 + $0x22] sm:$0xff]  ;;  %v2398_v8 = vld [vmem:[#allocation2 + $0x3a] sm:$0xff] }
 0x174   : > { %1290 = vmatmul.f32.gmra.mxu3 %v1135_v15 }
 0x175   : > { %777 = vmatmul.f32.gmra.mxu1 %v1392_v21  ;;  %1551 = vmatmul.f32.gmra.mxu0 %v3956_v13 }
 0x176   : > { %v985_v58 = vpop.f32.mrf.mxu2 }
 0x177   : > { %v1055_v53 = vadd.f32 %v985_v58, %v797_v46  ;;  %v1243_v0 = vpop.f32.mrf.mxu3 }
 0x179   : > { %v1313_v31 = vadd.f32 %v1243_v0, %v1055_v53  ;;  %v1882_v0 = vld [vmem:[#allocation2 + $0x38] sm:$0xff] }
 0x17a   : > { %v733_v57 = vpop.f32.mrf.mxu1  ;;  %v1507_v17 = vpop.f32.mrf.mxu0 }
 0x17b   : > { %v3989_v28 = vadd.f32 %v1501_v51, %v1313_v31  ;;  %1035 = vmatmul.f32.gmra.mxu2 %v878_v60  ;;  %v799_v51 = vadd.f32 %v733_v57, %v3820_v14  ;;  %v2140_v31 = vld [vmem:[#allocation2 + $0x39] sm:$0xff] }
 0x17c   : > { %1293 = vmatmul.f32.gmra.mxu3 %v1136_v41 }
 0x17d   : > { %780 = vmatmul.f32.gmra.mxu1 %v1393_v37  ;;  %1554 = vmatmul.f32.gmra.mxu0 %v3970_v27 }
 0x17e   : > { %v988_v24 = vpop.f32.mrf.mxu2 }
 0x17f   : > { %v1056_v21 = vadd.f32 %v988_v24, %v798_v5  ;;  %v1246_v13 = vpop.f32.mrf.mxu3  ;;  %v2399_v5 = vld [vmem:[#allocation2 + $0x4a] sm:$0xff] }
 0x181   : > { %v1314_v43 = vadd.f32 %v1246_v13, %v1056_v21 }
 0x182   : > { %v736_v42 = vpop.f32.mrf.mxu1  ;;  %v1510_v4 = vpop.f32.mrf.mxu0 }
 0x183   : > { %v3993_v44 = vadd.f32 %v1504_v52, %v1314_v43  ;;  %1038 = vmatmul.f32.gmra.mxu2 %v879_v18  ;;  %v800_v52 = vadd.f32 %v736_v42, %v3731_v1  ;;  %v1883_v18 = vld [vmem:[#allocation2 + $0x48] sm:$0xff] }
 0x184   : > { %1296 = vmatmul.f32.gmra.mxu3 %v1137_v50  ;;  %v2141_v50 = vld [vmem:[#allocation2 + $0x49] sm:$0xff] }
 0x185   : > { %1719 = vmatmul.f32.vlgmr.msra.gmra.mxu1 %v1622_v32  ;;  %2494 = vmatmul.f32.vlgmr.msra.gmra.mxu0 %v2397_v23 }
 0x186   : > { %v991_v39 = vpop.f32.mrf.mxu2 }
 0x187   : > { %v1057_v27 = vadd.f32 %v991_v39, %v799_v51  ;;  %v1249_v37 = vpop.f32.mrf.mxu3  ;;  %v2400_v51 = vld [vmem:[#allocation2 + $0x52] sm:$0xff] }
 0x189   : > { %v1315_v48 = vadd.f32 %v1249_v37, %v1057_v27  ;;  %v1884_v37 = vld [vmem:[#allocation2 + $0x50] sm:$0xff] }
 0x18a   : > { %v739_v55 = vpop.f32.mrf.mxu1  ;;  %v1513_v15 = vpop.f32.mrf.mxu0 }
 0x18b   : > { %v3996_v46 = vadd.f32 %v1507_v17, %v1315_v48  ;;  %1978 = vmatmul.f32.vlgmr.msra.gmra.mxu2 %v1881_v20  ;;  %v801_v17 = vadd.f32 %v739_v55, %v3748_v9  ;;  %v2142_v48 = vld [vmem:[#allocation2 + $0x51] sm:$0xff] }
 0x18c   : > { %2236 = vmatmul.f32.vlgmr.msra.gmra.mxu3 %v2139_v12 }
 0x18d   : > { %1722 = vmatmul.f32.gmra.mxu1 %v1623_v11  ;;  %2497 = vmatmul.f32.gmra.mxu0 %v2398_v8  ;;  %v2401_v11 = vld [vmem:[#allocation2 + $0x62] sm:$0xff] }
 0x18e   : > { %v994_v14 = vpop.f32.mrf.mxu2 }
 0x18f   : > { %v1058_v58 = vadd.f32 %v994_v14, %v800_v52  ;;  %v1252_v53 = vpop.f32.mrf.mxu3 }
 0x191   : > { %v1316_v60 = vadd.f32 %v1252_v53, %v1058_v58  ;;  %v1885_v58 = vld [vmem:[#allocation2 + $0x60] sm:$0xff] }
 0x192   : > { %v742_v41 = vpop.f32.mrf.mxu1  ;;  %v1516_v57 = vpop.f32.mrf.mxu0 }
 0x193   : > { %v3999_v24 = vadd.f32 %v1510_v4, %v1316_v60  ;;  %1981 = vmatmul.f32.gmra.mxu2 %v1882_v0  ;;  %v802_v4 = vadd.f32 %v742_v41, %v3765_v25  ;;  %v2143_v0 = vld [vmem:[#allocation2 + $0x61] sm:$0xff]  ;;  %v2402_v41 = vld [vmem:[#allocation2 + $0x6a] sm:$0xff] }
 0x194   : > { %2239 = vmatmul.f32.gmra.mxu3 %v2140_v31 }
 0x195   : > { %1725 = vmatmul.f32.gmra.mxu1 %v2397_v23  ;;  %2500 = vmatmul.f32.gmra.mxu0 %v2399_v5 }
 0x196   : > { %v997_v1 = vpop.f32.mrf.mxu2 }
 0x197   : > { %v1059_v21 = vadd.f32 %v997_v1, %v801_v17  ;;  %v1255_v13 = vpop.f32.mrf.mxu3 }
 0x199   : > { %v1317_v43 = vadd.f32 %v1255_v13, %v1059_v21  ;;  %v1886_v21 = vld [vmem:[#allocation2 + $0x68] sm:$0xff] }
 0x19a   : > { %v745_v42 = vpop.f32.mrf.mxu1  ;;  %v1519_v32 = vpop.f32.mrf.mxu0 }
 0x19b   : > { %v4002_v39 = vadd.f32 %v1513_v15, %v1317_v43  ;;  %1984 = vmatmul.f32.gmra.mxu2 %v1883_v18  ;;  %v803_v15 = vadd.f32 %v745_v42, %v3782_v62  ;;  %v2144_v18 = vld [vmem:[#allocation2 + $0x69] sm:$0xff]  ;;  %v2403_v42 = vld [vmem:[#allocation2 + $0x7a] sm:$0xff] }
 0x19c   : > { %2242 = vmatmul.f32.gmra.mxu3 %v2141_v50 }
 0x19d   : > { %1728 = vmatmul.f32.gmra.mxu1 %v2398_v8  ;;  %2503 = vmatmul.f32.gmra.mxu0 %v2400_v51 }
 0x19e   : > { %v1000_v9 = vpop.f32.mrf.mxu2 }
 0x19f   : > { %v1060_v23 = vadd.f32 %v1000_v9, %v802_v4  ;;  %v1258_v27 = vpop.f32.mrf.mxu3 }
 0x1a1   : > { %v1318_v20 = vadd.f32 %v1258_v27, %v1060_v23  ;;  %v1887_v23 = vld [vmem:[#allocation2 + $0x78] sm:$0xff] }
 0x1a2   : > { %v748_v12 = vpop.f32.mrf.mxu1  ;;  %v1522_v55 = vpop.f32.mrf.mxu0 }
 0x1a3   : > { %v4005_v52 = vadd.f32 %v1516_v57, %v1318_v20  ;;  %1987 = vmatmul.f32.gmra.mxu2 %v1884_v37  ;;  %v804_v57 = vadd.f32 %v748_v12, %v3799_v30  ;;  %v2145_v37 = vld [vmem:[#allocation2 + $0x79] sm:$0xff]  ;;  %v2404_v12 = vld [vmem:[#allocation2 + $0x82] sm:$0xff] }
 0x1a4   : > { %2245 = vmatmul.f32.gmra.mxu3 %v2142_v48 }
 0x1a5   : > { %1731 = vmatmul.f32.gmra.mxu1 %v2399_v5  ;;  %2506 = vmatmul.f32.gmra.mxu0 %v2401_v11 }
 0x1a6   : > { %v1003_v25 = vpop.f32.mrf.mxu2 }
 0x1a7   : > { %v1061_v8 = vadd.f32 %v1003_v25, %v803_v15  ;;  %v1261_v14 = vpop.f32.mrf.mxu3 }
 0x1a9   : > { %v1319_v53 = vadd.f32 %v1261_v14, %v1061_v8  ;;  %v1888_v8 = vld [vmem:[#allocation2 + $0x80] sm:$0xff] }
 0x1aa   : > { %v751_v60 = vpop.f32.mrf.mxu1  ;;  %v1525_v31 = vpop.f32.mrf.mxu0 }
 0x1ab   : > { %v4008_v17 = vadd.f32 %v1519_v32, %v1319_v53  ;;  %1990 = vmatmul.f32.gmra.mxu2 %v1885_v58  ;;  %v805_v32 = vadd.f32 %v751_v60, %v3816_v47  ;;  %v2146_v58 = vld [vmem:[#allocation2 + $0x81] sm:$0xff]  ;;  %v2405_v60 = vld [vmem:[#allocation2 + $0x92] sm:$0xff] }
 0x1ac   : > { %2248 = vmatmul.f32.gmra.mxu3 %v2143_v0 }
 0x1ad   : > { %1734 = vmatmul.f32.gmra.mxu1 %v2400_v51  ;;  %2509 = vmatmul.f32.gmra.mxu0 %v2402_v41 }
 0x1ae   : > { %v1006_v62 = vpop.f32.mrf.mxu2 }
 0x1af   : > { %v1062_v5 = vadd.f32 %v1006_v62, %v804_v57  ;;  %v1264_v1 = vpop.f32.mrf.mxu3 }
 0x1b1   : > { %v1320_v13 = vadd.f32 %v1264_v1, %v1062_v5  ;;  %v1889_v5 = vld [vmem:[#allocation2 + $0x90] sm:$0xff] }
 0x1b2   : > { %v754_v43 = vpop.f32.mrf.mxu1  ;;  %v1528_v50 = vpop.f32.mrf.mxu0 }
 0x1b3   : > { %v4011_v4 = vadd.f32 %v1522_v55, %v1320_v13  ;;  %1993 = vmatmul.f32.gmra.mxu2 %v1886_v21  ;;  %v806_v55 = vadd.f32 %v754_v43, %v3833_v6  ;;  %v2147_v21 = vld [vmem:[#allocation2 + $0x91] sm:$0xff]  ;;  %v2406_v43 = vld [vmem:[#allocation2 + $0x9a] sm:$0xff] }
 0x1b4   : > { %2251 = vmatmul.f32.gmra.mxu3 %v2144_v18 }
 0x1b5   : > { %1737 = vmatmul.f32.gmra.mxu1 %v2401_v11  ;;  %2512 = vmatmul.f32.gmra.mxu0 %v2403_v42 }
 0x1b6   : > { %v1009_v30 = vpop.f32.mrf.mxu2 }
 0x1b7   : > { %v1063_v51 = vadd.f32 %v1009_v30, %v805_v32  ;;  %v1267_v9 = vpop.f32.mrf.mxu3 }
 0x1b9   : > { %v1321_v27 = vadd.f32 %v1267_v9, %v1063_v51  ;;  %v1890_v51 = vld [vmem:[#allocation2 + $0x98] sm:$0xff] }
 0x1ba   : > { %v757_v20 = vpop.f32.mrf.mxu1  ;;  %v1531_v48 = vpop.f32.mrf.mxu0 }
 0x1bb   : > { %v4014_v15 = vadd.f32 %v1525_v31, %v1321_v27  ;;  %1996 = vmatmul.f32.gmra.mxu2 %v1887_v23  ;;  %v807_v31 = vadd.f32 %v757_v20, %v3846_v35  ;;  %v2148_v23 = vld [vmem:[#allocation2 + $0x99] sm:$0xff]  ;;  %v2407_v20 = vld [vmem:[#allocation2 + $0xaa] sm:$0xff] }
 0x1bc   : > { %2254 = vmatmul.f32.gmra.mxu3 %v2145_v37 }
 0x1bd   : > { %1740 = vmatmul.f32.gmra.mxu1 %v2402_v41  ;;  %2515 = vmatmul.f32.gmra.mxu0 %v2404_v12 }
 0x1be   : > { %v1012_v47 = vpop.f32.mrf.mxu2 }
 0x1bf   : > { %v1064_v11 = vadd.f32 %v1012_v47, %v806_v55  ;;  %v1270_v25 = vpop.f32.mrf.mxu3 }
 0x1c1   : > { %v1322_v14 = vadd.f32 %v1270_v25, %v1064_v11  ;;  %v1891_v11 = vld [vmem:[#allocation2 + $0xa8] sm:$0xff] }
 0x1c2   : > { %v760_v53 = vpop.f32.mrf.mxu1  ;;  %v1534_v0 = vpop.f32.mrf.mxu0 }
 0x1c3   : > { %v4017_v57 = vadd.f32 %v1528_v50, %v1322_v14  ;;  %1999 = vmatmul.f32.gmra.mxu2 %v1888_v8  ;;  %v808_v50 = vadd.f32 %v760_v53, %v3736_v3  ;;  %v2149_v8 = vld [vmem:[#allocation2 + $0xa9] sm:$0xff]  ;;  %v2408_v53 = vld [vmem:[#allocation2 + $0xb2] sm:$0xff] }
 0x1c4   : > { %2257 = vmatmul.f32.gmra.mxu3 %v2146_v58 }
 0x1c5   : > { %1743 = vmatmul.f32.gmra.mxu1 %v2403_v42  ;;  %2518 = vmatmul.f32.gmra.mxu0 %v2405_v60 }
 0x1c6   : > { %v1015_v6 = vpop.f32.mrf.mxu2 }
 0x1c7   : > { %v1065_v41 = vadd.f32 %v1015_v6, %v807_v31  ;;  %v1273_v62 = vpop.f32.mrf.mxu3 }
 0x1c9   : > { %v1323_v1 = vadd.f32 %v1273_v62, %v1065_v41  ;;  %v1892_v41 = vld [vmem:[#allocation2 + $0xb0] sm:$0xff] }
 0x1ca   : > { %v763_v13 = vpop.f32.mrf.mxu1  ;;  %v1537_v18 = vpop.f32.mrf.mxu0 }
 0x1cb   : > { %v4020_v32 = vadd.f32 %v1531_v48, %v1323_v1  ;;  %2002 = vmatmul.f32.gmra.mxu2 %v1889_v5  ;;  %v809_v48 = vadd.f32 %v763_v13, %v3750_v10  ;;  %v2150_v5 = vld [vmem:[#allocation2 + $0xb1] sm:$0xff]  ;;  %v2409_v13 = vld [vmem:[#allocation2 + $0xc2] sm:$0xff] }
 0x1cc   : > { %2260 = vmatmul.f32.gmra.mxu3 %v2147_v21 }
 0x1cd   : > { %1746 = vmatmul.f32.gmra.mxu1 %v2404_v12  ;;  %2521 = vmatmul.f32.gmra.mxu0 %v2406_v43 }
 0x1ce   : > { %v1018_v35 = vpop.f32.mrf.mxu2 }
 0x1cf   : > { %v1066_v42 = vadd.f32 %v1018_v35, %v808_v50  ;;  %v1276_v30 = vpop.f32.mrf.mxu3 }
 0x1d1   : > { %v1324_v9 = vadd.f32 %v1276_v30, %v1066_v42  ;;  %v1893_v42 = vld [vmem:[#allocation2 + $0xc0] sm:$0xff] }
 0x1d2   : > { %v766_v27 = vpop.f32.mrf.mxu1  ;;  %v1540_v37 = vpop.f32.mrf.mxu0 }
 0x1d3   : > { %v4023_v55 = vadd.f32 %v1534_v0, %v1324_v9  ;;  %2005 = vmatmul.f32.gmra.mxu2 %v1890_v51  ;;  %v810_v0 = vadd.f32 %v766_v27, %v3770_v36  ;;  %v2151_v51 = vld [vmem:[#allocation2 + $0xc1] sm:$0xff]  ;;  %v2410_v27 = vld [vmem:[#allocation2 + $0xca] sm:$0xff] }
 0x1d4   : > { %2263 = vmatmul.f32.gmra.mxu3 %v2148_v23 }
 0x1d5   : > { %1749 = vmatmul.f32.gmra.mxu1 %v2405_v60  ;;  %2524 = vmatmul.f32.gmra.mxu0 %v2407_v20 }
 0x1d6   : > { %v1021_v3 = vpop.f32.mrf.mxu2 }
 0x1d7   : > { %v1067_v12 = vadd.f32 %v1021_v3, %v809_v48  ;;  %v1279_v47 = vpop.f32.mrf.mxu3 }
 0x1d9   : > { %v1325_v25 = vadd.f32 %v1279_v47, %v1067_v12  ;;  %v1894_v12 = vld [vmem:[#allocation2 + $0xc8] sm:$0xff] }
 0x1da   : > { %v769_v14 = vpop.f32.mrf.mxu1  ;;  %v1543_v58 = vpop.f32.mrf.mxu0 }
 0x1db   : > { %v4026_v31 = vadd.f32 %v1537_v18, %v1325_v25  ;;  %2008 = vmatmul.f32.gmra.mxu2 %v1891_v11  ;;  %v811_v18 = vadd.f32 %v769_v14, %v3784_v29  ;;  %v2152_v11 = vld [vmem:[#allocation2 + $0xc9] sm:$0xff]  ;;  %v2411_v14 = vld [vmem:[#allocation2 + $0xda] sm:$0xff] }
 0x1dc   : > { %2266 = vmatmul.f32.gmra.mxu3 %v2149_v8 }
 0x1dd   : > { %1752 = vmatmul.f32.gmra.mxu1 %v2406_v43  ;;  %2527 = vmatmul.f32.gmra.mxu0 %v2408_v53 }
 0x1de   : > { %v1024_v10 = vpop.f32.mrf.mxu2 }
 0x1df   : > { %v1068_v60 = vadd.f32 %v1024_v10, %v810_v0  ;;  %v1282_v6 = vpop.f32.mrf.mxu3 }
 0x1e1   : > { %v1326_v62 = vadd.f32 %v1282_v6, %v1068_v60  ;;  %v1895_v60 = vld [vmem:[#allocation2 + $0xd8] sm:$0xff] }
 0x1e2   : > { %v772_v1 = vpop.f32.mrf.mxu1  ;;  %v1546_v21 = vpop.f32.mrf.mxu0 }
 0x1e3   : > { %v4029_v50 = vadd.f32 %v1540_v37, %v1326_v62  ;;  %2011 = vmatmul.f32.gmra.mxu2 %v1892_v41  ;;  %v812_v37 = vadd.f32 %v772_v1, %v3801_v34  ;;  %v2153_v41 = vld [vmem:[#allocation2 + $0xd9] sm:$0xff]  ;;  %v2412_v1 = vld [vmem:[#allocation2 + $0xe2] sm:$0xff] }
 0x1e4   : > { %2269 = vmatmul.f32.gmra.mxu3 %v2150_v5 }
 0x1e5   : > { %1755 = vmatmul.f32.gmra.mxu1 %v2407_v20  ;;  %2530 = vmatmul.f32.gmra.mxu0 %v2409_v13 }
 0x1e6   : > { %v1027_v36 = vpop.f32.mrf.mxu2 }
 0x1e7   : > { %v1069_v43 = vadd.f32 %v1027_v36, %v811_v18  ;;  %v1285_v35 = vpop.f32.mrf.mxu3 }
 0x1e9   : > { %v1327_v30 = vadd.f32 %v1285_v35, %v1069_v43  ;;  %v1896_v43 = vld [vmem:[#allocation2 + $0xe0] sm:$0xff] }
 0x1ea   : > { %v775_v9 = vpop.f32.mrf.mxu1  ;;  %v1549_v23 = vpop.f32.mrf.mxu0 }
 0x1eb   : > { %v4032_v48 = vadd.f32 %v1543_v58, %v1327_v30  ;;  %2014 = vmatmul.f32.gmra.mxu2 %v1893_v42  ;;  %v813_v58 = vadd.f32 %v775_v9, %v3818_v49  ;;  %v2154_v42 = vld [vmem:[#allocation2 + $0xe1] sm:$0xff]  ;;  %v2413_v9 = vld [vmem:[#allocation2 + $0xf2] sm:$0xff] }
 0x1ec   : > { %2272 = vmatmul.f32.gmra.mxu3 %v2151_v51 }
 0x1ed   : > { %1758 = vmatmul.f32.gmra.mxu1 %v2408_v53  ;;  %2533 = vmatmul.f32.gmra.mxu0 %v2410_v27 }
 0x1ee   : > { %v1030_v29 = vpop.f32.mrf.mxu2 }
 0x1ef   : > { %v1070_v20 = vadd.f32 %v1030_v29, %v812_v37  ;;  %v1288_v3 = vpop.f32.mrf.mxu3 }
 0x1f1   : > { %v1328_v47 = vadd.f32 %v1288_v3, %v1070_v20  ;;  %v1897_v20 = vld [vmem:[#allocation2 + $0xf0] sm:$0xff] }
 0x1f2   : > { %v778_v25 = vpop.f32.mrf.mxu1  ;;  %v1552_v8 = vpop.f32.mrf.mxu0 }
 0x1f3   : > { %v4035_v0 = vadd.f32 %v1546_v21, %v1328_v47  ;;  %2017 = vmatmul.f32.gmra.mxu2 %v1894_v12  ;;  %v814_v21 = vadd.f32 %v778_v25, %v3835_v2  ;;  %v2155_v12 = vld [vmem:[#allocation2 + $0xf1] sm:$0xff]  ;;  %v2414_v25 = vld [vmem:[#allocation2 + $0xfa] sm:$0xff] }
 0x1f4   : > { %2275 = vmatmul.f32.gmra.mxu3 %v2152_v11 }
 0x1f5   : > { %1761 = vmatmul.f32.gmra.mxu1 %v2409_v13  ;;  %2536 = vmatmul.f32.gmra.mxu0 %v2411_v14 }
 0x1f6   : > { %v1033_v34 = vpop.f32.mrf.mxu2 }
 0x1f7   : > { %v1071_v53 = vadd.f32 %v1033_v34, %v813_v58  ;;  %v1291_v10 = vpop.f32.mrf.mxu3 }
 0x1f9   : > { %v1329_v6 = vadd.f32 %v1291_v10, %v1071_v53  ;;  %v1898_v53 = vld [vmem:[#allocation2 + $0xf8] sm:$0xff] }
 0x1fa   : > { %v781_v62 = vpop.f32.mrf.mxu1  ;;  %v1555_v5 = vpop.f32.mrf.mxu0 }
 0x1fb   : > { %v4038_v18 = vadd.f32 %v1549_v23, %v1329_v6  ;;  %2020 = vmatmul.f32.gmra.mxu2 %v1895_v60  ;;  %v815_v23 = vadd.f32 %v781_v62, %v3848_v45  ;;  %v2156_v60 = vld [vmem:[#allocation2 + $0xf9] sm:$0xff]  ;;  %v2415_v62 = vld [vmem:[#allocation2 + $0x10a] sm:$0xff] }
 0x1fc   : > { %2278 = vmatmul.f32.gmra.mxu3 %v2153_v41 }
 0x1fd   : > { %1764 = vmatmul.f32.gmra.mxu1 %v2410_v27  ;;  %2539 = vmatmul.f32.gmra.mxu0 %v2412_v1 }
 0x1fe   : > { %v1036_v49 = vpop.f32.mrf.mxu2 }
 0x1ff   : > { %v1072_v13 = vadd.f32 %v1036_v49, %v814_v21  ;;  %v1294_v36 = vpop.f32.mrf.mxu3 }
 0x201   : > { %v1330_v35 = vadd.f32 %v1294_v36, %v1072_v13  ;;  %v1899_v13 = vld [vmem:[#allocation2 + $0x108] sm:$0xff] }
 0x202   : > { %v1720_v30 = vpop.f32.mrf.mxu1  ;;  %v2495_v51 = vpop.f32.mrf.mxu0 }
 0x203   : > { %v4041_v37 = vadd.f32 %v1552_v8, %v1330_v35  ;;  %2023 = vmatmul.f32.gmra.mxu2 %v1896_v43  ;;  %v1816_v8 = vadd.f32 %v1720_v30, %v3863_v22  ;;  %v2157_v43 = vld [vmem:[#allocation2 + $0x109] sm:$0xff]  ;;  %v2416_v30 = vld [vmem:[#allocation2 + $0x112] sm:$0xff] }
 0x204   : > { %2281 = vmatmul.f32.gmra.mxu3 %v2154_v42 }
 0x205   : > { %1767 = vmatmul.f32.gmra.mxu1 %v2411_v14  ;;  %2542 = vmatmul.f32.gmra.mxu0 %v2413_v9 }
 0x206   : > { %v1039_v2 = vpop.f32.mrf.mxu2 }
 0x207   : > { %v1073_v27 = vadd.f32 %v1039_v2, %v815_v23  ;;  %v1297_v29 = vpop.f32.mrf.mxu3 }
 0x209   : > { %v1331_v3 = vadd.f32 %v1297_v29, %v1073_v27 }
 0x20a   : > { %v1723_v47 = vpop.f32.mrf.mxu1  ;;  %v2498_v11 = vpop.f32.mrf.mxu0 }
 0x20b   : > { %v4044_v58 = vadd.f32 %v1555_v5, %v1331_v3  ;;  %2026 = vmatmul.f32.gmra.mxu2 %v1897_v20  ;;  %v1817_v22 = vadd.f32 %v1723_v47, %v3872_v40 }
 0x20c   : > { %2284 = vmatmul.f32.gmra.mxu3 %v2155_v12  ;;  %v1900_v12 = vld [vmem:[#allocation2 + $0x110] sm:$0xff] }
 0x20d   : > { %1770 = vmatmul.f32.gmra.mxu1 %v2412_v1  ;;  %2545 = vmatmul.f32.gmra.mxu0 %v2414_v25 }
 0x20e   : > { %v1979_v45 = vpop.f32.mrf.mxu2 }
 0x20f   : > { %v2075_v14 = vadd.f32 %v1979_v45, %v1816_v8  ;;  %v2237_v34 = vpop.f32.mrf.mxu3  ;;  %v2158_v8 = vld [vmem:[#allocation2 + $0x111] sm:$0xff] }
 0x211   : > { %v2333_v10 = vadd.f32 %v2237_v34, %v2075_v14  ;;  %v2417_v14 = vld [vmem:[#allocation2 + $0x122] sm:$0xff] }
 0x212   : > { %v1726_v6 = vpop.f32.mrf.mxu1  ;;  %v2501_v41 = vpop.f32.mrf.mxu0 }
 0x213   : > { %v2591_v5 = vadd.f32 %v2495_v51, %v2333_v10  ;;  %2029 = vmatmul.f32.gmra.mxu2 %v1898_v53  ;;  %v1818_v51 = vadd.f32 %v1726_v6, %v3887_v33 }
 0x214   : > { %2287 = vmatmul.f32.gmra.mxu3 %v2156_v60 }
 0x215   : > { %2687 = vst [vmem:[%s4052_s4] sm:$0xff] %v2591_v5  ;;  %1773 = vmatmul.f32.gmra.mxu1 %v2413_v9  ;;  %2548 = vmatmul.f32.gmra.mxu0 %v2415_v62  ;;  %v2757_v2 = vmul.f32 %v2591_v5, %v2591_v5 }
 0x216   : > { %v1982_v1 = vpop.f32.mrf.mxu2 }
 0x217   : > { %v2076_v21 = vadd.f32 %v1982_v1, %v1817_v22  ;;  %v2240_v49 = vpop.f32.mrf.mxu3  ;;  %v1901_v22 = vld [vmem:[#allocation2 + $0x120] sm:$0xff] }
 0x219   : > { %v2334_v36 = vadd.f32 %v2240_v49, %v2076_v21  ;;  %v2159_v21 = vld [vmem:[#allocation2 + $0x121] sm:$0xff] }
 0x21a   : > { %v1729_v35 = vpop.f32.mrf.mxu1  ;;  %v2504_v42 = vpop.f32.mrf.mxu0 }
 0x21b   : > { %v2592_v23 = vadd.f32 %v2498_v11, %v2334_v36  ;;  %2032 = vmatmul.f32.gmra.mxu2 %v1899_v13  ;;  %v1819_v33 = vadd.f32 %v1729_v35, %v3896_v59 }
 0x21c   : > { %2290 = vmatmul.f32.gmra.mxu3 %v2157_v43 }
 0x21d   : > { %2688 = vst [vmem:[%s4052_s4 + $0x8] sm:$0xff] %v2592_v23  ;;  %v2719_v40 = vadd.f32 %v2592_v23, %v2591_v5  ;;  %v2758_v9 = vmul.f32 %v2592_v23, %v2592_v23  ;;  %1776 = vmatmul.f32.gmra.mxu1 %v2414_v25  ;;  %2551 = vmatmul.f32.gmra.mxu0 %v2416_v30 }
 0x21e   : > { %v1985_v27 = vpop.f32.mrf.mxu2 }
 0x21f   : > { %v2789_v29 = vadd.f32 %v2758_v9, %v2757_v2  ;;  %v2077_v20 = vadd.f32 %v1985_v27, %v1818_v51  ;;  %v2243_v3 = vpop.f32.mrf.mxu3  ;;  %v2160_v27 = vld [vmem:[#allocation2 + $0x129] sm:$0xff] }
 0x221   : > { %v2335_v47 = vadd.f32 %v2243_v3, %v2077_v20 }
 0x222   : > { %v1732_v45 = vpop.f32.mrf.mxu1  ;;  %v2507_v11 = vpop.f32.mrf.mxu0 }
 0x223   : > { %v2593_v34 = vadd.f32 %v2501_v41, %v2335_v47  ;;  %2035 = vmatmul.f32.gmra.mxu2 %v1900_v12  ;;  %v2418_v41 = vld [vmem:[#allocation2 + $0x12a] sm:$0xff]  ;;  %v1820_v59 = vadd.f32 %v1732_v45, %v3911_v56 }
 0x224   : > { %2293 = vmatmul.f32.gmra.mxu3 %v2158_v8 }
 0x225   : > { %2689 = vst [vmem:[%s4052_s4 + $0x10] sm:$0xff] %v2593_v34  ;;  %v2720_v53 = vadd.f32 %v2719_v40, %v2593_v34  ;;  %v2759_v25 = vmul.f32 %v2593_v34, %v2593_v34  ;;  %1779 = vmatmul.f32.gmra.mxu1 %v2415_v62  ;;  %2554 = vmatmul.f32.gmra.mxu0 %v2417_v14  ;;  %v1902_v40 = vld [vmem:[#allocation2 + $0x128] sm:$0xff] }
 0x226   : > { %v1988_v10 = vpop.f32.mrf.mxu2 }
 0x227   : > { %v2790_v60 = vadd.f32 %v2789_v29, %v2759_v25  ;;  %v2078_v6 = vadd.f32 %v1988_v10, %v1819_v33  ;;  %v2246_v5 = vpop.f32.mrf.mxu3  ;;  %v1903_v33 = vld [vmem:[#allocation2 + $0x138] sm:$0xff] }
 0x228   : > { %v2161_v25 = vld [vmem:[#allocation2 + $0x139] sm:$0xff] }
 0x229   : > { %v2336_v1 = vadd.f32 %v2246_v5, %v2078_v6 }
 0x22a   : > { %v1735_v49 = vpop.f32.mrf.mxu1  ;;  %v2510_v13 = vpop.f32.mrf.mxu0 }
 0x22b   : > { %v2594_v36 = vadd.f32 %v2504_v42, %v2336_v1  ;;  %2038 = vmatmul.f32.gmra.mxu2 %v1901_v22  ;;  %v2419_v42 = vld [vmem:[#allocation2 + $0x13a] sm:$0xff]  ;;  %v1821_v56 = vadd.f32 %v1735_v49, %v3919_v63 }
 0x22c   : > { %2296 = vmatmul.f32.gmra.mxu3 %v2159_v21 }
 0x22d   : > { %2690 = vst [vmem:[%s4052_s4 + $0x18] sm:$0xff] %v2594_v36  ;;  %v2721_v43 = vadd.f32 %v2720_v53, %v2594_v36  ;;  %v2760_v62 = vmul.f32 %v2594_v36, %v2594_v36  ;;  %1782 = vmatmul.f32.gmra.mxu1 %v2416_v30  ;;  %2557 = vmatmul.f32.gmra.mxu0 %v2418_v41  ;;  %v1904_v36 = vld [vmem:[#allocation2 + $0x140] sm:$0xff] }
 0x22e   : > { %v1991_v35 = vpop.f32.mrf.mxu2 }
 0x22f   : > { %v2791_v23 = vadd.f32 %v2790_v60, %v2760_v62  ;;  %v2079_v51 = vadd.f32 %v1991_v35, %v1820_v59  ;;  %v2249_v2 = vpop.f32.mrf.mxu3 }
 0x231   : > { %v2337_v9 = vadd.f32 %v2249_v2, %v2079_v51 }
 0x232   : > { %v1738_v29 = vpop.f32.mrf.mxu1  ;;  %v2513_v20 = vpop.f32.mrf.mxu0 }
 0x233   : > { %v2595_v3 = vadd.f32 %v2507_v11, %v2337_v9  ;;  %2041 = vmatmul.f32.gmra.mxu2 %v1902_v40  ;;  %v2420_v11 = vld [vmem:[#allocation2 + $0x142] sm:$0xff]  ;;  %v1822_v63 = vadd.f32 %v1738_v29, %v3932_v26  ;;  %v1905_v29 = vld [vmem:[#allocation2 + $0x150] sm:$0xff] }
 0x234   : > { %2299 = vmatmul.f32.gmra.mxu3 %v2160_v27 }
 0x235   : > { %2691 = vst [vmem:[%s4052_s4 + $0x20] sm:$0xff] %v2595_v3  ;;  %v2722_v12 = vadd.f32 %v2721_v43, %v2595_v3  ;;  %v2761_v30 = vmul.f32 %v2595_v3, %v2595_v3  ;;  %1785 = vmatmul.f32.gmra.mxu1 %v2417_v14  ;;  %2560 = vmatmul.f32.gmra.mxu0 %v2419_v42  ;;  %v2162_v43 = vld [vmem:[#allocation2 + $0x141] sm:$0xff] }
 0x236   : > { %v1994_v47 = vpop.f32.mrf.mxu2 }
 0x237   : > { %v2792_v8 = vadd.f32 %v2791_v23, %v2761_v30  ;;  %v2080_v45 = vadd.f32 %v1994_v47, %v1821_v56  ;;  %v2252_v34 = vpop.f32.mrf.mxu3  ;;  %v2163_v56 = vld [vmem:[#allocation2 + $0x151] sm:$0xff] }
 0x239   : > { %v2338_v53 = vadd.f32 %v2252_v34, %v2080_v45 }
 0x23a   : > { %v1741_v10 = vpop.f32.mrf.mxu1  ;;  %v2516_v60 = vpop.f32.mrf.mxu0 }
 0x23b   : > { %v2596_v6 = vadd.f32 %v2510_v13, %v2338_v53  ;;  %2044 = vmatmul.f32.gmra.mxu2 %v1903_v33  ;;  %v2421_v13 = vld [vmem:[#allocation2 + $0x152] sm:$0xff]  ;;  %v1823_v26 = vadd.f32 %v1741_v10, %v3938_v19 }
 0x23c   : > { %2302 = vmatmul.f32.gmra.mxu3 %v2161_v25  ;;  %v1906_v25 = vld [vmem:[#allocation2 + $0x158] sm:$0xff] }
 0x23d   : > { %2692 = vst [vmem:[%s4052_s4 + $0x28] sm:$0xff] %v2596_v6  ;;  %v2723_v5 = vadd.f32 %v2722_v12, %v2596_v6  ;;  %v2762_v14 = vmul.f32 %v2596_v6, %v2596_v6  ;;  %1788 = vmatmul.f32.gmra.mxu1 %v2418_v41  ;;  %2563 = vmatmul.f32.gmra.mxu0 %v2420_v11  ;;  %v2164_v6 = vld [vmem:[#allocation2 + $0x159] sm:$0xff] }
 0x23e   : > { %v1997_v22 = vpop.f32.mrf.mxu2 }
 0x23f   : > { %v2793_v1 = vadd.f32 %v2792_v8, %v2762_v14  ;;  %v2081_v21 = vadd.f32 %v1997_v22, %v1822_v63  ;;  %v2255_v49 = vpop.f32.mrf.mxu3 }
 0x241   : > { %v2339_v59 = vadd.f32 %v2255_v49, %v2081_v21 }
 0x242   : > { %v1744_v62 = vpop.f32.mrf.mxu1  ;;  %v2519_v35 = vpop.f32.mrf.mxu0 }
 0x243   : > { %v2597_v23 = vadd.f32 %v2513_v20, %v2339_v59  ;;  %2047 = vmatmul.f32.gmra.mxu2 %v1904_v36  ;;  %v2422_v20 = vld [vmem:[#allocation2 + $0x15a] sm:$0xff]  ;;  %v1824_v19 = vadd.f32 %v1744_v62, %v3950_v16  ;;  %v1907_v59 = vld [vmem:[#allocation2 + $0x168] sm:$0xff] }
 0x244   : > { %2305 = vmatmul.f32.gmra.mxu3 %v2162_v43  ;;  %v2165_v62 = vld [vmem:[#allocation2 + $0x169] sm:$0xff] }
 0x245   : > { %2693 = vst [vmem:[%s4052_s4 + $0x30] sm:$0xff] %v2597_v23  ;;  %v2724_v51 = vadd.f32 %v2723_v5, %v2597_v23  ;;  %v2763_v41 = vmul.f32 %v2597_v23, %v2597_v23  ;;  %1791 = vmatmul.f32.gmra.mxu1 %v2419_v42  ;;  %2566 = vmatmul.f32.gmra.mxu0 %v2421_v13 }
 0x246   : > { %v2000_v2 = vpop.f32.mrf.mxu2 }
 0x247   : > { %v2794_v40 = vadd.f32 %v2793_v1, %v2763_v41  ;;  %v2082_v9 = vadd.f32 %v2000_v2, %v1823_v26  ;;  %v2258_v27 = vpop.f32.mrf.mxu3 }
 0x249   : > { %v2340_v3 = vadd.f32 %v2258_v27, %v2082_v9 }
 0x24a   : > { %v1747_v12 = vpop.f32.mrf.mxu1  ;;  %v2522_v30 = vpop.f32.mrf.mxu0 }
 0x24b   : > { %v2598_v47 = vadd.f32 %v2516_v60, %v2340_v3  ;;  %2050 = vmatmul.f32.gmra.mxu2 %v1905_v29  ;;  %v2423_v60 = vld [vmem:[#allocation2 + $0x16a] sm:$0xff]  ;;  %v1825_v16 = vadd.f32 %v1747_v12, %v3960_v54 }
 0x24c   : > { %2308 = vmatmul.f32.gmra.mxu3 %v2163_v56  ;;  %v1908_v29 = vld [vmem:[#allocation2 + $0x170] sm:$0xff] }
 0x24d   : > { %2694 = vst [vmem:[%s4052_s4 + $0x38] sm:$0xff] %v2598_v47  ;;  %v2725_v8 = vadd.f32 %v2724_v51, %v2598_v47  ;;  %v2764_v42 = vmul.f32 %v2598_v47, %v2598_v47  ;;  %1794 = vmatmul.f32.gmra.mxu1 %v2420_v11  ;;  %2569 = vmatmul.f32.gmra.mxu0 %v2422_v20  ;;  %v2166_v56 = vld [vmem:[#allocation2 + $0x171] sm:$0xff] }
 0x24e   : > { %v2003_v45 = vpop.f32.mrf.mxu2 }
 0x24f   : > { %v2795_v34 = vadd.f32 %v2794_v40, %v2764_v42  ;;  %v2083_v33 = vadd.f32 %v2003_v45, %v1824_v19  ;;  %v2261_v53 = vpop.f32.mrf.mxu3 }
 0x251   : > { %v2341_v10 = vadd.f32 %v2261_v53, %v2083_v33  ;;  %v1909_v53 = vld [vmem:[#allocation2 + $0x180] sm:$0xff] }
 0x252   : > { %v1750_v63 = vpop.f32.mrf.mxu1  ;;  %v2525_v5 = vpop.f32.mrf.mxu0 }
 0x253   : > { %v2599_v14 = vadd.f32 %v2519_v35, %v2341_v10  ;;  %2053 = vmatmul.f32.gmra.mxu2 %v1906_v25  ;;  %v2424_v35 = vld [vmem:[#allocation2 + $0x172] sm:$0xff]  ;;  %v1826_v54 = vadd.f32 %v1750_v63, %v3976_v7  ;;  %v2167_v10 = vld [vmem:[#allocation2 + $0x181] sm:$0xff] }
 0x254   : > { %2311 = vmatmul.f32.gmra.mxu3 %v2164_v6 }
 0x255   : > { %2695 = vst [vmem:[%s4052_s4 + $0x40] sm:$0xff] %v2599_v14  ;;  %v2726_v22 = vadd.f32 %v2725_v8, %v2599_v14  ;;  %v2765_v11 = vmul.f32 %v2599_v14, %v2599_v14  ;;  %1797 = vmatmul.f32.gmra.mxu1 %v2421_v13  ;;  %2572 = vmatmul.f32.gmra.mxu0 %v2423_v60 }
 0x256   : > { %v2006_v1 = vpop.f32.mrf.mxu2 }
 0x257   : > { %v2796_v21 = vadd.f32 %v2795_v34, %v2765_v11  ;;  %v2084_v49 = vadd.f32 %v2006_v1, %v1825_v16  ;;  %v2264_v36 = vpop.f32.mrf.mxu3 }
 0x259   : > { %v2342_v43 = vadd.f32 %v2264_v36, %v2084_v49  ;;  %v1910_v49 = vld [vmem:[#allocation2 + $0x188] sm:$0xff] }
 0x25a   : > { %v1753_v23 = vpop.f32.mrf.mxu1  ;;  %v2528_v26 = vpop.f32.mrf.mxu0 }
 0x25b   : > { %v2600_v51 = vadd.f32 %v2522_v30, %v2342_v43  ;;  %2056 = vmatmul.f32.gmra.mxu2 %v1907_v59  ;;  %v2425_v30 = vld [vmem:[#allocation2 + $0x182] sm:$0xff]  ;;  %v1827_v7 = vadd.f32 %v1753_v23, %v3982_v38  ;;  %v2427_v23 = vld [vmem:[#allocation2 + $0x19a] sm:$0xff] }
 0x25c   : > { %2314 = vmatmul.f32.gmra.mxu3 %v2165_v62  ;;  %v2168_v59 = vld [vmem:[#allocation2 + $0x189] sm:$0xff] }
 0x25d   : > { %2696 = vst [vmem:[%s4052_s4 + $0x48] sm:$0xff] %v2600_v51  ;;  %v2727_v41 = vadd.f32 %v2726_v22, %v2600_v51  ;;  %v2766_v13 = vmul.f32 %v2600_v51, %v2600_v51  ;;  %1800 = vmatmul.f32.gmra.mxu1 %v2422_v20  ;;  %2575 = vmatmul.f32.gmra.mxu0 %v2424_v35 }
 0x25e   : > { %v2009_v2 = vpop.f32.mrf.mxu2 }
 0x25f   : > { %v2797_v40 = vadd.f32 %v2796_v21, %v2766_v13  ;;  %v2085_v9 = vadd.f32 %v2009_v2, %v1826_v54  ;;  %v2267_v27 = vpop.f32.mrf.mxu3 }
 0x261   : > { %v2343_v3 = vadd.f32 %v2267_v27, %v2085_v9  ;;  %v2169_v9 = vld [vmem:[#allocation2 + $0x199] sm:$0xff] }
 0x262   : > { %v1756_v12 = vpop.f32.mrf.mxu1  ;;  %v2531_v47 = vpop.f32.mrf.mxu0 }
 0x263   : > { %v2601_v19 = vadd.f32 %v2525_v5, %v2343_v3  ;;  %2059 = vmatmul.f32.gmra.mxu2 %v1908_v29  ;;  %v2426_v5 = vld [vmem:[#allocation2 + $0x18a] sm:$0xff]  ;;  %v1828_v38 = vadd.f32 %v1756_v12, %v3985_v61  ;;  %v2428_v3 = vld [vmem:[#allocation2 + $0x1a2] sm:$0xff] }
 0x264   : > { %2317 = vmatmul.f32.gmra.mxu3 %v2166_v56  ;;  %v3112_v12 = vld [vmem:[#allocation2] sm:$0xff] }
 0x265   : > { %2697 = vst [vmem:[%s4052_s4 + $0x50] sm:$0xff] %v2601_v19  ;;  %v2728_v8 = vadd.f32 %v2727_v41, %v2601_v19  ;;  %v2767_v20 = vmul.f32 %v2601_v19, %v2601_v19  ;;  %1803 = vmatmul.f32.gmra.mxu1 %v2423_v60  ;;  %2578 = vmatmul.f32.gmra.mxu0 %v2425_v30 }
 0x266   : > { %v2012_v42 = vpop.f32.mrf.mxu2 }
 0x267   : > { %v2798_v45 = vadd.f32 %v2797_v40, %v2767_v20  ;;  %v2086_v34 = vadd.f32 %v2012_v42, %v1827_v7  ;;  %v2270_v33 = vpop.f32.mrf.mxu3 }
 0x269   : > { %v2344_v25 = vadd.f32 %v2270_v33, %v2086_v34 }
 0x26a   : > { %v1759_v6 = vpop.f32.mrf.mxu1  ;;  %v2534_v63 = vpop.f32.mrf.mxu0 }
 0x26b   : > { %v2602_v14 = vadd.f32 %v2528_v26, %v2344_v25  ;;  %2062 = vmatmul.f32.gmra.mxu2 %v1909_v53  ;;  %v1829_v61 = vadd.f32 %v1759_v6, %v3989_v28 }
 0x26c   : > { %2320 = vmatmul.f32.gmra.mxu3 %v2167_v10 }
 0x26d   : > { %2698 = vst [vmem:[%s4052_s4 + $0x58] sm:$0xff] %v2602_v14  ;;  %v2729_v16 = vadd.f32 %v2728_v8, %v2602_v14  ;;  %v2768_v60 = vmul.f32 %v2602_v14, %v2602_v14  ;;  %1806 = vmatmul.f32.gmra.mxu1 %v2424_v35  ;;  %2581 = vmatmul.f32.gmra.mxu0 %v2426_v5 }
 0x26e   : > { %v2015_v22 = vpop.f32.mrf.mxu2 }
 0x26f   : > { %v2799_v11 = vadd.f32 %v2798_v45, %v2768_v60  ;;  %v2087_v1 = vadd.f32 %v2015_v22, %v1828_v38  ;;  %v2273_v21 = vpop.f32.mrf.mxu3  ;;  %v2170_v45 = vld [vmem:[#allocation2 + $0x1a1] sm:$0xff] }
 0x271   : > { %v2345_v36 = vadd.f32 %v2273_v21, %v2087_v1 }
 0x272   : > { %v1762_v43 = vpop.f32.mrf.mxu1  ;;  %v2537_v62 = vpop.f32.mrf.mxu0 }
 0x273   : > { %v2603_v26 = vadd.f32 %v2531_v47, %v2345_v36  ;;  %2065 = vmatmul.f32.gmra.mxu2 %v1910_v49  ;;  %v1830_v28 = vadd.f32 %v1762_v43, %v3993_v44 }
 0x274   : > { %2323 = vmatmul.f32.gmra.mxu3 %v2168_v59 }
 0x275   : > { %2699 = vst [vmem:[%s4052_s4 + $0x60] sm:$0xff] %v2603_v26  ;;  %v2730_v51 = vadd.f32 %v2729_v16, %v2603_v26  ;;  %v2769_v35 = vmul.f32 %v2603_v26, %v2603_v26  ;;  %1809 = vmatmul.f32.gmra.mxu1 %v2425_v30  ;;  %2584 = vmatmul.f32.gmra.mxu0 %v2427_v23 }
 0x276   : > { %v2018_v54 = vpop.f32.mrf.mxu2 }
 0x277   : > { %v2800_v41 = vadd.f32 %v2799_v11, %v2769_v35  ;;  %v2088_v13 = vadd.f32 %v2018_v54, %v1829_v61  ;;  %v2276_v2 = vpop.f32.mrf.mxu3 }
 0x279   : > { %v2346_v40 = vadd.f32 %v2276_v2, %v2088_v13 }
 0x27a   : > { %v1765_v27 = vpop.f32.mrf.mxu1  ;;  %v2540_v29 = vpop.f32.mrf.mxu0 }
 0x27b   : > { %v2604_v56 = vadd.f32 %v2534_v63, %v2346_v40  ;;  %2068 = vmatmul.f32.gmra.mxu2 %v3112_v12  ;;  %v1831_v44 = vadd.f32 %v1765_v27, %v3996_v46 }
 0x27c   : > { %2326 = vmatmul.f32.gmra.mxu3 %v2169_v9 }
 0x27d   : > { %2700 = vst [vmem:[%s4052_s4 + $0x68] sm:$0xff] %v2604_v56  ;;  %v2731_v47 = vadd.f32 %v2730_v51, %v2604_v56  ;;  %v2770_v30 = vmul.f32 %v2604_v56, %v2604_v56  ;;  %1812 = vmatmul.f32.gmra.mxu1 %v2426_v5  ;;  %2587 = vmatmul.f32.gmra.mxu0 %v2428_v3 }
 0x27e   : > { %v2021_v19 = vpop.f32.mrf.mxu2 }
 0x27f   : > { %v2801_v7 = vadd.f32 %v2800_v41, %v2770_v30  ;;  %v2089_v8 = vadd.f32 %v2021_v19, %v1830_v28  ;;  %v2279_v20 = vpop.f32.mrf.mxu3 }
 0x281   : > { %v2347_v42 = vadd.f32 %v2279_v20, %v2089_v8 }
 0x282   : > { %v1768_v34 = vpop.f32.mrf.mxu1  ;;  %v2543_v33 = vpop.f32.mrf.mxu0 }
 0x283   : > { %v2605_v53 = vadd.f32 %v2537_v62, %v2347_v42  ;;  %2071 = vmatmul.f32.gmra.mxu2 %v3112_v12  ;;  %v1832_v11 = vadd.f32 %v1768_v34, %v3999_v24 }
 0x284   : > { %2329 = vmatmul.f32.gmra.mxu3 %v2170_v45 }
 0x285   : > { %2701 = vst [vmem:[%s4052_s4 + $0x70] sm:$0xff] %v2605_v53  ;;  %v2732_v25 = vadd.f32 %v2731_v47, %v2605_v53  ;;  %v2771_v10 = vmul.f32 %v2605_v53, %v2605_v53 }
 0x286   : > { %v2024_v6 = vpop.f32.mrf.mxu2 }
 0x287   : > { %v2802_v63 = vadd.f32 %v2801_v7, %v2771_v10  ;;  %v2090_v5 = vadd.f32 %v2024_v6, %v1831_v44  ;;  %v2282_v14 = vpop.f32.mrf.mxu3 }
 0x289   : > { %v2348_v38 = vadd.f32 %v2282_v14, %v2090_v5 }
 0x28a   : > { %v1771_v16 = vpop.f32.mrf.mxu1  ;;  %v2546_v60 = vpop.f32.mrf.mxu0 }
 0x28b   : > { %v2606_v22 = vadd.f32 %v2540_v29, %v2348_v38  ;;  %v1833_v61 = vadd.f32 %v1771_v16, %v4002_v39 }
 0x28d   : > { %2702 = vst [vmem:[%s4052_s4 + $0x78] sm:$0xff] %v2606_v22  ;;  %v2733_v1 = vadd.f32 %v2732_v25, %v2606_v22  ;;  %v2772_v21 = vmul.f32 %v2606_v22, %v2606_v22 }
 0x28e   : > { %v2027_v49 = vpop.f32.mrf.mxu2 }
 0x28f   : > { %v2803_v36 = vadd.f32 %v2802_v63, %v2772_v21  ;;  %v2091_v46 = vadd.f32 %v2027_v49, %v1832_v11  ;;  %v2285_v59 = vpop.f32.mrf.mxu3 }
 0x291   : > { %v2349_v43 = vadd.f32 %v2285_v59, %v2091_v46 }
 0x292   : > { %v1774_v62 = vpop.f32.mrf.mxu1  ;;  %v2549_v23 = vpop.f32.mrf.mxu0 }
 0x293   : > { %v2607_v26 = vadd.f32 %v2543_v33, %v2349_v43  ;;  %v1834_v29 = vadd.f32 %v1774_v62, %v4005_v52 }
 0x295   : > { %2703 = vst [vmem:[%s4052_s4 + $0x80] sm:$0xff] %v2607_v26  ;;  %v2734_v51 = vadd.f32 %v2733_v1, %v2607_v26  ;;  %v2773_v35 = vmul.f32 %v2607_v26, %v2607_v26 }
 0x296   : > { %v2030_v54 = vpop.f32.mrf.mxu2 }
 0x297   : > { %v2804_v41 = vadd.f32 %v2803_v36, %v2773_v35  ;;  %v2092_v24 = vadd.f32 %v2030_v54, %v1833_v61  ;;  %v2288_v13 = vpop.f32.mrf.mxu3 }
 0x299   : > { %v2350_v2 = vadd.f32 %v2288_v13, %v2092_v24 }
 0x29a   : > { %v1777_v40 = vpop.f32.mrf.mxu1  ;;  %v2552_v9 = vpop.f32.mrf.mxu0 }
 0x29b   : > { %v2608_v27 = vadd.f32 %v2546_v60, %v2350_v2  ;;  %v1835_v20 = vadd.f32 %v1777_v40, %v4008_v17 }
 0x29d   : > { %2704 = vst [vmem:[%s4052_s4 + $0x88] sm:$0xff] %v2608_v27  ;;  %v2735_v3 = vadd.f32 %v2734_v51, %v2608_v27  ;;  %v2774_v56 = vmul.f32 %v2608_v27, %v2608_v27 }
 0x29e   : > { %v2033_v12 = vpop.f32.mrf.mxu2 }
 0x29f   : > { %v2805_v28 = vadd.f32 %v2804_v41, %v2774_v56  ;;  %v2093_v39 = vadd.f32 %v2033_v12, %v1834_v29  ;;  %v2291_v47 = vpop.f32.mrf.mxu3 }
 0x2a1   : > { %v2351_v30 = vadd.f32 %v2291_v47, %v2093_v39 }
 0x2a2   : > { %v1780_v19 = vpop.f32.mrf.mxu1  ;;  %v2555_v7 = vpop.f32.mrf.mxu0 }
 0x2a3   : > { %v2609_v8 = vadd.f32 %v2549_v23, %v2351_v30  ;;  %v1836_v63 = vadd.f32 %v1780_v19, %v4011_v4 }
 0x2a5   : > { %2705 = vst [vmem:[%s4052_s4 + $0x90] sm:$0xff] %v2609_v8  ;;  %v2736_v42 = vadd.f32 %v2735_v3, %v2609_v8  ;;  %v2775_v45 = vmul.f32 %v2609_v8, %v2609_v8 }
 0x2a6   : > { %v2036_v34 = vpop.f32.mrf.mxu2 }
 0x2a7   : > { %v2806_v33 = vadd.f32 %v2805_v28, %v2775_v45  ;;  %v2094_v52 = vadd.f32 %v2036_v34, %v1835_v20  ;;  %v2294_v53 = vpop.f32.mrf.mxu3 }
 0x2a9   : > { %v2352_v44 = vadd.f32 %v2294_v53, %v2094_v52 }
 0x2aa   : > { %v1783_v25 = vpop.f32.mrf.mxu1  ;;  %v2558_v10 = vpop.f32.mrf.mxu0 }
 0x2ab   : > { %v2610_v6 = vadd.f32 %v2552_v9, %v2352_v44  ;;  %v1837_v49 = vadd.f32 %v1783_v25, %v4014_v15 }
 0x2ad   : > { %2706 = vst [vmem:[%s4052_s4 + $0x98] sm:$0xff] %v2610_v6  ;;  %v2737_v5 = vadd.f32 %v2736_v42, %v2610_v6  ;;  %v2776_v14 = vmul.f32 %v2610_v6, %v2610_v6 }
 0x2ae   : > { %v2039_v38 = vpop.f32.mrf.mxu2 }
 0x2af   : > { %v2807_v16 = vadd.f32 %v2806_v33, %v2776_v14  ;;  %v2095_v17 = vadd.f32 %v2039_v38, %v1836_v63  ;;  %v2297_v60 = vpop.f32.mrf.mxu3 }
 0x2b1   : > { %v2353_v22 = vadd.f32 %v2297_v60, %v2095_v17 }
 0x2b2   : > { %v1786_v11 = vpop.f32.mrf.mxu1  ;;  %v2561_v1 = vpop.f32.mrf.mxu0 }
 0x2b3   : > { %v2611_v21 = vadd.f32 %v2555_v7, %v2353_v22  ;;  %v1838_v35 = vadd.f32 %v1786_v11, %v4017_v57 }
 0x2b5   : > { %2707 = vst [vmem:[%s4052_s4 + $0xa0] sm:$0xff] %v2611_v21  ;;  %v2738_v36 = vadd.f32 %v2737_v5, %v2611_v21  ;;  %v2777_v46 = vmul.f32 %v2611_v21, %v2611_v21 }
 0x2b6   : > { %v2042_v59 = vpop.f32.mrf.mxu2 }
 0x2b7   : > { %v2808_v43 = vadd.f32 %v2807_v16, %v2777_v46  ;;  %v2096_v4 = vadd.f32 %v2042_v59, %v1837_v49  ;;  %v2300_v62 = vpop.f32.mrf.mxu3 }
 0x2b9   : > { %v2354_v23 = vadd.f32 %v2300_v62, %v2096_v4 }
 0x2ba   : > { %v1789_v26 = vpop.f32.mrf.mxu1  ;;  %v2564_v61 = vpop.f32.mrf.mxu0 }
 0x2bb   : > { %v2612_v51 = vadd.f32 %v2558_v10, %v2354_v23  ;;  %v1839_v3 = vadd.f32 %v1789_v26, %v4020_v32 }
 0x2bd   : > { %2708 = vst [vmem:[%s4052_s4 + $0xa8] sm:$0xff] %v2612_v51  ;;  %v2739_v54 = vadd.f32 %v2738_v36, %v2612_v51  ;;  %v2778_v41 = vmul.f32 %v2612_v51, %v2612_v51 }
 0x2be   : > { %v2045_v24 = vpop.f32.mrf.mxu2 }
 0x2bf   : > { %v2809_v13 = vadd.f32 %v2808_v43, %v2778_v41  ;;  %v2097_v15 = vadd.f32 %v2045_v24, %v1838_v35  ;;  %v2303_v2 = vpop.f32.mrf.mxu3 }
 0x2c1   : > { %v2355_v40 = vadd.f32 %v2303_v2, %v2097_v15 }
 0x2c2   : > { %v1792_v9 = vpop.f32.mrf.mxu1  ;;  %v2567_v27 = vpop.f32.mrf.mxu0 }
 0x2c3   : > { %v2613_v29 = vadd.f32 %v2561_v1, %v2355_v40  ;;  %v1840_v20 = vadd.f32 %v1792_v9, %v4023_v55 }
 0x2c5   : > { %2709 = vst [vmem:[%s4052_s4 + $0xb0] sm:$0xff] %v2613_v29  ;;  %v2740_v56 = vadd.f32 %v2739_v54, %v2613_v29  ;;  %v2779_v12 = vmul.f32 %v2613_v29, %v2613_v29 }
 0x2c6   : > { %v2048_v28 = vpop.f32.mrf.mxu2 }
 0x2c7   : > { %v2810_v39 = vadd.f32 %v2809_v13, %v2779_v12  ;;  %v2098_v57 = vadd.f32 %v2048_v28, %v1839_v3  ;;  %v2306_v47 = vpop.f32.mrf.mxu3 }
 0x2c9   : > { %v2356_v30 = vadd.f32 %v2306_v47, %v2098_v57 }
 0x2ca   : > { %v1795_v19 = vpop.f32.mrf.mxu1  ;;  %v2570_v8 = vpop.f32.mrf.mxu0 }
 0x2cb   : > { %v2614_v7 = vadd.f32 %v2564_v61, %v2356_v30  ;;  %v1841_v10 = vadd.f32 %v1795_v19, %v4026_v31 }
 0x2cd   : > { %2710 = vst [vmem:[%s4052_s4 + $0xb8] sm:$0xff] %v2614_v7  ;;  %v2741_v42 = vadd.f32 %v2740_v56, %v2614_v7  ;;  %v2780_v45 = vmul.f32 %v2614_v7, %v2614_v7 }
 0x2ce   : > { %v2051_v34 = vpop.f32.mrf.mxu2 }
 0x2cf   : > { %v2811_v33 = vadd.f32 %v2810_v39, %v2780_v45  ;;  %v2099_v32 = vadd.f32 %v2051_v34, %v1840_v20  ;;  %v2309_v52 = vpop.f32.mrf.mxu3 }
 0x2d1   : > { %v2357_v53 = vadd.f32 %v2309_v52, %v2099_v32 }
 0x2d2   : > { %v1798_v44 = vpop.f32.mrf.mxu1  ;;  %v2573_v14 = vpop.f32.mrf.mxu0 }
 0x2d3   : > { %v2615_v25 = vadd.f32 %v2567_v27, %v2357_v53  ;;  %v1842_v11 = vadd.f32 %v1798_v44, %v4029_v50 }
 0x2d5   : > { %2711 = vst [vmem:[%s4052_s4 + $0xc0] sm:$0xff] %v2615_v25  ;;  %v2742_v6 = vadd.f32 %v2741_v42, %v2615_v25  ;;  %v2781_v63 = vmul.f32 %v2615_v25, %v2615_v25 }
 0x2d6   : > { %v2054_v5 = vpop.f32.mrf.mxu2 }
 0x2d7   : > { %v2812_v38 = vadd.f32 %v2811_v33, %v2781_v63  ;;  %v2100_v55 = vadd.f32 %v2054_v5, %v1841_v10  ;;  %v2312_v16 = vpop.f32.mrf.mxu3 }
 0x2d9   : > { %v2358_v17 = vadd.f32 %v2312_v16, %v2100_v55 }
 0x2da   : > { %v1801_v60 = vpop.f32.mrf.mxu1  ;;  %v2576_v59 = vpop.f32.mrf.mxu0 }
 0x2db   : > { %v2616_v22 = vadd.f32 %v2570_v8, %v2358_v17  ;;  %v1843_v23 = vadd.f32 %v1801_v60, %v4032_v48 }
 0x2dd   : > { %2712 = vst [vmem:[%s4052_s4 + $0xc8] sm:$0xff] %v2616_v22  ;;  %v2743_v1 = vadd.f32 %v2742_v6, %v2616_v22  ;;  %v2782_v21 = vmul.f32 %v2616_v22, %v2616_v22 }
 0x2de   : > { %v2057_v49 = vpop.f32.mrf.mxu2 }
 0x2df   : > { %v2813_v36 = vadd.f32 %v2812_v38, %v2782_v21  ;;  %v2101_v31 = vadd.f32 %v2057_v49, %v1842_v11  ;;  %v2315_v46 = vpop.f32.mrf.mxu3 }
 0x2e1   : > { %v2359_v43 = vadd.f32 %v2315_v46, %v2101_v31 }
 0x2e2   : > { %v1804_v62 = vpop.f32.mrf.mxu1  ;;  %v2579_v24 = vpop.f32.mrf.mxu0 }
 0x2e3   : > { %v2617_v4 = vadd.f32 %v2573_v14, %v2359_v43  ;;  %v1844_v15 = vadd.f32 %v1804_v62, %v4035_v0 }
 0x2e5   : > { %2713 = vst [vmem:[%s4052_s4 + $0xd0] sm:$0xff] %v2617_v4  ;;  %v2744_v26 = vadd.f32 %v2743_v1, %v2617_v4  ;;  %v2783_v61 = vmul.f32 %v2617_v4, %v2617_v4 }
 0x2e6   : > { %v2060_v51 = vpop.f32.mrf.mxu2 }
 0x2e7   : > { %v2814_v35 = vadd.f32 %v2813_v36, %v2783_v61  ;;  %v2102_v50 = vadd.f32 %v2060_v51, %v1843_v23  ;;  %v2318_v54 = vpop.f32.mrf.mxu3 }
 0x2e9   : > { %v2360_v41 = vadd.f32 %v2318_v54, %v2102_v50 }
 0x2ea   : > { %v1807_v27 = vpop.f32.mrf.mxu1  ;;  %v2582_v28 = vpop.f32.mrf.mxu0 }
 0x2eb   : > { %v2618_v13 = vadd.f32 %v2576_v59, %v2360_v41  ;;  %v1845_v39 = vadd.f32 %v1807_v27, %v4038_v18 }
 0x2ed   : > { %2714 = vst [vmem:[%s4052_s4 + $0xd8] sm:$0xff] %v2618_v13  ;;  %v2745_v2 = vadd.f32 %v2744_v26, %v2618_v13  ;;  %v2784_v40 = vmul.f32 %v2618_v13, %v2618_v13 }
 0x2ee   : > { %v2063_v9 = vpop.f32.mrf.mxu2 }
 0x2ef   : > { %v2815_v29 = vadd.f32 %v2814_v35, %v2784_v40  ;;  %v2103_v48 = vadd.f32 %v2063_v9, %v1844_v15  ;;  %v2321_v3 = vpop.f32.mrf.mxu3 }
 0x2f1   : > { %v2361_v56 = vadd.f32 %v2321_v3, %v2103_v48 }
 0x2f2   : > { %v1810_v8 = vpop.f32.mrf.mxu1  ;;  %v2585_v52 = vpop.f32.mrf.mxu0 }
 0x2f3   : > { %v2619_v12 = vadd.f32 %v2579_v24, %v2361_v56  ;;  %v1846_v45 = vadd.f32 %v1810_v8, %v4041_v37 }
 0x2f5   : > { %2715 = vst [vmem:[%s4052_s4 + $0xe0] sm:$0xff] %v2619_v12  ;;  %v2746_v57 = vadd.f32 %v2745_v2, %v2619_v12  ;;  %v2785_v47 = vmul.f32 %v2619_v12, %v2619_v12 }
 0x2f6   : > { %v2066_v30 = vpop.f32.mrf.mxu2 }
 0x2f7   : > { %v2816_v19 = vadd.f32 %v2815_v29, %v2785_v47  ;;  %v2104_v0 = vadd.f32 %v2066_v30, %v1845_v39  ;;  %v2324_v7 = vpop.f32.mrf.mxu3 }
 0x2f9   : > { %v2362_v20 = vadd.f32 %v2324_v7, %v2104_v0 }
 0x2fa   : > { %v1813_v10 = vpop.f32.mrf.mxu1  ;;  %v2588_v17 = vpop.f32.mrf.mxu0 }
 0x2fb   : > { %v2620_v42 = vadd.f32 %v2582_v28, %v2362_v20  ;;  %v1847_v63 = vadd.f32 %v1813_v10, %v4044_v58 }
 0x2fd   : > { %2716 = vst [vmem:[%s4052_s4 + $0xe8] sm:$0xff] %v2620_v42  ;;  %v2747_v34 = vadd.f32 %v2746_v57, %v2620_v42  ;;  %v2786_v33 = vmul.f32 %v2620_v42, %v2620_v42 }
 0x2fe   : > { %v2069_v32 = vpop.f32.mrf.mxu2 }
 0x2ff   : > { %v2817_v53 = vadd.f32 %v2816_v19, %v2786_v33  ;;  %v2105_v18 = vadd.f32 %v2069_v32, %v1846_v45  ;;  %v2327_v44 = vpop.f32.mrf.mxu3 }
 0x301   : > { %v2363_v25 = vadd.f32 %v2327_v44, %v2105_v18 }
 0x303   : > { %v2621_v6 = vadd.f32 %v2585_v52, %v2363_v25 }
 0x305   : > { %2717 = vst [vmem:[%s4052_s4 + $0xf0] sm:$0xff] %v2621_v6  ;;  %v2748_v5 = vadd.f32 %v2747_v34, %v2621_v6  ;;  %v2787_v14 = vmul.f32 %v2621_v6, %v2621_v6 }
 0x306   : > { %v2072_v38 = vpop.f32.mrf.mxu2 }
 0x307   : > { %v2818_v37 = vadd.f32 %v2817_v53, %v2787_v14  ;;  %v2106_v55 = vadd.f32 %v2072_v38, %v1847_v63  ;;  %v2330_v16 = vpop.f32.mrf.mxu3 }
 0x309   : > { %v2364_v60 = vadd.f32 %v2330_v16, %v2106_v55 }
 0x30b   : > { %v2622_v22 = vadd.f32 %v2588_v17, %v2364_v60 }
 0x30d   : > { %2718 = vst [vmem:[%s4052_s4 + $0xf8] sm:$0xff] %v2622_v22  ;;  %v2749_v11 = vadd.f32 %v2748_v5, %v2622_v22  ;;  %v2788_v1 = vmul.f32 %v2622_v22, %v2622_v22 }
 0x30f   : > { %v2750_v21 = vrot.slane %v2749_v11, 4  ;;  %v2819_v49 = vadd.f32 %v2818_v37, %v2788_v1 }
 0x311   : > { %v2751_v36 = vadd.f32 %v2750_v21, %v2749_v11  ;;  %v2820_v31 = vrot.slane %v2819_v49, 4 }
 0x313   : > { %v2752_v46 = vrot.slane %v2751_v36, 2  ;;  %v2821_v58 = vadd.f32 %v2820_v31, %v2819_v49 }
 0x315   : > { %v2753_v59 = vadd.f32 %v2752_v46, %v2751_v36  ;;  %v2822_v43 = vrot.slane %v2821_v58, 2 }
 0x317   : > { %v2754_v4 = vrot.slane %v2753_v59, 1  ;;  %v2823_v62 = vadd.f32 %v2822_v43, %v2821_v58 }
 0x319   : > { %v2755_v23 = vadd.f32 %v2754_v4, %v2753_v59  ;;  %v2824_v26 = vrot.slane %v2823_v62, 1 }
 0x31b   : > { %2756 = vst [vmem:[%s181_s7] sm:$0x1] %v2755_v23  ;;  %v2825_v61 = vadd.f32 %v2824_v26, %v2823_v62 }
 0x31d   : > { %2826 = vst [vmem:[%s181_s7 + $0x1] sm:$0x1] %v2825_v61 }
 0x31e PF: > { %s14_s12 = sadd.s32 1, %s3119_s12  }
 0x31f   : > { %p11_p4 = scmp.ge.s32.totalorder %s14_s12, 4  }
 0x321   :  { %13 = sbr.rel (!%p11_p4) target bundleno = 1 (0x1), region = 80 }

// kernel: res_block.4
= control target key start
LH: loop header
LB: loop body
LE: loop exit
PB: predicated region body
PF: predicated region fallthrough
CT: control target
= control target key end

     0   :  { %s3315_s18 = smov 0   ;;  %s4358_s0 = inlined_call_operand.vmem [shape: f32[2,16,16,128], index: 0, kind: input, shape index: {}]   ;;  %s4359_s1 = inlined_call_operand.vmem [shape: f32[1,128], index: 1, kind: input, shape index: {}]   ;;  %s4360_s2 = inlined_call_operand.vmem [shape: f32[1,128], index: 2, kind: input, shape index: {}]   ;;  %s4361_s3 = inlined_call_operand.vmem [shape: f32[3,3,128,128], index: 3, kind: input, shape index: {}]   ;;  %s4362_s4 = inlined_call_operand.vmem [shape: f32[2,16,16,128], index: 4, kind: output, shape index: {0}]   ;;  %s4363_s5 = inlined_call_operand.vmem [shape: f32[2,2,128], index: 5, kind: output, shape index: {1}]  }
   0x1 LB: > { %s3071_s19 = sadd.s32 4294967295, %s3282_s18   ;;  %p3075_p0 = scmp.ge.s32.totalorder %s3282_s18, 1  ;;  %s3282_s18 = sphi %s3315_s18, %s16_s18  }
   0x2   : > { %p190_p1 = scmp.lt.s32.totalorder %s3282_s18, 3 }
   0x4   : > { %p191_p2 = pnand %p3075_p0, %p190_p1 }
   0x5   : > { %p222_p3 = scmp.lt.s32.totalorder (!%p191_p2), %s3071_s19, 1 }
   0x6   : > { %194 = sbr.rel (%p191_p2) target bundleno = 798 (0x31e), region = 36 }
   0xb   : > { %v570_v0 = vld [vmem:[%s4361_s3 + $0x78] sm:$0xff]  ;;  %v569_v1 = vld [vmem:[%s4361_s3 + $0x70] sm:$0xff]  ;;  %v3284_v2 = vmov 0.0   ;;  %v568_v3 = vld [vmem:[%s4361_s3 + $0x68] sm:$0xff]  ;;  %s4365_s19 = smov (!%p222_p3, %s3071_s19), 1 }
   0xc   : > { %3213 = vmatpush.msra.mxu1 %v570_v0  ;;  %3214 = vmatpush.msra.mxu2 %v570_v0  ;;  %384 = vst [vmem:[#allocation2 + $0x60] sm:$0xff] %v3284_v2  ;;  %v567_v4 = vld [vmem:[%s4361_s3 + $0x60] sm:$0xff]  ;;  %s3211_s28 = sshll.u32 %s4365_s19, 8  ;;  %v566_v5 = vld [vmem:[%s4361_s3 + $0x58] sm:$0xff]  ;;  %v565_v10 = vld [vmem:[%s4361_s3 + $0x50] sm:$0xff] }
   0xd   : > { %3215 = vmatpush.msra.mxu3 %v570_v0  ;;  %571 = vmatpush.msra.mxu0 %v570_v0  ;;  %385 = vst [vmem:[#allocation2 + $0x68] sm:$0xff] %v3284_v2  ;;  %s3350_s8 = scalar_lea.vmem %s4358_s0, %s3211_s28  ;;  %v3355_v6 = vld [vmem:[%s4359_s1] ss:$0 sm:$0xff]  ;;  %v564_v12 = vld [vmem:[%s4361_s3 + $0x48] sm:$0xff]  ;;  %v562_v15 = vld [vmem:[%s4361_s3 + $0x38] sm:$0xff]  ;;  %s4286_s25 = scalar_lea.vmem %s4362_s4, %s3211_s28 }
   0xe   : > { %3216 = vmatpush.msra.mxu1 %v569_v1  ;;  %3217 = vmatpush.msra.mxu2 %v569_v1  ;;  %372 = vst [vmem:[#allocation2] sm:$0xff] %v3284_v2  ;;  %v242_v7 = vld [vmem:[%s3350_s8 + $0x30] sm:$0xff]  ;;  %v3362_v8 = vld [vmem:[%s4360_s2] ss:$0 sm:$0xff]  ;;  %v560_v17 = vld [vmem:[%s4361_s3 + $0x28] sm:$0xff]  ;;  %s3080_s28 = sshll.u32 %s4365_s19, 1 }
   0xf   : > { %3218 = vmatpush.msra.mxu3 %v569_v1  ;;  %572 = vmatpush.msra.mxu0 %v569_v1  ;;  %373 = vst [vmem:[#allocation2 + $0x8] sm:$0xff] %v3284_v2  ;;  %v278_v9 = vmul.f32 %v3355_v6, %v242_v7  ;;  %v563_v14 = vld [vmem:[%s4361_s3 + $0x40] sm:$0xff]  ;;  %v561_v16 = vld [vmem:[%s4361_s3 + $0x30] sm:$0xff]  ;;  %v558_v19 = vld [vmem:[%s4361_s3 + $0x18] sm:$0xff]  ;;  %s235_s29 = scalar_lea.vmem %s4363_s5, %s3080_s28 }
  0x10   : > { %3219 = vmatpush.msra.mxu1 %v568_v3  ;;  %3220 = vmatpush.msra.mxu2 %v568_v3  ;;  %375 = vst [vmem:[#allocation2 + $0x18] sm:$0xff] %v3284_v2  ;;  %v559_v18 = vld [vmem:[%s4361_s3 + $0x20] sm:$0xff]  ;;  %v557_v20 = vld [vmem:[%s4361_s3 + $0x10] sm:$0xff]  ;;  %v556_v21 = vld [vmem:[%s4361_s3 + $0x8] sm:$0xff] }
  0x11   : > { %3221 = vmatpush.msra.mxu3 %v568_v3  ;;  %573 = vmatpush.msra.mxu0 %v568_v3  ;;  %376 = vst [vmem:[#allocation2 + $0x20] sm:$0xff] %v3284_v2  ;;  %v3372_v11 = vadd.f32 %v3362_v8, %v278_v9  ;;  %v555_v22 = vld [vmem:[%s4361_s3] sm:$0xff]  ;;  %v3112_v24 = vld [vmem:[%s4361_s3 + $0x178] sm:$0xff]  ;;  %v3111_v27 = vld [vmem:[%s4361_s3 + $0x170] sm:$0xff] }
  0x12   : > { %3222 = vmatpush.msra.mxu1 %v567_v4  ;;  %3223 = vmatpush.msra.mxu2 %v567_v4  ;;  %374 = vst [vmem:[#allocation2 + $0x10] sm:$0x3] %v3284_v2  ;;  %v3128_v25 = vld [vmem:[%s4361_s3 + $0x1f8] sm:$0xff]  ;;  %v3127_v28 = vld [vmem:[%s4361_s3 + $0x1f0] sm:$0xff]  ;;  %v3110_v32 = vld [vmem:[%s4361_s3 + $0x168] sm:$0xff] }
  0x13   : > { %3224 = vmatpush.msra.mxu3 %v567_v4  ;;  %574 = vmatpush.msra.mxu0 %v567_v4  ;;  %377 = vst [vmem:[#allocation2 + $0x28] sm:$0x3] %v3284_v2  ;;  %v346_v13 = vmax.f32 %v3372_v11, 0.0  ;;  %v3096_v26 = vld [vmem:[%s4361_s3 + $0xf8] sm:$0xff]  ;;  %v250_v29 = vld [vmem:[%s3350_s8 + $0x70] sm:$0xff]  ;;  %v3126_v33 = vld [vmem:[%s4361_s3 + $0x1e8] sm:$0xff] }
  0x14   : > { %3225 = vmatpush.msra.mxu1 %v566_v5  ;;  %3226 = vmatpush.msra.mxu2 %v566_v5  ;;  %378 = vst [vmem:[#allocation2 + $0x30] sm:$0xff] %v3284_v2  ;;  %v258_v30 = vld [vmem:[%s3350_s8 + $0xb0] sm:$0xff]  ;;  %v3144_v34 = vld [vmem:[%s4361_s3 + $0x278] sm:$0xff]  ;;  %v3094_v35 = vld [vmem:[%s4361_s3 + $0xe8] sm:$0xff]  ;;  %v286_v40 = vmul.f32 %v3355_v6, %v250_v29 }
  0x15   : > { %3227 = vmatpush.msra.mxu3 %v566_v5  ;;  %575 = vmatpush.msra.mxu0 %v566_v5  ;;  %379 = vst [vmem:[#allocation2 + $0x38] sm:$0xff] %v3284_v2  ;;  %v3095_v31 = vld [vmem:[%s4361_s3 + $0xf0] sm:$0xff]  ;;  %v3109_v36 = vld [vmem:[%s4361_s3 + $0x160] sm:$0xff]  ;;  %v243_v39 = vld [vmem:[%s3350_s8 + $0x38] sm:$0xff]  ;;  %v294_v42 = vmul.f32 %v3355_v6, %v258_v30 }
  0x16   : > { %3228 = vmatpush.msra.mxu1 %v565_v10  ;;  %3229 = vmatpush.msra.mxu2 %v565_v10  ;;  %380 = vst [vmem:[#allocation2 + $0x40] sm:$0x3] %v3284_v2  ;;  %v3125_v37 = vld [vmem:[%s4361_s3 + $0x1e0] sm:$0xff]  ;;  %v3143_v38 = vld [vmem:[%s4361_s3 + $0x270] sm:$0xff]  ;;  %v251_v41 = vld [vmem:[%s3350_s8 + $0x78] sm:$0xff]  ;;  %v279_v44 = vmul.f32 %v3355_v6, %v243_v39  ;;  %v322_v50 = vadd.f32 %v3362_v8, %v286_v40 }
  0x17   : > { %3230 = vmatpush.msra.mxu3 %v565_v10  ;;  %576 = vmatpush.msra.mxu0 %v565_v10  ;;  %381 = vst [vmem:[#allocation2 + $0x48] sm:$0xff] %v3284_v2  ;;  %v259_v43 = vld [vmem:[%s3350_s8 + $0xb8] sm:$0xff]  ;;  %v244_v45 = vld [vmem:[%s3350_s8 + $0x40] sm:$0xff]  ;;  %v287_v46 = vmul.f32 %v3355_v6, %v251_v41  ;;  %v245_v49 = vld [vmem:[%s3350_s8 + $0x48] sm:$0xff]  ;;  %v330_v55 = vadd.f32 %v3362_v8, %v294_v42 }
  0x18   : > { %3231 = vmatpush.msra.mxu1 %v564_v12  ;;  %3232 = vmatpush.msra.mxu2 %v564_v12  ;;  %433 = vst [vmem:[#allocation2 + $0x61] sm:$0xff] %v346_v13  ;;  %v252_v47 = vld [vmem:[%s3350_s8 + $0x80] sm:$0xff]  ;;  %v295_v51 = vmul.f32 %v3355_v6, %v259_v43  ;;  %v3108_v53 = vld [vmem:[%s4361_s3 + $0x158] sm:$0xff]  ;;  %v253_v54 = vld [vmem:[%s3350_s8 + $0x88] sm:$0xff]  ;;  %v280_v56 = vmul.f32 %v3355_v6, %v244_v45  ;;  %v354_v5 = vmax.f32 %v322_v50, 0.0 }
  0x19   : > { %3233 = vmatpush.msra.mxu3 %v564_v12  ;;  %577 = vmatpush.msra.mxu0 %v564_v12  ;;  %382 = vst [vmem:[#allocation2 + $0x50] sm:$0xff] %v3284_v2  ;;  %v260_v48 = vld [vmem:[%s3350_s8 + $0xc0] sm:$0xff]  ;;  %v3124_v57 = vld [vmem:[%s4361_s3 + $0x1d8] sm:$0xff]  ;;  %v3142_v58 = vld [vmem:[%s4361_s3 + $0x268] sm:$0xff]  ;;  %v315_v60 = vadd.f32 %v3362_v8, %v279_v44  ;;  %v288_v61 = vmul.f32 %v3355_v6, %v252_v47  ;;  %v362_v12 = vmax.f32 %v330_v55, 0.0 }
  0x1a   : > { %3234 = vmatpush.msra.mxu1 %v563_v14  ;;  %3235 = vmatpush.msra.mxu2 %v563_v14  ;;  %383 = vst [vmem:[#allocation2 + $0x58] sm:$0x3] %v3284_v2  ;;  %v3093_v52 = vld [vmem:[%s4361_s3 + $0xe0] sm:$0xff]  ;;  %v3092_v59 = vld [vmem:[%s4361_s3 + $0xd8] sm:$0xff]  ;;  %v3107_v62 = vld [vmem:[%s4361_s3 + $0x150] sm:$0xff]  ;;  %v323_v1 = vadd.f32 %v3362_v8, %v287_v46  ;;  %v296_v3 = vmul.f32 %v3355_v6, %v260_v48 }
  0x1b   : > { %3236 = vmatpush.msra.mxu3 %v563_v14  ;;  %578 = vmatpush.msra.mxu0 %v563_v14  ;;  %386 = vst [vmem:[#allocation2 + $0x70] sm:$0x3] %v3284_v2  ;;  %v3123_v63 = vld [vmem:[%s4361_s3 + $0x1d0] sm:$0xff]  ;;  %v3141_v0 = vld [vmem:[%s4361_s3 + $0x260] sm:$0xff]  ;;  %v331_v7 = vadd.f32 %v3362_v8, %v295_v51  ;;  %v281_v9 = vmul.f32 %v3355_v6, %v245_v49  ;;  %v261_v10 = vld [vmem:[%s3350_s8 + $0xc8] sm:$0xff] }
  0x1c   : > { %3237 = vmatpush.msra.mxu1 %v562_v15  ;;  %3238 = vmatpush.msra.mxu2 %v562_v15  ;;  %387 = vst [vmem:[#allocation2 + $0x78] sm:$0xff] %v3284_v2  ;;  %v236_v4 = vld [vmem:[%s3350_s8] sm:$0xff]  ;;  %v316_v14 = vadd.f32 %v3362_v8, %v280_v56  ;;  %v3106_v29 = vld [vmem:[%s4361_s3 + $0x148] sm:$0xff]  ;;  %v262_v30 = vld [vmem:[%s3350_s8 + $0xd0] sm:$0xff] }
  0x1d   : > { %3239 = vmatpush.msra.mxu3 %v562_v15  ;;  %579 = vmatpush.msra.mxu0 %v562_v15  ;;  %388 = vst [vmem:[#allocation2 + $0x80] sm:$0xff] %v3284_v2  ;;  %v289_v15 = vmul.f32 %v3355_v6, %v253_v54  ;;  %v3105_v39 = vld [vmem:[%s4361_s3 + $0x140] sm:$0xff]  ;;  %v3139_v41 = vld [vmem:[%s4361_s3 + $0x250] sm:$0xff]  ;;  %v298_v45 = vmul.f32 %v3355_v6, %v262_v30  ;;  %v247_v46 = vld [vmem:[%s3350_s8 + $0x58] sm:$0xff] }
  0x1e   : > { %3240 = vmatpush.msra.mxu1 %v561_v16  ;;  %3241 = vmatpush.msra.mxu2 %v561_v16  ;;  %389 = vst [vmem:[#allocation2 + $0x88] sm:$0x3] %v3284_v2  ;;  %v3121_v40 = vld [vmem:[%s4361_s3 + $0x1c0] sm:$0xff]  ;;  %v255_v47 = vld [vmem:[%s3350_s8 + $0x98] sm:$0xff]  ;;  %v238_v48 = vld [vmem:[%s3350_s8 + $0x10] sm:$0xff]  ;;  %v283_v51 = vmul.f32 %v3355_v6, %v247_v46 }
  0x1f   : > { %3242 = vmatpush.msra.mxu3 %v561_v16  ;;  %580 = vmatpush.msra.mxu0 %v561_v16  ;;  %390 = vst [vmem:[#allocation2 + $0x90] sm:$0xff] %v3284_v2  ;;  %v3426_v23 = vld [vmem:[#allocation2 + $0x60] sm:$0xff]  ;;  %v246_v16 = vld [vmem:[%s3350_s8 + $0x50] sm:$0xff]  ;;  %v291_v55 = vmul.f32 %v3355_v6, %v255_v47  ;;  %v239_v30 = vld [vmem:[%s3350_s8 + $0x18] sm:$0xff] }
  0x20   : > { %3243 = vmatpush.msra.mxu1 %v560_v17  ;;  %3244 = vmatpush.msra.mxu2 %v560_v17  ;;  %391 = vst [vmem:[#allocation2 + $0x98] sm:$0xff] %v3284_v2  ;;  %v3118_v46 = vld [vmem:[%s4361_s3 + $0x1a8] sm:$0xff]  ;;  %v3136_v47 = vld [vmem:[%s4361_s3 + $0x238] sm:$0xff] }
  0x21   : > { %3245 = vmatpush.msra.mxu3 %v560_v17  ;;  %581 = vmatpush.msra.mxu0 %v560_v17  ;;  %392 = vst [vmem:[#allocation2 + $0xa0] sm:$0x3] %v3284_v2  ;;  %v3549_v17 = vmax.f32 %v315_v60, 0.0 }
  0x22   : > { %3246 = vmatpush.msra.mxu1 %v559_v18  ;;  %3247 = vmatpush.msra.mxu2 %v559_v18  ;;  %393 = vst [vmem:[#allocation2 + $0xa8] sm:$0xff] %v3284_v2 }
  0x23   : > { %3248 = vmatpush.msra.mxu3 %v559_v18  ;;  %394 = vst [vmem:[#allocation2 + $0xb0] sm:$0xff] %v3284_v2  ;;  %582 = vmatpush.msra.mxu0 %v559_v18  ;;  %v324_v18 = vadd.f32 %v3362_v8, %v288_v61  ;;  %v334_v61 = vadd.f32 %v3362_v8, %v298_v45 }
  0x24   : > { %3249 = vmatpush.msra.mxu1 %v558_v19  ;;  %3250 = vmatpush.msra.mxu2 %v558_v19  ;;  %395 = vst [vmem:[#allocation2 + $0xb8] sm:$0x3] %v3284_v2 }
  0x25   : > { %3251 = vmatpush.msra.mxu3 %v558_v19  ;;  %396 = vst [vmem:[#allocation2 + $0xc0] sm:$0xff] %v3284_v2  ;;  %583 = vmatpush.msra.mxu0 %v558_v19  ;;  %v272_v19 = vmul.f32 %v3355_v6, %v236_v4  ;;  %v319_v4 = vadd.f32 %v3362_v8, %v283_v51  ;;  %v3086_v51 = vld [vmem:[%s4361_s3 + $0xa8] sm:$0xff] }
  0x26   : > { %3252 = vmatpush.msra.mxu1 %v557_v20  ;;  %3253 = vmatpush.msra.mxu2 %v557_v20  ;;  %397 = vst [vmem:[#allocation2 + $0xc8] sm:$0xff] %v3284_v2 }
  0x27   : > { %3254 = vmatpush.msra.mxu3 %v557_v20  ;;  %398 = vst [vmem:[#allocation2 + $0xd0] sm:$0x3] %v3284_v2  ;;  %584 = vmatpush.msra.mxu0 %v557_v20  ;;  %v254_v20 = vld [vmem:[%s3350_s8 + $0x90] sm:$0xff] }
  0x28   : > { %3255 = vmatpush.msra.mxu1 %v556_v21  ;;  %3256 = vmatpush.msra.mxu2 %v556_v21  ;;  %399 = vst [vmem:[#allocation2 + $0xd8] sm:$0xff] %v3284_v2 }
  0x29   : > { %3257 = vmatpush.msra.mxu3 %v556_v21  ;;  %400 = vst [vmem:[#allocation2 + $0xe0] sm:$0xff] %v3284_v2  ;;  %585 = vmatpush.msra.mxu0 %v556_v21  ;;  %v355_v21 = vmax.f32 %v323_v1, 0.0  ;;  %v3089_v1 = vld [vmem:[%s4361_s3 + $0xc0] sm:$0xff] }
  0x2a   : > { %3258 = vmatpush.msra.mxu1 %v555_v22  ;;  %3259 = vmatpush.msra.mxu2 %v555_v22  ;;  %401 = vst [vmem:[#allocation2 + $0xe8] sm:$0x3] %v3284_v2 }
  0x2b   : > { %611 = vmatmul.f32.vlgmr.msra.gmra.mxu1 %v3426_v23  ;;  %402 = vst [vmem:[#allocation2 + $0xf0] sm:$0xff] %v3284_v2  ;;  %3260 = vmatpush.msra.mxu3 %v555_v22 }
  0x2c   : > { %403 = vst [vmem:[#allocation2 + $0xf8] sm:$0xff] %v3284_v2  ;;  %1087 = vmatpush.msrb.mxu2 %v3112_v24  ;;  %586 = vmatpush.msra.mxu0 %v555_v22  ;;  %v332_v22 = vadd.f32 %v3362_v8, %v296_v3  ;;  %v297_v24 = vmul.f32 %v3355_v6, %v261_v10  ;;  %v3104_v3 = vld [vmem:[%s4361_s3 + $0x138] sm:$0xff]  ;;  %v3138_v10 = vld [vmem:[%s4361_s3 + $0x248] sm:$0xff] }
  0x2d   : > { %404 = vst [vmem:[#allocation2 + $0x100] sm:$0x3] %v3284_v2  ;;  %1345 = vmatpush.msrb.mxu3 %v3128_v25  ;;  %829 = vmatpush.msrb.mxu1 %v3096_v26  ;;  %v237_v25 = vld [vmem:[%s3350_s8 + $0x8] sm:$0xff]  ;;  %v363_v26 = vmax.f32 %v331_v7, 0.0 }
  0x2e   : > { %405 = vst [vmem:[#allocation2 + $0x108] sm:$0xff] %v3284_v2  ;;  %1088 = vmatpush.msrb.mxu2 %v3111_v27  ;;  %587 = vmatmul.f32.vlgmr.msra.gmra.mxu0 %v3284_v2  ;;  %v317_v27 = vadd.f32 %v3362_v8, %v281_v9  ;;  %v273_v42 = vmul.f32 %v3355_v6, %v237_v25  ;;  %v364_v43 = vmax.f32 %v332_v22, 0.0  ;;  %v3120_v9 = vld [vmem:[%s4361_s3 + $0x1b8] sm:$0xff]  ;;  %v248_v25 = vld [vmem:[%s3350_s8 + $0x60] sm:$0xff] }
  0x2f   : > { %406 = vst [vmem:[#allocation2 + $0x110] sm:$0xff] %v3284_v2  ;;  %1346 = vmatpush.msrb.mxu3 %v3127_v28  ;;  %830 = vmatpush.msrb.mxu1 %v3095_v31  ;;  %v3091_v28 = vld [vmem:[%s4361_s3 + $0xd0] sm:$0xff]  ;;  %v3567_v31 = vmax.f32 %v316_v14, 0.0  ;;  %v333_v44 = vadd.f32 %v3362_v8, %v297_v24  ;;  %v3654_v24 = vmax.f32 %v319_v4, 0.0 }
  0x30   : > { %407 = vst [vmem:[#allocation2 + $0x118] sm:$0x3] %v3284_v2  ;;  %1089 = vmatpush.msrb.mxu2 %v3110_v32  ;;  %1603 = vmatpush.msrb.mxu0 %v3144_v34  ;;  %v325_v32 = vadd.f32 %v3362_v8, %v289_v15  ;;  %v3140_v34 = vld [vmem:[%s4361_s3 + $0x258] sm:$0xff]  ;;  %v3597_v49 = vmax.f32 %v317_v27, 0.0 }
  0x31   : > { %408 = vst [vmem:[#allocation2 + $0x120] sm:$0xff] %v3284_v2  ;;  %1347 = vmatpush.msrb.mxu3 %v3126_v33  ;;  %831 = vmatpush.msrb.mxu1 %v3094_v35  ;;  %v3122_v33 = vld [vmem:[%s4361_s3 + $0x1c8] sm:$0xff]  ;;  %v365_v60 = vmax.f32 %v333_v44, 0.0  ;;  %v3088_v15 = vld [vmem:[%s4361_s3 + $0xb8] sm:$0xff] }
  0x32   : > { %409 = vst [vmem:[#allocation2 + $0x128] sm:$0xff] %v3284_v2  ;;  %1090 = vmatpush.msrb.mxu2 %v3109_v36  ;;  %1604 = vmatpush.msrb.mxu0 %v3143_v38  ;;  %v3090_v35 = vld [vmem:[%s4361_s3 + $0xc8] sm:$0xff]  ;;  %v290_v36 = vmul.f32 %v3355_v6, %v254_v20  ;;  %v308_v38 = vadd.f32 %v3362_v8, %v272_v19  ;;  %v366_v19 = vmax.f32 %v334_v61, 0.0  ;;  %v3119_v20 = vld [vmem:[%s4361_s3 + $0x1b0] sm:$0xff] }
  0x33   : > { %410 = vst [vmem:[#allocation2 + $0x130] sm:$0x3] %v3284_v2  ;;  %1348 = vmatpush.msrb.mxu3 %v3125_v37  ;;  %832 = vmatpush.msrb.mxu1 %v3093_v52  ;;  %v356_v37 = vmax.f32 %v324_v18, 0.0  ;;  %v263_v52 = vld [vmem:[%s3350_s8 + $0xd8] sm:$0xff] }
  0x34   : > { %411 = vst [vmem:[#allocation2 + $0x138] sm:$0xff] %v3284_v2  ;;  %1091 = vmatpush.msrb.mxu2 %v3108_v53  ;;  %1605 = vmatpush.msrb.mxu0 %v3142_v58  ;;  %v3603_v53 = vmax.f32 %v325_v32, 0.0  ;;  %v326_v54 = vadd.f32 %v3362_v8, %v290_v36  ;;  %v3607_v56 = vmax.f32 %v308_v38, 0.0  ;;  %v274_v58 = vmul.f32 %v3355_v6, %v238_v48  ;;  %v264_v32 = vld [vmem:[%s3350_s8 + $0xe0] sm:$0xff] }
  0x35   : > { %412 = vst [vmem:[#allocation2 + $0x140] sm:$0xff] %v3284_v2  ;;  %1349 = vmatpush.msrb.mxu3 %v3124_v57  ;;  %833 = vmatpush.msrb.mxu1 %v3092_v59  ;;  %v309_v57 = vadd.f32 %v3362_v8, %v273_v42  ;;  %v300_v36 = vmul.f32 %v3355_v6, %v264_v32  ;;  %v3102_v42 = vld [vmem:[%s4361_s3 + $0x128] sm:$0xff] }
  0x36   : > { %413 = vst [vmem:[#allocation2 + $0x148] sm:$0x3] %v3284_v2  ;;  %590 = vmatmul.f32.gmra.mxu0 %v3284_v2  ;;  %1092 = vmatpush.msrb.mxu2 %v3107_v62  ;;  %v299_v62 = vmul.f32 %v3355_v6, %v263_v52  ;;  %v3626_v7 = vmax.f32 %v326_v54, 0.0  ;;  %v310_v18 = vadd.f32 %v3362_v8, %v274_v58  ;;  %v3101_v52 = vld [vmem:[%s4361_s3 + $0x120] sm:$0xff] }
  0x37   : > { %414 = vst [vmem:[#allocation2 + $0x150] sm:$0xff] %v3284_v2  ;;  %1350 = vmatpush.msrb.mxu3 %v3123_v63  ;;  %1606 = vmatpush.msrb.mxu0 %v3141_v0  ;;  %v3637_v14 = vmax.f32 %v309_v57, 0.0  ;;  %v336_v44 = vadd.f32 %v3362_v8, %v300_v36  ;;  %v3135_v57 = vld [vmem:[%s4361_s3 + $0x230] sm:$0xff]  ;;  %v3133_v36 = vld [vmem:[%s4361_s3 + $0x220] sm:$0xff] }
  0x38   : > { %415 = vst [vmem:[#allocation2 + $0x158] sm:$0xff] %v3284_v2  ;;  %834 = vmatpush.msrb.mxu1 %v3091_v28  ;;  %1093 = vmatpush.msrb.mxu2 %v3106_v29  ;;  %v335_v22 = vadd.f32 %v3362_v8, %v299_v62  ;;  %v284_v29 = vmul.f32 %v3355_v6, %v248_v25  ;;  %v3116_v25 = vld [vmem:[%s4361_s3 + $0x198] sm:$0xff] }
  0x39   : > { %416 = vst [vmem:[#allocation2 + $0x160] sm:$0x3] %v3284_v2  ;;  %1351 = vmatpush.msrb.mxu3 %v3122_v33  ;;  %1607 = vmatpush.msrb.mxu0 %v3140_v34  ;;  %v3666_v34 = vmax.f32 %v310_v18, 0.0  ;;  %v368_v58 = vmax.f32 %v336_v44, 0.0 }
  0x3a   : > { %417 = vst [vmem:[#allocation2 + $0x168] sm:$0xff] %v3284_v2  ;;  %835 = vmatpush.msrb.mxu1 %v3090_v35  ;;  %1094 = vmatpush.msrb.mxu2 %v3105_v39  ;;  %v275_v35 = vmul.f32 %v3355_v6, %v239_v30  ;;  %v367_v38 = vmax.f32 %v335_v22, 0.0  ;;  %v320_v39 = vadd.f32 %v3362_v8, %v284_v29  ;;  %v3099_v30 = vld [vmem:[%s4361_s3 + $0x110] sm:$0xff] }
  0x3b   : > { %418 = vst [vmem:[#allocation2 + $0x170] sm:$0xff] %v3284_v2  ;;  %1352 = vmatpush.msrb.mxu3 %v3121_v40  ;;  %1608 = vmatpush.msrb.mxu0 %v3139_v41  ;;  %v3087_v41 = vld [vmem:[%s4361_s3 + $0xb0] sm:$0xff] }
  0x3c   : > { %419 = vst [vmem:[#allocation2 + $0x178] sm:$0x3] %v3284_v2  ;;  %836 = vmatpush.msrb.mxu1 %v3089_v1  ;;  %1095 = vmatpush.msrb.mxu2 %v3104_v3  ;;  %v3692_v48 = vmax.f32 %v320_v39, 0.0  ;;  %v240_v1 = vld [vmem:[%s3350_s8 + $0x20] sm:$0xff]  ;;  %v265_v3 = vld [vmem:[%s3350_s8 + $0xe8] sm:$0xff] }
  0x3d   : > { %420 = vst [vmem:[#allocation2 + $0x180] sm:$0xff] %v3284_v2  ;;  %1353 = vmatpush.msrb.mxu3 %v3120_v9  ;;  %1609 = vmatpush.msrb.mxu0 %v3138_v10  ;;  %v276_v9 = vmul.f32 %v3355_v6, %v240_v1  ;;  %v301_v10 = vmul.f32 %v3355_v6, %v265_v3  ;;  %v3176_v3 = vld [vmem:[%s4361_s3 + $0x378] sm:$0xff] }
  0x3e   : > { %421 = vst [vmem:[#allocation2 + $0x188] sm:$0xff] %v3284_v2  ;;  %837 = vmatpush.msrb.mxu1 %v3088_v15 }
  0x3f   : > { %422 = vst [vmem:[#allocation2 + $0x190] sm:$0x3] %v3284_v2  ;;  %1354 = vmatpush.msrb.mxu3 %v3119_v20  ;;  %v3100_v20 = vld [vmem:[%s4361_s3 + $0x118] sm:$0xff]  ;;  %v337_v22 = vadd.f32 %v3362_v8, %v301_v10 }
  0x40   : > { %423 = vst [vmem:[#allocation2 + $0x198] sm:$0xff] %v3284_v2  ;;  %838 = vmatpush.msrb.mxu1 %v3087_v41  ;;  %v3160_v10 = vld [vmem:[%s4361_s3 + $0x2f8] sm:$0xff] }
  0x41   : > { %424 = vst [vmem:[#allocation2 + $0x1a0] sm:$0xff] %v3284_v2  ;;  %1355 = vmatpush.msrb.mxu3 %v3118_v46  ;;  %v3083_v46 = vld [vmem:[%s4361_s3 + $0x90] sm:$0xff] }
  0x42   : > { %425 = vst [vmem:[#allocation2 + $0x1a8] sm:$0x3] %v3284_v2  ;;  %v282_v2 = vmul.f32 %v3355_v6, %v246_v16  ;;  %v3103_v16 = vld [vmem:[%s4361_s3 + $0x130] sm:$0xff]  ;;  %839 = vmatpush.msrb.mxu1 %v3086_v51  ;;  %v3082_v51 = vld [vmem:[%s4361_s3 + $0x88] sm:$0xff] }
  0x43   : > { %441 = vst [vmem:[#allocation2 + $0xc1] sm:$0xff] %v354_v5  ;;  %1096 = vmatpush.msrb.mxu2 %v3103_v16 }
  0x44   : > { %449 = vst [vmem:[#allocation2 + $0x121] sm:$0xff] %v362_v12  ;;  %v318_v50 = vadd.f32 %v3362_v8, %v282_v2  ;;  %v327_v12 = vadd.f32 %v3362_v8, %v291_v55  ;;  %v3117_v55 = vld [vmem:[%s4361_s3 + $0x1a0] sm:$0xff] }
  0x45   : > { %434 = vst [vmem:[#allocation2 + $0x69] sm:$0xff] %v3549_v17  ;;  %1097 = vmatpush.msrb.mxu2 %v3102_v42  ;;  %1356 = vmatpush.msrb.mxu3 %v3117_v55  ;;  %v3097_v55 = vld [vmem:[%s4361_s3 + $0x100] sm:$0xff] }
  0x46   : > { %442 = vst [vmem:[#allocation2 + $0xc9] sm:$0xff] %v355_v21  ;;  %v3614_v0 = vmax.f32 %v318_v50, 0.0  ;;  %v3137_v21 = vld [vmem:[%s4361_s3 + $0x240] sm:$0xff]  ;;  %v3659_v28 = vmax.f32 %v327_v12, 0.0 }
  0x47   : > { %450 = vst [vmem:[#allocation2 + $0x129] sm:$0xff] %v363_v26  ;;  %v256_v26 = vld [vmem:[%s3350_s8 + $0xa0] sm:$0xff]  ;;  %1610 = vmatpush.msrb.mxu0 %v3137_v21  ;;  %1098 = vmatpush.msrb.mxu2 %v3101_v52  ;;  %v312_v21 = vadd.f32 %v3362_v8, %v276_v9  ;;  %v3192_v9 = vld [vmem:[%s4361_s3 + $0x3f8] sm:$0xff] }
  0x48   : > { %435 = vst [vmem:[#allocation2 + $0x79] sm:$0xff] %v3567_v31  ;;  %v292_v2 = vmul.f32 %v3355_v6, %v256_v26  ;;  %v3134_v26 = vld [vmem:[%s4361_s3 + $0x228] sm:$0xff]  ;;  %1357 = vmatpush.msrb.mxu3 %v3116_v25 }
  0x49   : > { %443 = vst [vmem:[#allocation2 + $0xd9] sm:$0xff] %v356_v37  ;;  %1611 = vmatpush.msrb.mxu0 %v3136_v47  ;;  %v3759_v32 = vmax.f32 %v312_v21, 0.0  ;;  %1099 = vmatpush.msrb.mxu2 %v3100_v20  ;;  %v3098_v47 = vld [vmem:[%s4361_s3 + $0x108] sm:$0xff] }
  0x4a   : > { %v507_v59 = vld [vmem:[#allocation2 + $0xc0] sm:$0xff]  ;;  %451 = vst [vmem:[#allocation2 + $0x139] sm:$0xff] %v364_v43  ;;  %v328_v40 = vadd.f32 %v3362_v8, %v292_v2  ;;  %v311_v43 = vadd.f32 %v3362_v8, %v275_v35  ;;  %v3084_v2 = vld [vmem:[%s4361_s3 + $0x98] sm:$0xff]  ;;  %v3115_v35 = vld [vmem:[%s4361_s3 + $0x190] sm:$0xff] }
  0x4b   : > { %635 = vmatmul.f32.vlgmr.msra.gmra.mxu2 %v507_v59  ;;  %v515_v63 = vld [vmem:[#allocation2 + $0x120] sm:$0xff]  ;;  %436 = vst [vmem:[#allocation2 + $0x81] sm:$0xff] %v3597_v49  ;;  %v249_v59 = vld [vmem:[%s3350_s8 + $0x68] sm:$0xff]  ;;  %1612 = vmatpush.msrb.mxu0 %v3135_v57 }
  0x4c   : > { %659 = vmatmul.f32.vlgmr.msra.gmra.mxu3 %v515_v63  ;;  %v3623_v5 = vld [vmem:[#allocation2 + $0x68] sm:$0xff]  ;;  %444 = vst [vmem:[#allocation2 + $0xe1] sm:$0xff] %v3603_v53  ;;  %v3694_v50 = vmax.f32 %v328_v40, 0.0  ;;  %v3705_v54 = vmax.f32 %v311_v43, 0.0  ;;  %v285_v62 = vmul.f32 %v3355_v6, %v249_v59  ;;  %1100 = vmatpush.msrb.mxu2 %v3099_v30  ;;  %v3113_v57 = vld [vmem:[%s4361_s3 + $0x180] sm:$0xff] }
  0x4d   : > { %614 = vmatmul.f32.gmra.mxu1 %v3623_v5  ;;  %427 = vst [vmem:[#allocation2 + $0x19] sm:$0xff] %v3607_v56  ;;  %v508_v27 = vld [vmem:[#allocation2 + $0xc8] sm:$0xff]  ;;  %1613 = vmatpush.msrb.mxu0 %v3134_v26  ;;  %v3081_v59 = vld [vmem:[%s4361_s3 + $0x80] sm:$0xff] }
  0x4e   : > { %452 = vst [vmem:[#allocation2 + $0x141] sm:$0xff] %v365_v60  ;;  %v516_v33 = vld [vmem:[#allocation2 + $0x128] sm:$0xff]  ;;  %v321_v16 = vadd.f32 %v3362_v8, %v285_v62  ;;  %1358 = vmatpush.msrb.mxu3 %v3115_v35  ;;  %1101 = vmatpush.msrb.mxu2 %v3098_v47  ;;  %v3191_v35 = vld [vmem:[%s4361_s3 + $0x3f0] sm:$0xff] }
  0x4f   : > { %437 = vst [vmem:[#allocation2 + $0x91] sm:$0xff] %v3614_v0  ;;  %v3670_v37 = vld [vmem:[#allocation2 + $0x78] sm:$0xff]  ;;  %v257_v60 = vld [vmem:[%s3350_s8 + $0xa8] sm:$0xff]  ;;  %1614 = vmatpush.msrb.mxu0 %v3133_v36  ;;  %v3159_v36 = vld [vmem:[%s4361_s3 + $0x2f0] sm:$0xff] }
  0x50   : > { %445 = vst [vmem:[#allocation2 + $0xf1] sm:$0xff] %v3626_v7  ;;  %v3716_v61 = vld [vmem:[#allocation2 + $0xd8] sm:$0xff]  ;;  %v293_v63 = vmul.f32 %v3355_v6, %v257_v60  ;;  %1102 = vmatpush.msrb.mxu2 %v3097_v55  ;;  %v749_v47 = vld [vmem:[#allocation2 + $0x9] sm:$0xff] }
  0x51   : > { %428 = vst [vmem:[#allocation2 + $0x21] sm:$0xff] %v3637_v14  ;;  %v517_v4 = vld [vmem:[#allocation2 + $0x138] sm:$0xff]  ;;  %v1007_v55 = vld [vmem:[#allocation2 + $0xa] sm:$0xff] }
  0x52   : > { %453 = vst [vmem:[#allocation2 + $0x151] sm:$0xff] %v366_v19  ;;  %v3726_v12 = vld [vmem:[#allocation2 + $0x80] sm:$0xff]  ;;  %v329_v18 = vadd.f32 %v3362_v8, %v293_v63  ;;  %2120 = vmatpush.msra.mxu2 %v3176_v3 }
  0x53   : > { %638 = vmatmul.f32.gmra.mxu2 %v508_v27  ;;  %438 = vst [vmem:[#allocation2 + $0x99] sm:$0xff] %v3654_v24  ;;  %v3085_v19 = vld [vmem:[%s4361_s3 + $0xa0] sm:$0xff]  ;;  %v3747_v27 = vmax.f32 %v321_v16, 0.0 }
  0x54   : > { %662 = vmatmul.f32.gmra.mxu3 %v516_v33  ;;  %v3683_v45 = vld [vmem:[#allocation2 + $0x18] sm:$0xff]  ;;  %446 = vst [vmem:[#allocation2 + $0xf9] sm:$0xff] %v3659_v28  ;;  %840 = vmatpush.msrb.mxu1 %v3085_v19  ;;  %v3749_v29 = vmax.f32 %v329_v18, 0.0  ;;  %v369_v33 = vmax.f32 %v337_v22, 0.0  ;;  %v3770_v39 = vld [vmem:[#allocation2 + $0xe0] sm:$0xff] }
  0x55   : > { %617 = vmatmul.f32.gmra.mxu1 %v3670_v37  ;;  %593 = vmatmul.f32.gmra.mxu0 %v3683_v45  ;;  %429 = vst [vmem:[#allocation2 + $0x31] sm:$0xff] %v3666_v34  ;;  %v518_v41 = vld [vmem:[#allocation2 + $0x140] sm:$0xff]  ;;  %v3208_v22 = vld [vmem:[%s4361_s3 + $0x478] sm:$0xff] }
  0x56   : > { %454 = vst [vmem:[#allocation2 + $0x159] sm:$0xff] %v367_v38  ;;  %841 = vmatpush.msrb.mxu1 %v3084_v2  ;;  %v241_v38 = vld [vmem:[%s3350_s8 + $0x28] sm:$0xff]  ;;  %v3774_v42 = vld [vmem:[#allocation2 + $0x90] sm:$0xff]  ;;  %v3129_v16 = vld [vmem:[%s4361_s3 + $0x200] sm:$0xff] }
  0x57   : > { %439 = vst [vmem:[#allocation2 + $0xa9] sm:$0xff] %v3692_v48  ;;  %v277_v40 = vmul.f32 %v3355_v6, %v241_v38  ;;  %v3114_v6 = vld [vmem:[%s4361_s3 + $0x188] sm:$0xff]  ;;  %v3812_v60 = vld [vmem:[#allocation2 + $0xf0] sm:$0xff] }
  0x58   : > { %447 = vst [vmem:[#allocation2 + $0x109] sm:$0xff] %v3694_v50  ;;  %v3728_v15 = vld [vmem:[#allocation2 + $0x20] sm:$0xff]  ;;  %842 = vmatpush.msrb.mxu1 %v3083_v46  ;;  %1359 = vmatpush.msrb.mxu3 %v3114_v6  ;;  %v3174_v6 = vld [vmem:[%s4361_s3 + $0x368] sm:$0xff] }
  0x59   : > { %430 = vst [vmem:[#allocation2 + $0x39] sm:$0xff] %v3705_v54  ;;  %v313_v44 = vadd.f32 %v3362_v8, %v277_v40  ;;  %v3132_v8 = vld [vmem:[%s4361_s3 + $0x218] sm:$0xff]  ;;  %v519_v62 = vld [vmem:[#allocation2 + $0x150] sm:$0xff]  ;;  %v1006_v46 = vld [vmem:[#allocation2 + $0x2] sm:$0xff] }
  0x5a   : > { %455 = vst [vmem:[#allocation2 + $0x169] sm:$0xff] %v368_v58  ;;  %v3131_v58 = vld [vmem:[%s4361_s3 + $0x210] sm:$0xff]  ;;  %1615 = vmatpush.msrb.mxu0 %v3132_v8  ;;  %843 = vmatpush.msrb.mxu1 %v3082_v51  ;;  %v3814_v63 = vld [vmem:[#allocation2 + $0x98] sm:$0xff]  ;;  %v3190_v8 = vld [vmem:[%s4361_s3 + $0x3e8] sm:$0xff] }
  0x5b   : > { %641 = vmatmul.f32.gmra.mxu2 %v3716_v61  ;;  %440 = vst [vmem:[#allocation2 + $0xb1] sm:$0xff] %v3747_v27  ;;  %v3795_v52 = vmax.f32 %v313_v44, 0.0  ;;  %1360 = vmatpush.msrb.mxu3 %v3113_v57  ;;  %v3836_v18 = vld [vmem:[#allocation2 + $0xf8] sm:$0xff]  ;;  %v3207_v44 = vld [vmem:[%s4361_s3 + $0x470] sm:$0xff]  ;;  %v3158_v51 = vld [vmem:[%s4361_s3 + $0x2e8] sm:$0xff] }
  0x5c   : > { %665 = vmatmul.f32.gmra.mxu3 %v517_v4  ;;  %448 = vst [vmem:[#allocation2 + $0x111] sm:$0xff] %v3749_v29  ;;  %v3776_v43 = vld [vmem:[#allocation2 + $0x30] sm:$0xff]  ;;  %1616 = vmatpush.msrb.mxu0 %v3131_v58  ;;  %v3130_v4 = vld [vmem:[%s4361_s3 + $0x208] sm:$0xff]  ;;  %v1008_v57 = vld [vmem:[#allocation2 + $0x1a] sm:$0xff] }
  0x5d   : > { %620 = vmatmul.f32.gmra.mxu1 %v3726_v12  ;;  %596 = vmatmul.f32.gmra.mxu0 %v3728_v15  ;;  %431 = vst [vmem:[#allocation2 + $0x49] sm:$0xff] %v3759_v32  ;;  %v520_v19 = vld [vmem:[#allocation2 + $0x158] sm:$0xff]  ;;  %v3173_v58 = vld [vmem:[%s4361_s3 + $0x360] sm:$0xff] }
  0x5e   : > { %456 = vst [vmem:[#allocation2 + $0x171] sm:$0xff] %v369_v33  ;;  %844 = vmatpush.msrb.mxu1 %v3081_v59  ;;  %1617 = vmatpush.msrb.mxu0 %v3130_v4  ;;  %v3838_v20 = vld [vmem:[#allocation2 + $0xa8] sm:$0xff]  ;;  %v3175_v33 = vld [vmem:[%s4361_s3 + $0x370] sm:$0xff]  ;;  %v3204_v4 = vld [vmem:[%s4361_s3 + $0x458] sm:$0xff] }
  0x5f   : > { %432 = vst [vmem:[#allocation2 + $0x51] sm:$0xff] %v3795_v52  ;;  %2378 = vmatpush.msra.mxu3 %v3192_v9  ;;  %v3848_v25 = vld [vmem:[#allocation2 + $0x108] sm:$0xff]  ;;  %2121 = vmatpush.msra.mxu2 %v3175_v33  ;;  %v3171_v9 = vld [vmem:[%s4361_s3 + $0x350] sm:$0xff] }
  0x60   : > { %v3816_v1 = vld [vmem:[#allocation2 + $0x38] sm:$0xff]  ;;  %1861 = vmatpush.msra.mxu1 %v3160_v10  ;;  %1618 = vmatpush.msrb.mxu0 %v3129_v16  ;;  %v1009_v59 = vld [vmem:[#allocation2 + $0x22] sm:$0xff]  ;;  %v3187_v10 = vld [vmem:[%s4361_s3 + $0x3d0] sm:$0xff] }
  0x61   : > { %v521_v26 = vld [vmem:[#allocation2 + $0x168] sm:$0xff]  ;;  %2379 = vmatpush.msra.mxu3 %v3191_v35  ;;  %2122 = vmatpush.msra.mxu2 %v3174_v6  ;;  %v1011_v3 = vld [vmem:[#allocation2 + $0x3a] sm:$0xff] }
  0x62   : > { %2636 = vmatpush.msra.mxu0 %v3208_v22  ;;  %v3850_v2 = vld [vmem:[#allocation2 + $0xb0] sm:$0xff]  ;;  %1862 = vmatpush.msra.mxu1 %v3159_v36  ;;  %v3154_v33 = vld [vmem:[%s4361_s3 + $0x2c8] sm:$0xff] }
  0x63   : > { %644 = vmatmul.f32.gmra.mxu2 %v3770_v39  ;;  %v3866_v38 = vld [vmem:[#allocation2 + $0x110] sm:$0xff]  ;;  %2380 = vmatpush.msra.mxu3 %v3190_v8 }
  0x64   : > { %668 = vmatmul.f32.gmra.mxu3 %v518_v41  ;;  %v3840_v21 = vld [vmem:[#allocation2 + $0x48] sm:$0xff]  ;;  %2637 = vmatpush.msra.mxu0 %v3207_v44 }
  0x65   : > { %623 = vmatmul.f32.gmra.mxu1 %v3774_v42  ;;  %599 = vmatmul.f32.gmra.mxu0 %v3776_v43  ;;  %v522_v40 = vld [vmem:[#allocation2 + $0x170] sm:$0xff]  ;;  %v748_v41 = vld [vmem:[#allocation2 + $0x1] sm:$0xff] }
  0x66   : > { %v3852_v30 = vld [vmem:[#allocation2 + $0x50] sm:$0xff]  ;;  %1863 = vmatpush.msra.mxu1 %v3158_v51  ;;  %2123 = vmatpush.msra.mxu2 %v3173_v58  ;;  %v3153_v51 = vld [vmem:[%s4361_s3 + $0x2c0] sm:$0xff] }
  0x6b   : > { %647 = vmatmul.f32.gmra.mxu2 %v3812_v60 }
  0x6c   : > { %671 = vmatmul.f32.gmra.mxu3 %v519_v62  ;;  %v1010_v62 = vld [vmem:[#allocation2 + $0x32] sm:$0xff] }
  0x6d   : > { %626 = vmatmul.f32.gmra.mxu1 %v3814_v63  ;;  %602 = vmatmul.f32.gmra.mxu0 %v3816_v1 }
  0x73   : > { %650 = vmatmul.f32.gmra.mxu2 %v3836_v18 }
  0x74   : > { %674 = vmatmul.f32.gmra.mxu3 %v520_v19  ;;  %v1014_v19 = vld [vmem:[#allocation2 + $0x62] sm:$0xff] }
  0x75   : > { %629 = vmatmul.f32.gmra.mxu1 %v3838_v20  ;;  %605 = vmatmul.f32.gmra.mxu0 %v3840_v21 }
  0x7b   : > { %653 = vmatmul.f32.gmra.mxu2 %v3848_v25 }
  0x7c   : > { %677 = vmatmul.f32.gmra.mxu3 %v521_v26  ;;  %v3170_v26 = vld [vmem:[%s4361_s3 + $0x348] sm:$0xff] }
  0x7d   : > { %632 = vmatmul.f32.gmra.mxu1 %v3850_v2  ;;  %608 = vmatmul.f32.gmra.mxu0 %v3852_v30 }
  0x83   : > { %656 = vmatmul.f32.gmra.mxu2 %v3866_v38 }
  0x84   : > { %680 = vmatmul.f32.gmra.mxu3 %v522_v40 }
  0x85   : > { %845 = vmatmul.f32.vlgmr.msrb.gmra.mxu1 %v748_v41  ;;  %1619 = vmatmul.f32.vlgmr.msrb.gmra.mxu0 %v3607_v56 }
  0x8b   : > { %1103 = vmatmul.f32.vlgmr.msrb.gmra.mxu2 %v1006_v46  ;;  %v1016_v46 = vld [vmem:[#allocation2 + $0x7a] sm:$0xff] }
  0x8c   : > { %1361 = vmatmul.f32.vlgmr.msrb.gmra.mxu3 %v3683_v45  ;;  %v3206_v45 = vld [vmem:[%s4361_s3 + $0x468] sm:$0xff] }
  0x8d   : > { %848 = vmatmul.f32.gmra.mxu1 %v749_v47  ;;  %1622 = vmatmul.f32.gmra.mxu0 %v3637_v14 }
  0x8e   : > { %2638 = vmatpush.msra.mxu0 %v3206_v45 }
  0x93   : > { %1106 = vmatmul.f32.gmra.mxu2 %v1007_v55 }
  0x94   : > { %1364 = vmatmul.f32.gmra.mxu3 %v3728_v15  ;;  %v3189_v15 = vld [vmem:[%s4361_s3 + $0x3e0] sm:$0xff] }
  0x95   : > { %851 = vmatmul.f32.gmra.mxu1 %v3607_v56  ;;  %1625 = vmatmul.f32.gmra.mxu0 %v3666_v34  ;;  %v3157_v56 = vld [vmem:[%s4361_s3 + $0x2e0] sm:$0xff] }
  0x96   : > { %2381 = vmatpush.msra.mxu3 %v3189_v15  ;;  %1864 = vmatpush.msra.mxu1 %v3157_v56  ;;  %v1018_v56 = vld [vmem:[#allocation2 + $0x92] sm:$0xff] }
  0x9b   : > { %1109 = vmatmul.f32.gmra.mxu2 %v1008_v57 }
  0x9c   : > { %1367 = vmatmul.f32.gmra.mxu3 %v3776_v43  ;;  %v3205_v43 = vld [vmem:[%s4361_s3 + $0x460] sm:$0xff] }
  0x9d   : > { %854 = vmatmul.f32.gmra.mxu1 %v3637_v14  ;;  %1628 = vmatmul.f32.gmra.mxu0 %v3705_v54  ;;  %v3172_v14 = vld [vmem:[%s4361_s3 + $0x358] sm:$0xff] }
  0x9e   : > { %2639 = vmatpush.msra.mxu0 %v3205_v43  ;;  %2124 = vmatpush.msra.mxu2 %v3172_v14 }
  0xa0   : > { %2640 = vmatpush.msra.mxu0 %v3204_v4  ;;  %2125 = vmatpush.msra.mxu2 %v3171_v9  ;;  %v1536_v4 = vld [vmem:[#allocation2 + $0xc1] sm:$0xff] }
  0xa2   : > { %2126 = vmatpush.msra.mxu2 %v3170_v26 }
  0xa3   : > { %1112 = vmatmul.f32.gmra.mxu2 %v1009_v59 }
  0xa4   : > { %1370 = vmatmul.f32.gmra.mxu3 %v3816_v1  ;;  %v3188_v1 = vld [vmem:[%s4361_s3 + $0x3d8] sm:$0xff] }
  0xa5   : > { %857 = vmatmul.f32.gmra.mxu1 %v3666_v34  ;;  %1631 = vmatmul.f32.gmra.mxu0 %v3759_v32  ;;  %v3156_v34 = vld [vmem:[%s4361_s3 + $0x2d8] sm:$0xff] }
  0xa6   : > { %2382 = vmatpush.msra.mxu3 %v3188_v1  ;;  %1865 = vmatpush.msra.mxu1 %v3156_v34  ;;  %v3152_v1 = vld [vmem:[%s4361_s3 + $0x2b8] sm:$0xff] }
  0xa7   : > { %v1019_v34 = vld [vmem:[#allocation2 + $0x9a] sm:$0xff] }
  0xa8   : > { %2383 = vmatpush.msra.mxu3 %v3187_v10  ;;  %v3941_v16 = vpop.f32.mrf.mxu1  ;;  %v1020_v10 = vld [vmem:[#allocation2 + $0xaa] sm:$0xff] }
  0xab   : > { %1115 = vmatmul.f32.gmra.mxu2 %v1010_v62  ;;  %v3936_v11 = vpop.f32.mrf.mxu0 }
  0xac   : > { %1373 = vmatmul.f32.gmra.mxu3 %v3840_v21 }
  0xad   : > { %860 = vmatmul.f32.gmra.mxu1 %v3705_v54  ;;  %1634 = vmatmul.f32.gmra.mxu0 %v3795_v52  ;;  %v1012_v54 = vld [vmem:[#allocation2 + $0x4a] sm:$0xff] }
  0xb3   : > { %1118 = vmatmul.f32.gmra.mxu2 %v1011_v3  ;;  %v3948_v21 = vpop.f32.mrf.mxu0 }
  0xb4   : > { %1376 = vmatmul.f32.gmra.mxu3 %v3852_v30 }
  0xb5   : > { %863 = vmatmul.f32.gmra.mxu1 %v3759_v32  ;;  %1637 = vmatmul.f32.gmra.mxu0 %v346_v13  ;;  %v3155_v13 = vld [vmem:[%s4361_s3 + $0x2d0] sm:$0xff] }
  0xb6   : > { %1866 = vmatpush.msra.mxu1 %v3155_v13  ;;  %v1013_v32 = vld [vmem:[#allocation2 + $0x52] sm:$0xff]  ;;  %v1278_v13 = vld [vmem:[#allocation2 + $0xc0] sm:$0xff] }
  0xb8   : > { %1867 = vmatpush.msra.mxu1 %v3154_v33  ;;  %v1021_v33 = vld [vmem:[#allocation2 + $0xb2] sm:$0xff] }
  0xba   : > { %1868 = vmatpush.msra.mxu1 %v3153_v51 }
  0xbb   : > { %1121 = vmatmul.f32.gmra.mxu2 %v1012_v54 }
  0xbc   : > { %1379 = vmatmul.f32.gmra.mxu3 %v3426_v23  ;;  %v3203_v23 = vld [vmem:[%s4361_s3 + $0x450] sm:$0xff]  ;;  %1869 = vmatpush.msra.mxu1 %v3152_v1 }
  0xbd   : > { %866 = vmatmul.f32.gmra.mxu1 %v3795_v52  ;;  %1640 = vmatmul.f32.gmra.mxu0 %v3549_v17  ;;  %v3272_v52 = vld [vmem:[#allocation2 + $0x61] sm:$0xff] }
  0xbe   : > { %2641 = vmatpush.msra.mxu0 %v3203_v23 }
  0xc3   : > { %1124 = vmatmul.f32.gmra.mxu2 %v1013_v32 }
  0xc4   : > { %1382 = vmatmul.f32.gmra.mxu3 %v3623_v5  ;;  %v3186_v5 = vld [vmem:[%s4361_s3 + $0x3c8] sm:$0xff] }
  0xc5   : > { %869 = vmatmul.f32.gmra.mxu1 %v3272_v52  ;;  %1643 = vmatmul.f32.gmra.mxu0 %v3567_v31  ;;  %v1537_v52 = vld [vmem:[#allocation2 + $0xc9] sm:$0xff] }
  0xc6   : > { %2384 = vmatpush.msra.mxu3 %v3186_v5  ;;  %v3151_v5 = vld [vmem:[%s4361_s3 + $0x2b0] sm:$0xff] }
  0xc7   : > { %1870 = vmatpush.msra.mxu1 %v3151_v5 }
  0xca   : > { %v3950_v22 = vpop.f32.mrf.mxu1 }
  0xcb   : > { %1127 = vmatmul.f32.gmra.mxu2 %v1014_v19 }
  0xcc   : > { %1385 = vmatmul.f32.gmra.mxu3 %v3670_v37  ;;  %v1015_v37 = vld [vmem:[#allocation2 + $0x6a] sm:$0xff] }
  0xcd   : > { %872 = vmatmul.f32.gmra.mxu1 %v3549_v17  ;;  %1646 = vmatmul.f32.gmra.mxu0 %v3597_v49  ;;  %v3202_v17 = vld [vmem:[%s4361_s3 + $0x448] sm:$0xff] }
  0xce   : > { %v3961_v30 = vpop.f32.mrf.mxu2  ;;  %2642 = vmatpush.msra.mxu0 %v3202_v17 }
  0xcf   : > { %v3966_v35 = vpop.f32.mrf.mxu3 }
  0xd2   : > { %v3968_v36 = vpop.f32.mrf.mxu1  ;;  %v3970_v40 = vpop.f32.mrf.mxu0 }
  0xd3   : > { %1130 = vmatmul.f32.gmra.mxu2 %v1015_v37  ;;  %v1279_v37 = vld [vmem:[#allocation2 + $0xc8] sm:$0xff] }
  0xd4   : > { %1388 = vmatmul.f32.gmra.mxu3 %v3726_v12  ;;  %v3169_v12 = vld [vmem:[%s4361_s3 + $0x340] sm:$0xff] }
  0xd5   : > { %875 = vmatmul.f32.gmra.mxu1 %v3567_v31  ;;  %1649 = vmatmul.f32.gmra.mxu0 %v3614_v0  ;;  %v3185_v31 = vld [vmem:[%s4361_s3 + $0x3c0] sm:$0xff] }
  0xd6   : > { %v3978_v41 = vpop.f32.mrf.mxu2  ;;  %2127 = vmatpush.msra.mxu2 %v3169_v12  ;;  %2385 = vmatpush.msra.mxu3 %v3185_v31  ;;  %v1538_v12 = vld [vmem:[#allocation2 + $0xd9] sm:$0xff] }
  0xd7   : > { %v3980_v44 = vpop.f32.mrf.mxu3 }
  0xda   : > { %v3982_v47 = vpop.f32.mrf.mxu1  ;;  %v3984_v6 = vpop.f32.mrf.mxu0 }
  0xdb   : > { %1133 = vmatmul.f32.gmra.mxu2 %v1016_v46 }
  0xdc   : > { %1391 = vmatmul.f32.gmra.mxu3 %v3774_v42  ;;  %v1017_v42 = vld [vmem:[#allocation2 + $0x82] sm:$0xff] }
  0xdd   : > { %878 = vmatmul.f32.gmra.mxu1 %v3597_v49  ;;  %1652 = vmatmul.f32.gmra.mxu0 %v3654_v24  ;;  %v3201_v49 = vld [vmem:[%s4361_s3 + $0x440] sm:$0xff] }
  0xde   : > { %v3995_v8 = vpop.f32.mrf.mxu2  ;;  %2643 = vmatpush.msra.mxu0 %v3201_v49 }
  0xdf   : > { %v4000_v55 = vpop.f32.mrf.mxu3 }
  0xe2   : > { %v4002_v45 = vpop.f32.mrf.mxu1  ;;  %v4004_v57 = vpop.f32.mrf.mxu0 }
  0xe3   : > { %1136 = vmatmul.f32.gmra.mxu2 %v1017_v42  ;;  %v1022_v42 = vld [vmem:[#allocation2 + $0xc2] sm:$0xff] }
  0xe4   : > { %1394 = vmatmul.f32.gmra.mxu3 %v3814_v63  ;;  %v3168_v63 = vld [vmem:[%s4361_s3 + $0x338] sm:$0xff] }
  0xe5   : > { %881 = vmatmul.f32.gmra.mxu1 %v3614_v0  ;;  %1655 = vmatmul.f32.gmra.mxu0 %v3692_v48  ;;  %v3184_v0 = vld [vmem:[%s4361_s3 + $0x3b8] sm:$0xff] }
  0xe6   : > { %v4012_v58 = vpop.f32.mrf.mxu2  ;;  %2128 = vmatpush.msra.mxu2 %v3168_v63  ;;  %2386 = vmatpush.msra.mxu3 %v3184_v0  ;;  %v3166_v63 = vld [vmem:[%s4361_s3 + $0x328] sm:$0xff] }
  0xe7   : > { %v4014_v15 = vpop.f32.mrf.mxu3  ;;  %v3182_v0 = vld [vmem:[%s4361_s3 + $0x3a8] sm:$0xff] }
  0xea   : > { %v4016_v59 = vpop.f32.mrf.mxu1  ;;  %v4018_v43 = vpop.f32.mrf.mxu0 }
  0xeb   : > { %1139 = vmatmul.f32.gmra.mxu2 %v1018_v56 }
  0xec   : > { %1397 = vmatmul.f32.gmra.mxu3 %v3838_v20 }
  0xed   : > { %884 = vmatmul.f32.gmra.mxu1 %v3654_v24  ;;  %1658 = vmatmul.f32.gmra.mxu0 %v3747_v27  ;;  %v3200_v24 = vld [vmem:[%s4361_s3 + $0x438] sm:$0xff] }
  0xee   : > { %v4029_v62 = vpop.f32.mrf.mxu2  ;;  %2644 = vmatpush.msra.mxu0 %v3200_v24 }
  0xef   : > { %v4031_v14 = vpop.f32.mrf.mxu3 }
  0xf2   : > { %v4036_v20 = vpop.f32.mrf.mxu1  ;;  %v4038_v3 = vpop.f32.mrf.mxu0 }
  0xf3   : > { %1142 = vmatmul.f32.gmra.mxu2 %v1019_v34 }
  0xf4   : > { %1400 = vmatmul.f32.gmra.mxu3 %v3850_v2  ;;  %v3167_v2 = vld [vmem:[%s4361_s3 + $0x330] sm:$0xff] }
  0xf5   : > { %887 = vmatmul.f32.gmra.mxu1 %v3692_v48  ;;  %1661 = vmatmul.f32.gmra.mxu0 %v1536_v4  ;;  %v3183_v48 = vld [vmem:[%s4361_s3 + $0x3b0] sm:$0xff] }
  0xf6   : > { %v4045_v54 = vpop.f32.mrf.mxu2  ;;  %2129 = vmatpush.msra.mxu2 %v3167_v2  ;;  %2387 = vmatpush.msra.mxu3 %v3183_v48 }
  0xf7   : > { %v4047_v9 = vpop.f32.mrf.mxu3 }
  0xf8   : > { %2130 = vmatpush.msra.mxu2 %v3166_v63  ;;  %2388 = vmatpush.msra.mxu3 %v3182_v0 }
  0xfa   : > { %v4049_v32 = vpop.f32.mrf.mxu1  ;;  %v4051_v23 = vpop.f32.mrf.mxu0 }
  0xfb   : > { %1145 = vmatmul.f32.gmra.mxu2 %v1020_v10  ;;  %v3150_v10 = vld [vmem:[%s4361_s3 + $0x2a8] sm:$0xff] }
  0xfc   : > { %1403 = vmatmul.f32.gmra.mxu3 %v1278_v13  ;;  %v1023_v13 = vld [vmem:[#allocation2 + $0xca] sm:$0xff]  ;;  %1871 = vmatpush.msra.mxu1 %v3150_v10 }
  0xfd   : > { %890 = vmatmul.f32.gmra.mxu1 %v3747_v27  ;;  %1664 = vmatmul.f32.gmra.mxu0 %v1537_v52  ;;  %v3199_v27 = vld [vmem:[%s4361_s3 + $0x430] sm:$0xff] }
  0xfe   : > { %v4060_v19 = vpop.f32.mrf.mxu2  ;;  %2645 = vmatpush.msra.mxu0 %v3199_v27  ;;  %v1024_v27 = vld [vmem:[#allocation2 + $0xda] sm:$0xff] }
  0xff   : > { %v4062_v26 = vpop.f32.mrf.mxu3 }
 0x102   : > { %v846_v17 = vpop.f32.mrf.mxu1  ;;  %v1620_v46 = vpop.f32.mrf.mxu0 }
 0x103   : > { %1148 = vmatmul.f32.gmra.mxu2 %v1021_v33  ;;  %v942_v1 = vadd.f32 %v846_v17, %v3936_v11  ;;  %v3198_v11 = vld [vmem:[%s4361_s3 + $0x428] sm:$0xff] }
 0x104   : > { %1406 = vmatmul.f32.gmra.mxu3 %v1279_v37  ;;  %2646 = vmatpush.msra.mxu0 %v3198_v11 }
 0x105   : > { %893 = vmatmul.f32.gmra.mxu1 %v1536_v4  ;;  %1667 = vmatmul.f32.gmra.mxu0 %v1538_v12 }
 0x106   : > { %v4070_v31 = vpop.f32.mrf.mxu2 }
 0x107   : > { %v4072_v51 = vpop.f32.mrf.mxu3 }
 0x10a   : > { %v849_v49 = vpop.f32.mrf.mxu1  ;;  %v1623_v56 = vpop.f32.mrf.mxu0 }
 0x10b   : > { %1151 = vmatmul.f32.gmra.mxu2 %v1022_v42 }
 0x10c   : > { %1409 = vmatmul.f32.gmra.mxu3 %v3716_v61 }
 0x10d   : > { %896 = vmatmul.f32.gmra.mxu1 %v1537_v52  ;;  %1670 = vmatmul.f32.gmra.mxu0 %v3603_v53  ;;  %v943_v52 = vadd.f32 %v849_v49, %v3948_v21  ;;  %v3181_v21 = vld [vmem:[%s4361_s3 + $0x3a0] sm:$0xff] }
 0x10e   : > { %v1104_v34 = vpop.f32.mrf.mxu2  ;;  %2389 = vmatpush.msra.mxu3 %v3181_v21 }
 0x10f   : > { %v1200_v4 = vadd.f32 %v1104_v34, %v942_v1  ;;  %v1362_v24 = vpop.f32.mrf.mxu3  ;;  %v3149_v34 = vld [vmem:[%s4361_s3 + $0x2a0] sm:$0xff] }
 0x110   : > { %1872 = vmatpush.msra.mxu1 %v3149_v34 }
 0x111   : > { %v1458_v61 = vadd.f32 %v1362_v24, %v1200_v4 }
 0x112   : > { %v852_v2 = vpop.f32.mrf.mxu1  ;;  %v1626_v48 = vpop.f32.mrf.mxu0 }
 0x113   : > { %v4086_v5 = vadd.f32 %v1620_v46, %v1458_v61  ;;  %1154 = vmatmul.f32.gmra.mxu2 %v1023_v13 }
 0x114   : > { %1412 = vmatmul.f32.gmra.mxu3 %v3770_v39  ;;  %v3165_v39 = vld [vmem:[%s4361_s3 + $0x320] sm:$0xff] }
 0x115   : > { %899 = vmatmul.f32.gmra.mxu1 %v1538_v12  ;;  %1673 = vmatmul.f32.gmra.mxu0 %v3626_v7  ;;  %v944_v12 = vadd.f32 %v852_v2, %v3970_v40 }
 0x116   : > { %v1107_v33 = vpop.f32.mrf.mxu2  ;;  %2131 = vmatpush.msra.mxu2 %v3165_v39 }
 0x117   : > { %v1201_v37 = vadd.f32 %v1107_v33, %v943_v52  ;;  %v1365_v17 = vpop.f32.mrf.mxu3  ;;  %v1026_v52 = vld [vmem:[#allocation2 + $0xf2] sm:$0xff] }
 0x119   : > { %v1459_v42 = vadd.f32 %v1365_v17, %v1201_v37 }
 0x11a   : > { %v855_v46 = vpop.f32.mrf.mxu1  ;;  %v1629_v63 = vpop.f32.mrf.mxu0 }
 0x11b   : > { %v4094_v0 = vadd.f32 %v1623_v56, %v1459_v42  ;;  %1157 = vmatmul.f32.gmra.mxu2 %v1024_v27  ;;  %v945_v40 = vadd.f32 %v855_v46, %v3984_v6 }
 0x11c   : > { %1415 = vmatmul.f32.gmra.mxu3 %v3812_v60  ;;  %v1025_v60 = vld [vmem:[#allocation2 + $0xe2] sm:$0xff] }
 0x11d   : > { %902 = vmatmul.f32.gmra.mxu1 %v3603_v53  ;;  %1676 = vmatmul.f32.gmra.mxu0 %v3659_v28  ;;  %v3197_v53 = vld [vmem:[%s4361_s3 + $0x420] sm:$0xff] }
 0x11e   : > { %v1110_v49 = vpop.f32.mrf.mxu2  ;;  %2647 = vmatpush.msra.mxu0 %v3197_v53 }
 0x11f   : > { %v1202_v56 = vadd.f32 %v1110_v49, %v944_v12  ;;  %v1368_v1 = vpop.f32.mrf.mxu3  ;;  %v1544_v49 = vld [vmem:[#allocation2 + $0x121] sm:$0xff] }
 0x121   : > { %v1460_v4 = vadd.f32 %v1368_v1, %v1202_v56 }
 0x122   : > { %v858_v24 = vpop.f32.mrf.mxu1  ;;  %v1632_v10 = vpop.f32.mrf.mxu0 }
 0x123   : > { %v4109_v13 = vadd.f32 %v1626_v48, %v1460_v4  ;;  %1160 = vmatmul.f32.gmra.mxu2 %v1025_v60  ;;  %v946_v6 = vadd.f32 %v858_v24, %v4004_v57  ;;  %v1028_v4 = vld [vmem:[#allocation2 + $0x10a] sm:$0xff] }
 0x124   : > { %1418 = vmatmul.f32.gmra.mxu3 %v3836_v18  ;;  %v3164_v18 = vld [vmem:[%s4361_s3 + $0x318] sm:$0xff] }
 0x125   : > { %905 = vmatmul.f32.gmra.mxu1 %v3626_v7  ;;  %1679 = vmatmul.f32.gmra.mxu0 %v3694_v50  ;;  %v3180_v7 = vld [vmem:[%s4361_s3 + $0x398] sm:$0xff] }
 0x126   : > { %v1113_v61 = vpop.f32.mrf.mxu2  ;;  %2132 = vmatpush.msra.mxu2 %v3164_v18  ;;  %2390 = vmatpush.msra.mxu3 %v3180_v7  ;;  %v1287_v7 = vld [vmem:[#allocation2 + $0x128] sm:$0xff] }
 0x127   : > { %v1203_v2 = vadd.f32 %v1113_v61, %v945_v40  ;;  %v1371_v11 = vpop.f32.mrf.mxu3  ;;  %v1545_v61 = vld [vmem:[#allocation2 + $0x129] sm:$0xff] }
 0x129   : > { %v1461_v48 = vadd.f32 %v1371_v11, %v1203_v2 }
 0x12a   : > { %v861_v33 = vpop.f32.mrf.mxu1  ;;  %v1635_v37 = vpop.f32.mrf.mxu0 }
 0x12b   : > { %v4118_v17 = vadd.f32 %v1629_v63, %v1461_v48  ;;  %1163 = vmatmul.f32.gmra.mxu2 %v1026_v52  ;;  %v3148_v63 = vld [vmem:[%s4361_s3 + $0x298] sm:$0xff]  ;;  %v947_v57 = vadd.f32 %v861_v33, %v4018_v43  ;;  %v3163_v43 = vld [vmem:[%s4361_s3 + $0x310] sm:$0xff] }
 0x12c   : > { %1421 = vmatmul.f32.gmra.mxu3 %v3848_v25  ;;  %v1027_v25 = vld [vmem:[#allocation2 + $0xfa] sm:$0xff]  ;;  %1873 = vmatpush.msra.mxu1 %v3148_v63  ;;  %v3147_v33 = vld [vmem:[%s4361_s3 + $0x290] sm:$0xff] }
 0x12d   : > { %908 = vmatmul.f32.gmra.mxu1 %v3659_v28  ;;  %1682 = vmatmul.f32.gmra.mxu0 %v3749_v29  ;;  %v3196_v28 = vld [vmem:[%s4361_s3 + $0x418] sm:$0xff] }
 0x12e   : > { %v1116_v27 = vpop.f32.mrf.mxu2  ;;  %2648 = vmatpush.msra.mxu0 %v3196_v28  ;;  %2133 = vmatpush.msra.mxu2 %v3163_v43  ;;  %v3146_v43 = vld [vmem:[%s4361_s3 + $0x288] sm:$0xff] }
 0x12f   : > { %v1204_v42 = vadd.f32 %v1116_v27, %v946_v6  ;;  %v1374_v46 = vpop.f32.mrf.mxu3  ;;  %1874 = vmatpush.msra.mxu1 %v3147_v33 }
 0x131   : > { %v1462_v39 = vadd.f32 %v1374_v46, %v1204_v42  ;;  %v1546_v42 = vld [vmem:[#allocation2 + $0x139] sm:$0xff]  ;;  %1875 = vmatpush.msra.mxu1 %v3146_v43 }
 0x132   : > { %v864_v21 = vpop.f32.mrf.mxu1  ;;  %v1638_v12 = vpop.f32.mrf.mxu0 }
 0x133   : > { %v4133_v56 = vadd.f32 %v1632_v10, %v1462_v39  ;;  %1166 = vmatmul.f32.gmra.mxu2 %v1027_v25  ;;  %v1286_v10 = vld [vmem:[#allocation2 + $0x120] sm:$0xff]  ;;  %v948_v2 = vadd.f32 %v864_v21, %v4038_v3 }
 0x134   : > { %1424 = vmatmul.f32.gmra.mxu3 %v3866_v38  ;;  %v1030_v21 = vld [vmem:[#allocation2 + $0x122] sm:$0xff] }
 0x135   : > { %911 = vmatmul.f32.gmra.mxu1 %v3694_v50  ;;  %1685 = vmatmul.f32.gmra.mxu0 %v1544_v49  ;;  %v3179_v50 = vld [vmem:[%s4361_s3 + $0x390] sm:$0xff] }
 0x136   : > { %v1119_v1 = vpop.f32.mrf.mxu2  ;;  %2391 = vmatpush.msra.mxu3 %v3179_v50  ;;  %v3273_v50 = vld [vmem:[%s4359_s1] ss:$0 sm:$0xff] }
 0x137   : > { %v1205_v34 = vadd.f32 %v1119_v1, %v947_v57  ;;  %v1377_v60 = vpop.f32.mrf.mxu3  ;;  %v1288_v57 = vld [vmem:[#allocation2 + $0x138] sm:$0xff] }
 0x139   : > { %v1463_v24 = vadd.f32 %v1377_v60, %v1205_v34  ;;  %v1547_v34 = vld [vmem:[#allocation2 + $0x141] sm:$0xff] }
 0x13a   : > { %v867_v53 = vpop.f32.mrf.mxu1  ;;  %v1641_v40 = vpop.f32.mrf.mxu0 }
 0x13b   : > { %v4141_v38 = vadd.f32 %v1635_v37, %v1463_v24  ;;  %1169 = vmatmul.f32.gmra.mxu2 %v1028_v4  ;;  %v1029_v37 = vld [vmem:[#allocation2 + $0x112] sm:$0xff]  ;;  %v949_v3 = vadd.f32 %v867_v53, %v4051_v23  ;;  %v3162_v23 = vld [vmem:[%s4361_s3 + $0x308] sm:$0xff] }
 0x13c   : > { %1427 = vmatmul.f32.gmra.mxu3 %v1286_v10  ;;  %2134 = vmatpush.msra.mxu2 %v3162_v23  ;;  %v266_v10 = vld [vmem:[%s3350_s8 + $0xf0] sm:$0xff] }
 0x13d   : > { %914 = vmatmul.f32.gmra.mxu1 %v3749_v29  ;;  %1688 = vmatmul.f32.gmra.mxu0 %v1545_v61  ;;  %v3195_v29 = vld [vmem:[%s4361_s3 + $0x410] sm:$0xff] }
 0x13e   : > { %v1122_v11 = vpop.f32.mrf.mxu2  ;;  %2649 = vmatpush.msra.mxu0 %v3195_v29  ;;  %v3194_v29 = vld [vmem:[%s4361_s3 + $0x408] sm:$0xff]  ;;  %v1290_v23 = vld [vmem:[#allocation2 + $0x150] sm:$0xff] }
 0x13f   : > { %v1206_v52 = vadd.f32 %v1122_v11, %v948_v2  ;;  %v1380_v48 = vpop.f32.mrf.mxu3  ;;  %v302_v2 = vmul.f32 %v3273_v50, %v266_v10  ;;  %v1031_v11 = vld [vmem:[#allocation2 + $0x12a] sm:$0xff]  ;;  %v1549_v10 = vld [vmem:[#allocation2 + $0x159] sm:$0xff] }
 0x140   : > { %2650 = vmatpush.msra.mxu0 %v3194_v29 }
 0x141   : > { %v1464_v18 = vadd.f32 %v1380_v48, %v1206_v52 }
 0x142   : > { %v870_v6 = vpop.f32.mrf.mxu1  ;;  %v1644_v27 = vpop.f32.mrf.mxu0 }
 0x143   : > { %v4154_v46 = vadd.f32 %v1638_v12, %v1464_v18  ;;  %1172 = vmatmul.f32.gmra.mxu2 %v1029_v37  ;;  %v950_v4 = vadd.f32 %v870_v6, %v3941_v16  ;;  %v1289_v16 = vld [vmem:[#allocation2 + $0x140] sm:$0xff]  ;;  %v1548_v18 = vld [vmem:[#allocation2 + $0x151] sm:$0xff] }
 0x144   : > { %1430 = vmatmul.f32.gmra.mxu3 %v1287_v7 }
 0x145   : > { %917 = vmatmul.f32.gmra.mxu1 %v1544_v49  ;;  %1691 = vmatmul.f32.gmra.mxu0 %v1546_v42  ;;  %v3178_v49 = vld [vmem:[%s4361_s3 + $0x388] sm:$0xff] }
 0x146   : > { %v1125_v63 = vpop.f32.mrf.mxu2  ;;  %2392 = vmatpush.msra.mxu3 %v3178_v49 }
 0x147   : > { %v1207_v25 = vadd.f32 %v1125_v63, %v949_v3  ;;  %v1383_v39 = vpop.f32.mrf.mxu3 }
 0x149   : > { %v1465_v28 = vadd.f32 %v1383_v39, %v1207_v25  ;;  %v267_v25 = vld [vmem:[%s3350_s8 + $0xf8] sm:$0xff] }
 0x14a   : > { %v873_v12 = vpop.f32.mrf.mxu1  ;;  %v1647_v1 = vpop.f32.mrf.mxu0 }
 0x14b   : > { %v4160_v60 = vadd.f32 %v1641_v40, %v1465_v28  ;;  %1175 = vmatmul.f32.gmra.mxu2 %v1030_v21  ;;  %v951_v3 = vadd.f32 %v873_v12, %v3950_v22  ;;  %v303_v21 = vmul.f32 %v3273_v50, %v267_v25  ;;  %v1032_v28 = vld [vmem:[#allocation2 + $0x13a] sm:$0xff] }
 0x14c   : > { %1433 = vmatmul.f32.gmra.mxu3 %v1288_v57 }
 0x14d   : > { %920 = vmatmul.f32.gmra.mxu1 %v1545_v61  ;;  %1694 = vmatmul.f32.gmra.mxu0 %v1547_v34  ;;  %v3274_v61 = vld [vmem:[%s4360_s2] ss:$0 sm:$0xff] }
 0x14e   : > { %v1128_v24 = vpop.f32.mrf.mxu2  ;;  %v4179_v48 = vadd.f32 %v3274_v61, %v302_v2  ;;  %v4191_v49 = vadd.f32 %v3274_v61, %v303_v21  ;;  %v3145_v2 = vld [vmem:[%s4361_s3 + $0x280] sm:$0xff] }
 0x14f   : > { %v1208_v53 = vadd.f32 %v1128_v24, %v950_v4  ;;  %v1386_v40 = vpop.f32.mrf.mxu3  ;;  %1876 = vmatpush.msra.mxu1 %v3145_v2 }
 0x150   : > { %v370_v6 = vmax.f32 %v4179_v48, 0.0  ;;  %v371_v12 = vmax.f32 %v4191_v49, 0.0 }
 0x151   : > { %v1466_v52 = vadd.f32 %v1386_v40, %v1208_v53  ;;  %v3177_v53 = vld [vmem:[%s4361_s3 + $0x380] sm:$0xff] }
 0x152   : > { %v876_v33 = vpop.f32.mrf.mxu1  ;;  %v1650_v37 = vpop.f32.mrf.mxu0  ;;  %457 = vst [vmem:[#allocation2 + $0x181] sm:$0xff] %v370_v6  ;;  %2393 = vmatpush.msra.mxu3 %v3177_v53 }
 0x153   : > { %v4181_v7 = vadd.f32 %v1644_v27, %v1466_v52  ;;  %1178 = vmatmul.f32.gmra.mxu2 %v1031_v11  ;;  %v952_v40 = vadd.f32 %v876_v33, %v3968_v36  ;;  %458 = vst [vmem:[#allocation2 + $0x189] sm:$0xff] %v371_v12  ;;  %v1033_v11 = vld [vmem:[#allocation2 + $0x142] sm:$0xff] }
 0x154   : > { %1436 = vmatmul.f32.gmra.mxu3 %v1289_v16  ;;  %v1291_v16 = vld [vmem:[#allocation2 + $0x158] sm:$0xff]  ;;  %v1550_v36 = vld [vmem:[#allocation2 + $0x169] sm:$0xff]  ;;  %v3193_v33 = vld [vmem:[%s4361_s3 + $0x400] sm:$0xff] }
 0x155   : > { %923 = vmatmul.f32.gmra.mxu1 %v1546_v42  ;;  %1697 = vmatmul.f32.gmra.mxu0 %v1548_v18  ;;  %v3161_v42 = vld [vmem:[%s4361_s3 + $0x300] sm:$0xff] }
 0x156   : > { %v1131_v63 = vpop.f32.mrf.mxu2  ;;  %2135 = vmatpush.msra.mxu2 %v3161_v42  ;;  %2651 = vmatpush.msra.mxu0 %v3193_v33 }
 0x157   : > { %v1209_v27 = vadd.f32 %v1131_v63, %v951_v3  ;;  %v1389_v39 = vpop.f32.mrf.mxu3 }
 0x159   : > { %v1467_v57 = vadd.f32 %v1389_v39, %v1209_v27  ;;  %v1034_v39 = vld [vmem:[#allocation2 + $0x152] sm:$0xff]  ;;  %v1294_v33 = vld [vmem:[#allocation2 + $0x180] sm:$0xff] }
 0x15a   : > { %v879_v4 = vpop.f32.mrf.mxu1  ;;  %v1653_v24 = vpop.f32.mrf.mxu0 }
 0x15b   : > { %v4193_v22 = vadd.f32 %v1647_v1, %v1467_v57  ;;  %1181 = vmatmul.f32.gmra.mxu2 %v1032_v28  ;;  %v953_v3 = vadd.f32 %v879_v4, %v3982_v47  ;;  %v1292_v28 = vld [vmem:[#allocation2 + $0x168] sm:$0xff] }
 0x15c   : > { %1439 = vmatmul.f32.gmra.mxu3 %v1290_v23  ;;  %v1551_v23 = vld [vmem:[#allocation2 + $0x171] sm:$0xff] }
 0x15d   : > { %926 = vmatmul.f32.gmra.mxu1 %v1547_v34  ;;  %1700 = vmatmul.f32.gmra.mxu0 %v1549_v10 }
 0x15e   : > { %v1134_v1 = vpop.f32.mrf.mxu2 }
 0x15f   : > { %v1210_v43 = vadd.f32 %v1134_v1, %v952_v40  ;;  %v1392_v50 = vpop.f32.mrf.mxu3  ;;  %v1035_v40 = vld [vmem:[#allocation2 + $0x15a] sm:$0xff] }
 0x161   : > { %v1468_v52 = vadd.f32 %v1392_v50, %v1210_v43  ;;  %v1293_v43 = vld [vmem:[#allocation2 + $0x170] sm:$0xff] }
 0x162   : > { %v882_v61 = vpop.f32.mrf.mxu1  ;;  %v1656_v29 = vpop.f32.mrf.mxu0 }
 0x163   : > { %v4208_v34 = vadd.f32 %v1650_v37, %v1468_v52  ;;  %1184 = vmatmul.f32.gmra.mxu2 %v1033_v11  ;;  %v954_v53 = vadd.f32 %v882_v61, %v4002_v45 }
 0x164   : > { %1442 = vmatmul.f32.gmra.mxu3 %v1291_v16  ;;  %v1036_v16 = vld [vmem:[#allocation2 + $0x16a] sm:$0xff] }
 0x165   : > { %929 = vmatmul.f32.gmra.mxu1 %v1548_v18  ;;  %1703 = vmatmul.f32.gmra.mxu0 %v1550_v36 }
 0x166   : > { %v1137_v63 = vpop.f32.mrf.mxu2 }
 0x167   : > { %v1211_v25 = vadd.f32 %v1137_v63, %v953_v3  ;;  %v1395_v27 = vpop.f32.mrf.mxu3 }
 0x169   : > { %v1469_v21 = vadd.f32 %v1395_v27, %v1211_v25 }
 0x16a   : > { %v885_v57 = vpop.f32.mrf.mxu1  ;;  %v1659_v37 = vpop.f32.mrf.mxu0 }
 0x16b   : > { %v4214_v42 = vadd.f32 %v1653_v24, %v1469_v21  ;;  %1187 = vmatmul.f32.gmra.mxu2 %v1034_v39  ;;  %v955_v24 = vadd.f32 %v885_v57, %v4016_v59  ;;  %v1295_v39 = vld [vmem:[#allocation2 + $0x188] sm:$0xff] }
 0x16c   : > { %1445 = vmatmul.f32.gmra.mxu3 %v1292_v28  ;;  %v1780_v28 = vld [vmem:[#allocation2 + $0x1a] sm:$0xff] }
 0x16d   : > { %932 = vmatmul.f32.gmra.mxu1 %v1549_v10  ;;  %1706 = vmatmul.f32.gmra.mxu0 %v1551_v23 }
 0x16e   : > { %v1140_v47 = vpop.f32.mrf.mxu2 }
 0x16f   : > { %v1212_v18 = vadd.f32 %v1140_v47, %v954_v53  ;;  %v1398_v4 = vpop.f32.mrf.mxu3  ;;  %v2555_v53 = vld [vmem:[#allocation2 + $0x32] sm:$0xff] }
 0x170   : > { %v2039_v47 = vld [vmem:[#allocation2 + $0x30] sm:$0xff] }
 0x171   : > { %v1470_v1 = vadd.f32 %v1398_v4, %v1212_v18  ;;  %v2297_v4 = vld [vmem:[#allocation2 + $0x31] sm:$0xff] }
 0x172   : > { %v888_v50 = vpop.f32.mrf.mxu1  ;;  %v1662_v2 = vpop.f32.mrf.mxu0 }
 0x173   : > { %v4217_v11 = vadd.f32 %v1656_v29, %v1470_v1  ;;  %1190 = vmatmul.f32.gmra.mxu2 %v1035_v40  ;;  %v956_v29 = vadd.f32 %v888_v50, %v4036_v20  ;;  %v1781_v1 = vld [vmem:[#allocation2 + $0x22] sm:$0xff]  ;;  %v2556_v50 = vld [vmem:[#allocation2 + $0x3a] sm:$0xff] }
 0x174   : > { %1448 = vmatmul.f32.gmra.mxu3 %v1293_v43 }
 0x175   : > { %935 = vmatmul.f32.gmra.mxu1 %v1550_v36  ;;  %1709 = vmatmul.f32.gmra.mxu0 %v370_v6  ;;  %v1037_v36 = vld [vmem:[#allocation2 + $0x172] sm:$0xff] }
 0x176   : > { %v1143_v45 = vpop.f32.mrf.mxu2 }
 0x177   : > { %v1213_v10 = vadd.f32 %v1143_v45, %v955_v24  ;;  %v1401_v52 = vpop.f32.mrf.mxu3 }
 0x179   : > { %v1471_v61 = vadd.f32 %v1401_v52, %v1213_v10  ;;  %v2040_v52 = vld [vmem:[#allocation2 + $0x38] sm:$0xff] }
 0x17a   : > { %v891_v3 = vpop.f32.mrf.mxu1  ;;  %v1665_v63 = vpop.f32.mrf.mxu0 }
 0x17b   : > { %v4222_v25 = vadd.f32 %v1659_v37, %v1471_v61  ;;  %1193 = vmatmul.f32.gmra.mxu2 %v1036_v16  ;;  %v957_v20 = vadd.f32 %v891_v3, %v4049_v32  ;;  %v2298_v61 = vld [vmem:[#allocation2 + $0x39] sm:$0xff] }
 0x17c   : > { %1451 = vmatmul.f32.gmra.mxu3 %v1294_v33 }
 0x17d   : > { %938 = vmatmul.f32.gmra.mxu1 %v1551_v23  ;;  %1712 = vmatmul.f32.gmra.mxu0 %v371_v12 }
 0x17e   : > { %v1146_v59 = vpop.f32.mrf.mxu2 }
 0x17f   : > { %v1214_v48 = vadd.f32 %v1146_v59, %v956_v29  ;;  %v1404_v6 = vpop.f32.mrf.mxu3  ;;  %v2557_v29 = vld [vmem:[#allocation2 + $0x4a] sm:$0xff] }
 0x181   : > { %v1472_v27 = vadd.f32 %v1404_v6, %v1214_v48 }
 0x182   : > { %v894_v21 = vpop.f32.mrf.mxu1  ;;  %v1668_v57 = vpop.f32.mrf.mxu0 }
 0x183   : > { %v4227_v37 = vadd.f32 %v1662_v2, %v1472_v27  ;;  %1196 = vmatmul.f32.gmra.mxu2 %v1037_v36  ;;  %v958_v2 = vadd.f32 %v894_v21, %v3961_v30  ;;  %v2041_v36 = vld [vmem:[#allocation2 + $0x48] sm:$0xff] }
 0x184   : > { %1454 = vmatmul.f32.gmra.mxu3 %v1295_v39  ;;  %v2299_v39 = vld [vmem:[#allocation2 + $0x49] sm:$0xff] }
 0x185   : > { %1877 = vmatmul.f32.vlgmr.msra.gmra.mxu1 %v1780_v28  ;;  %2652 = vmatmul.f32.vlgmr.msra.gmra.mxu0 %v2555_v53 }
 0x186   : > { %v1149_v49 = vpop.f32.mrf.mxu2 }
 0x187   : > { %v1215_v12 = vadd.f32 %v1149_v49, %v957_v20  ;;  %v1407_v23 = vpop.f32.mrf.mxu3  ;;  %v2558_v20 = vld [vmem:[#allocation2 + $0x52] sm:$0xff] }
 0x189   : > { %v1473_v18 = vadd.f32 %v1407_v23, %v1215_v12  ;;  %v2042_v23 = vld [vmem:[#allocation2 + $0x50] sm:$0xff] }
 0x18a   : > { %v897_v40 = vpop.f32.mrf.mxu1  ;;  %v1671_v43 = vpop.f32.mrf.mxu0 }
 0x18b   : > { %v4230_v24 = vadd.f32 %v1665_v63, %v1473_v18  ;;  %2136 = vmatmul.f32.vlgmr.msra.gmra.mxu2 %v2039_v47  ;;  %v959_v63 = vadd.f32 %v897_v40, %v3978_v41  ;;  %v2300_v18 = vld [vmem:[#allocation2 + $0x51] sm:$0xff] }
 0x18c   : > { %2394 = vmatmul.f32.vlgmr.msra.gmra.mxu3 %v2297_v4 }
 0x18d   : > { %1880 = vmatmul.f32.gmra.mxu1 %v1781_v1  ;;  %2655 = vmatmul.f32.gmra.mxu0 %v2556_v50  ;;  %v2559_v1 = vld [vmem:[#allocation2 + $0x62] sm:$0xff] }
 0x18e   : > { %v1152_v32 = vpop.f32.mrf.mxu2 }
 0x18f   : > { %v1216_v45 = vadd.f32 %v1152_v32, %v958_v2  ;;  %v1410_v10 = vpop.f32.mrf.mxu3 }
 0x191   : > { %v1474_v16 = vadd.f32 %v1410_v10, %v1216_v45  ;;  %v2043_v45 = vld [vmem:[#allocation2 + $0x60] sm:$0xff] }
 0x192   : > { %v900_v33 = vpop.f32.mrf.mxu1  ;;  %v1674_v3 = vpop.f32.mrf.mxu0 }
 0x193   : > { %v4233_v59 = vadd.f32 %v1668_v57, %v1474_v16  ;;  %2139 = vmatmul.f32.gmra.mxu2 %v2040_v52  ;;  %v960_v57 = vadd.f32 %v900_v33, %v3995_v8  ;;  %v2301_v52 = vld [vmem:[#allocation2 + $0x61] sm:$0xff]  ;;  %v2560_v33 = vld [vmem:[#allocation2 + $0x6a] sm:$0xff] }
 0x194   : > { %2397 = vmatmul.f32.gmra.mxu3 %v2298_v61 }
 0x195   : > { %1883 = vmatmul.f32.gmra.mxu1 %v2555_v53  ;;  %2658 = vmatmul.f32.gmra.mxu0 %v2557_v29 }
 0x196   : > { %v1155_v30 = vpop.f32.mrf.mxu2 }
 0x197   : > { %v1217_v48 = vadd.f32 %v1155_v30, %v959_v63  ;;  %v1413_v6 = vpop.f32.mrf.mxu3 }
 0x199   : > { %v1475_v27 = vadd.f32 %v1413_v6, %v1217_v48  ;;  %v2044_v48 = vld [vmem:[#allocation2 + $0x68] sm:$0xff] }
 0x19a   : > { %v903_v21 = vpop.f32.mrf.mxu1  ;;  %v1677_v28 = vpop.f32.mrf.mxu0 }
 0x19b   : > { %v4236_v49 = vadd.f32 %v1671_v43, %v1475_v27  ;;  %2142 = vmatmul.f32.gmra.mxu2 %v2041_v36  ;;  %v961_v43 = vadd.f32 %v903_v21, %v4012_v58  ;;  %v2302_v36 = vld [vmem:[#allocation2 + $0x69] sm:$0xff]  ;;  %v2561_v21 = vld [vmem:[#allocation2 + $0x7a] sm:$0xff] }
 0x19c   : > { %2400 = vmatmul.f32.gmra.mxu3 %v2299_v39 }
 0x19d   : > { %1886 = vmatmul.f32.gmra.mxu1 %v2556_v50  ;;  %2661 = vmatmul.f32.gmra.mxu0 %v2558_v20 }
 0x19e   : > { %v1158_v41 = vpop.f32.mrf.mxu2 }
 0x19f   : > { %v1218_v53 = vadd.f32 %v1158_v41, %v960_v57  ;;  %v1416_v12 = vpop.f32.mrf.mxu3 }
 0x1a1   : > { %v1476_v47 = vadd.f32 %v1416_v12, %v1218_v53  ;;  %v2045_v53 = vld [vmem:[#allocation2 + $0x78] sm:$0xff] }
 0x1a2   : > { %v906_v4 = vpop.f32.mrf.mxu1  ;;  %v1680_v40 = vpop.f32.mrf.mxu0 }
 0x1a3   : > { %v4239_v2 = vadd.f32 %v1674_v3, %v1476_v47  ;;  %2145 = vmatmul.f32.gmra.mxu2 %v2042_v23  ;;  %v962_v3 = vadd.f32 %v906_v4, %v4029_v62  ;;  %v2303_v23 = vld [vmem:[#allocation2 + $0x79] sm:$0xff]  ;;  %v2562_v4 = vld [vmem:[#allocation2 + $0x82] sm:$0xff] }
 0x1a4   : > { %2403 = vmatmul.f32.gmra.mxu3 %v2300_v18 }
 0x1a5   : > { %1889 = vmatmul.f32.gmra.mxu1 %v2557_v29  ;;  %2664 = vmatmul.f32.gmra.mxu0 %v2559_v1 }
 0x1a6   : > { %v1161_v8 = vpop.f32.mrf.mxu2 }
 0x1a7   : > { %v1219_v50 = vadd.f32 %v1161_v8, %v961_v43  ;;  %v1419_v32 = vpop.f32.mrf.mxu3 }
 0x1a9   : > { %v1477_v10 = vadd.f32 %v1419_v32, %v1219_v50  ;;  %v2046_v50 = vld [vmem:[#allocation2 + $0x80] sm:$0xff] }
 0x1aa   : > { %v909_v16 = vpop.f32.mrf.mxu1  ;;  %v1683_v61 = vpop.f32.mrf.mxu0 }
 0x1ab   : > { %v4242_v63 = vadd.f32 %v1677_v28, %v1477_v10  ;;  %2148 = vmatmul.f32.gmra.mxu2 %v2043_v45  ;;  %v963_v28 = vadd.f32 %v909_v16, %v4045_v54  ;;  %v2304_v45 = vld [vmem:[#allocation2 + $0x81] sm:$0xff]  ;;  %v2563_v16 = vld [vmem:[#allocation2 + $0x92] sm:$0xff] }
 0x1ac   : > { %2406 = vmatmul.f32.gmra.mxu3 %v2301_v52 }
 0x1ad   : > { %1892 = vmatmul.f32.gmra.mxu1 %v2558_v20  ;;  %2667 = vmatmul.f32.gmra.mxu0 %v2560_v33 }
 0x1ae   : > { %v1164_v58 = vpop.f32.mrf.mxu2 }
 0x1af   : > { %v1220_v29 = vadd.f32 %v1164_v58, %v962_v3  ;;  %v1422_v30 = vpop.f32.mrf.mxu3 }
 0x1b1   : > { %v1478_v6 = vadd.f32 %v1422_v30, %v1220_v29  ;;  %v2047_v29 = vld [vmem:[#allocation2 + $0x90] sm:$0xff] }
 0x1b2   : > { %v912_v27 = vpop.f32.mrf.mxu1  ;;  %v1686_v39 = vpop.f32.mrf.mxu0 }
 0x1b3   : > { %v4245_v57 = vadd.f32 %v1680_v40, %v1478_v6  ;;  %2151 = vmatmul.f32.gmra.mxu2 %v2044_v48  ;;  %v964_v40 = vadd.f32 %v912_v27, %v4060_v19  ;;  %v2305_v48 = vld [vmem:[#allocation2 + $0x91] sm:$0xff]  ;;  %v2564_v27 = vld [vmem:[#allocation2 + $0x9a] sm:$0xff] }
 0x1b4   : > { %2409 = vmatmul.f32.gmra.mxu3 %v2302_v36 }
 0x1b5   : > { %1895 = vmatmul.f32.gmra.mxu1 %v2559_v1  ;;  %2670 = vmatmul.f32.gmra.mxu0 %v2561_v21 }
 0x1b6   : > { %v1167_v62 = vpop.f32.mrf.mxu2 }
 0x1b7   : > { %v1221_v20 = vadd.f32 %v1167_v62, %v963_v28  ;;  %v1425_v41 = vpop.f32.mrf.mxu3 }
 0x1b9   : > { %v1479_v12 = vadd.f32 %v1425_v41, %v1221_v20  ;;  %v2048_v20 = vld [vmem:[#allocation2 + $0x98] sm:$0xff] }
 0x1ba   : > { %v915_v47 = vpop.f32.mrf.mxu1  ;;  %v1689_v18 = vpop.f32.mrf.mxu0 }
 0x1bb   : > { %v4248_v43 = vadd.f32 %v1683_v61, %v1479_v12  ;;  %2154 = vmatmul.f32.gmra.mxu2 %v2045_v53  ;;  %v965_v61 = vadd.f32 %v915_v47, %v4070_v31  ;;  %v2306_v53 = vld [vmem:[#allocation2 + $0x99] sm:$0xff]  ;;  %v2565_v47 = vld [vmem:[#allocation2 + $0xaa] sm:$0xff] }
 0x1bc   : > { %2412 = vmatmul.f32.gmra.mxu3 %v2303_v23 }
 0x1bd   : > { %1898 = vmatmul.f32.gmra.mxu1 %v2560_v33  ;;  %2673 = vmatmul.f32.gmra.mxu0 %v2562_v4 }
 0x1be   : > { %v1170_v54 = vpop.f32.mrf.mxu2 }
 0x1bf   : > { %v1222_v1 = vadd.f32 %v1170_v54, %v964_v40  ;;  %v1428_v8 = vpop.f32.mrf.mxu3 }
 0x1c1   : > { %v1480_v32 = vadd.f32 %v1428_v8, %v1222_v1  ;;  %v2049_v1 = vld [vmem:[#allocation2 + $0xa8] sm:$0xff] }
 0x1c2   : > { %v918_v10 = vpop.f32.mrf.mxu1  ;;  %v1692_v52 = vpop.f32.mrf.mxu0 }
 0x1c3   : > { %v4251_v3 = vadd.f32 %v1686_v39, %v1480_v32  ;;  %2157 = vmatmul.f32.gmra.mxu2 %v2046_v50  ;;  %v966_v39 = vadd.f32 %v918_v10, %v3966_v35  ;;  %v2307_v50 = vld [vmem:[#allocation2 + $0xa9] sm:$0xff]  ;;  %v2566_v10 = vld [vmem:[#allocation2 + $0xb2] sm:$0xff] }
 0x1c4   : > { %2415 = vmatmul.f32.gmra.mxu3 %v2304_v45 }
 0x1c5   : > { %1901 = vmatmul.f32.gmra.mxu1 %v2561_v21  ;;  %2676 = vmatmul.f32.gmra.mxu0 %v2563_v16 }
 0x1c6   : > { %v1173_v19 = vpop.f32.mrf.mxu2 }
 0x1c7   : > { %v1223_v33 = vadd.f32 %v1173_v19, %v965_v61  ;;  %v1431_v58 = vpop.f32.mrf.mxu3 }
 0x1c9   : > { %v1481_v30 = vadd.f32 %v1431_v58, %v1223_v33  ;;  %v2050_v33 = vld [vmem:[#allocation2 + $0xb0] sm:$0xff] }
 0x1ca   : > { %v921_v6 = vpop.f32.mrf.mxu1  ;;  %v1695_v36 = vpop.f32.mrf.mxu0 }
 0x1cb   : > { %v4254_v28 = vadd.f32 %v1689_v18, %v1481_v30  ;;  %2160 = vmatmul.f32.gmra.mxu2 %v2047_v29  ;;  %v967_v18 = vadd.f32 %v921_v6, %v3980_v44  ;;  %v2308_v29 = vld [vmem:[#allocation2 + $0xb1] sm:$0xff]  ;;  %v2567_v6 = vld [vmem:[#allocation2 + $0xc2] sm:$0xff] }
 0x1cc   : > { %2418 = vmatmul.f32.gmra.mxu3 %v2305_v48 }
 0x1cd   : > { %1904 = vmatmul.f32.gmra.mxu1 %v2562_v4  ;;  %2679 = vmatmul.f32.gmra.mxu0 %v2564_v27 }
 0x1ce   : > { %v1176_v31 = vpop.f32.mrf.mxu2 }
 0x1cf   : > { %v1224_v21 = vadd.f32 %v1176_v31, %v966_v39  ;;  %v1434_v62 = vpop.f32.mrf.mxu3 }
 0x1d1   : > { %v1482_v41 = vadd.f32 %v1434_v62, %v1224_v21  ;;  %v2051_v21 = vld [vmem:[#allocation2 + $0xc0] sm:$0xff] }
 0x1d2   : > { %v924_v12 = vpop.f32.mrf.mxu1  ;;  %v1698_v23 = vpop.f32.mrf.mxu0 }
 0x1d3   : > { %v4257_v40 = vadd.f32 %v1692_v52, %v1482_v41  ;;  %2163 = vmatmul.f32.gmra.mxu2 %v2048_v20  ;;  %v968_v52 = vadd.f32 %v924_v12, %v4000_v55  ;;  %v2309_v20 = vld [vmem:[#allocation2 + $0xc1] sm:$0xff]  ;;  %v2568_v12 = vld [vmem:[#allocation2 + $0xca] sm:$0xff] }
 0x1d4   : > { %2421 = vmatmul.f32.gmra.mxu3 %v2306_v53 }
 0x1d5   : > { %1907 = vmatmul.f32.gmra.mxu1 %v2563_v16  ;;  %2682 = vmatmul.f32.gmra.mxu0 %v2565_v47 }
 0x1d6   : > { %v1179_v35 = vpop.f32.mrf.mxu2 }
 0x1d7   : > { %v1225_v4 = vadd.f32 %v1179_v35, %v967_v18  ;;  %v1437_v54 = vpop.f32.mrf.mxu3 }
 0x1d9   : > { %v1483_v8 = vadd.f32 %v1437_v54, %v1225_v4  ;;  %v2052_v4 = vld [vmem:[#allocation2 + $0xc8] sm:$0xff] }
 0x1da   : > { %v927_v32 = vpop.f32.mrf.mxu1  ;;  %v1701_v45 = vpop.f32.mrf.mxu0 }
 0x1db   : > { %v4260_v61 = vadd.f32 %v1695_v36, %v1483_v8  ;;  %2166 = vmatmul.f32.gmra.mxu2 %v2049_v1  ;;  %v969_v36 = vadd.f32 %v927_v32, %v4014_v15  ;;  %v2310_v1 = vld [vmem:[#allocation2 + $0xc9] sm:$0xff]  ;;  %v2569_v32 = vld [vmem:[#allocation2 + $0xda] sm:$0xff] }
 0x1dc   : > { %2424 = vmatmul.f32.gmra.mxu3 %v2307_v50 }
 0x1dd   : > { %1910 = vmatmul.f32.gmra.mxu1 %v2564_v27  ;;  %2685 = vmatmul.f32.gmra.mxu0 %v2566_v10 }
 0x1de   : > { %v1182_v44 = vpop.f32.mrf.mxu2 }
 0x1df   : > { %v1226_v16 = vadd.f32 %v1182_v44, %v968_v52  ;;  %v1440_v19 = vpop.f32.mrf.mxu3 }
 0x1e1   : > { %v1484_v58 = vadd.f32 %v1440_v19, %v1226_v16  ;;  %v2053_v16 = vld [vmem:[#allocation2 + $0xd8] sm:$0xff] }
 0x1e2   : > { %v930_v30 = vpop.f32.mrf.mxu1  ;;  %v1704_v48 = vpop.f32.mrf.mxu0 }
 0x1e3   : > { %v4263_v39 = vadd.f32 %v1698_v23, %v1484_v58  ;;  %2169 = vmatmul.f32.gmra.mxu2 %v2050_v33  ;;  %v970_v23 = vadd.f32 %v930_v30, %v4031_v14  ;;  %v2311_v33 = vld [vmem:[#allocation2 + $0xd9] sm:$0xff]  ;;  %v2570_v30 = vld [vmem:[#allocation2 + $0xe2] sm:$0xff] }
 0x1e4   : > { %2427 = vmatmul.f32.gmra.mxu3 %v2308_v29 }
 0x1e5   : > { %1913 = vmatmul.f32.gmra.mxu1 %v2565_v47  ;;  %2688 = vmatmul.f32.gmra.mxu0 %v2567_v6 }
 0x1e6   : > { %v1185_v55 = vpop.f32.mrf.mxu2 }
 0x1e7   : > { %v1227_v27 = vadd.f32 %v1185_v55, %v969_v36  ;;  %v1443_v31 = vpop.f32.mrf.mxu3 }
 0x1e9   : > { %v1485_v62 = vadd.f32 %v1443_v31, %v1227_v27  ;;  %v2054_v27 = vld [vmem:[#allocation2 + $0xe0] sm:$0xff] }
 0x1ea   : > { %v933_v41 = vpop.f32.mrf.mxu1  ;;  %v1707_v53 = vpop.f32.mrf.mxu0 }
 0x1eb   : > { %v4266_v18 = vadd.f32 %v1701_v45, %v1485_v62  ;;  %2172 = vmatmul.f32.gmra.mxu2 %v2051_v21  ;;  %v971_v45 = vadd.f32 %v933_v41, %v4047_v9  ;;  %v2312_v21 = vld [vmem:[#allocation2 + $0xe1] sm:$0xff]  ;;  %v2571_v41 = vld [vmem:[#allocation2 + $0xf2] sm:$0xff] }
 0x1ec   : > { %2430 = vmatmul.f32.gmra.mxu3 %v2309_v20 }
 0x1ed   : > { %1916 = vmatmul.f32.gmra.mxu1 %v2566_v10  ;;  %2691 = vmatmul.f32.gmra.mxu0 %v2568_v12 }
 0x1ee   : > { %v1188_v15 = vpop.f32.mrf.mxu2 }
 0x1ef   : > { %v1228_v47 = vadd.f32 %v1188_v15, %v970_v23  ;;  %v1446_v35 = vpop.f32.mrf.mxu3 }
 0x1f1   : > { %v1486_v54 = vadd.f32 %v1446_v35, %v1228_v47  ;;  %v2055_v47 = vld [vmem:[#allocation2 + $0xf0] sm:$0xff] }
 0x1f2   : > { %v936_v8 = vpop.f32.mrf.mxu1  ;;  %v1710_v50 = vpop.f32.mrf.mxu0 }
 0x1f3   : > { %v4269_v52 = vadd.f32 %v1704_v48, %v1486_v54  ;;  %2175 = vmatmul.f32.gmra.mxu2 %v2052_v4  ;;  %v972_v48 = vadd.f32 %v936_v8, %v4062_v26  ;;  %v2313_v4 = vld [vmem:[#allocation2 + $0xf1] sm:$0xff]  ;;  %v2572_v8 = vld [vmem:[#allocation2 + $0xfa] sm:$0xff] }
 0x1f4   : > { %2433 = vmatmul.f32.gmra.mxu3 %v2310_v1 }
 0x1f5   : > { %1919 = vmatmul.f32.gmra.mxu1 %v2567_v6  ;;  %2694 = vmatmul.f32.gmra.mxu0 %v2569_v32 }
 0x1f6   : > { %v1191_v14 = vpop.f32.mrf.mxu2 }
 0x1f7   : > { %v1229_v10 = vadd.f32 %v1191_v14, %v971_v45  ;;  %v1449_v44 = vpop.f32.mrf.mxu3 }
 0x1f9   : > { %v1487_v19 = vadd.f32 %v1449_v44, %v1229_v10  ;;  %v2056_v10 = vld [vmem:[#allocation2 + $0xf8] sm:$0xff] }
 0x1fa   : > { %v939_v58 = vpop.f32.mrf.mxu1  ;;  %v1713_v29 = vpop.f32.mrf.mxu0 }
 0x1fb   : > { %v4272_v36 = vadd.f32 %v1707_v53, %v1487_v19  ;;  %2178 = vmatmul.f32.gmra.mxu2 %v2053_v16  ;;  %v973_v53 = vadd.f32 %v939_v58, %v4072_v51  ;;  %v2314_v16 = vld [vmem:[#allocation2 + $0xf9] sm:$0xff]  ;;  %v2573_v58 = vld [vmem:[#allocation2 + $0x10a] sm:$0xff] }
 0x1fc   : > { %2436 = vmatmul.f32.gmra.mxu3 %v2311_v33 }
 0x1fd   : > { %1922 = vmatmul.f32.gmra.mxu1 %v2568_v12  ;;  %2697 = vmatmul.f32.gmra.mxu0 %v2570_v30 }
 0x1fe   : > { %v1194_v9 = vpop.f32.mrf.mxu2 }
 0x1ff   : > { %v1230_v6 = vadd.f32 %v1194_v9, %v972_v48  ;;  %v1452_v55 = vpop.f32.mrf.mxu3 }
 0x201   : > { %v1488_v31 = vadd.f32 %v1452_v55, %v1230_v6  ;;  %v2057_v6 = vld [vmem:[#allocation2 + $0x108] sm:$0xff] }
 0x202   : > { %v1878_v62 = vpop.f32.mrf.mxu1  ;;  %v2653_v20 = vpop.f32.mrf.mxu0 }
 0x203   : > { %v4275_v23 = vadd.f32 %v1710_v50, %v1488_v31  ;;  %2181 = vmatmul.f32.gmra.mxu2 %v2054_v27  ;;  %v1974_v50 = vadd.f32 %v1878_v62, %v4086_v5  ;;  %v2315_v27 = vld [vmem:[#allocation2 + $0x109] sm:$0xff]  ;;  %v2574_v62 = vld [vmem:[#allocation2 + $0x112] sm:$0xff] }
 0x204   : > { %2439 = vmatmul.f32.gmra.mxu3 %v2312_v21 }
 0x205   : > { %1925 = vmatmul.f32.gmra.mxu1 %v2569_v32  ;;  %2700 = vmatmul.f32.gmra.mxu0 %v2571_v41 }
 0x206   : > { %v1197_v26 = vpop.f32.mrf.mxu2 }
 0x207   : > { %v1231_v12 = vadd.f32 %v1197_v26, %v973_v53  ;;  %v1455_v15 = vpop.f32.mrf.mxu3 }
 0x209   : > { %v1489_v35 = vadd.f32 %v1455_v15, %v1231_v12 }
 0x20a   : > { %v1881_v54 = vpop.f32.mrf.mxu1  ;;  %v2656_v1 = vpop.f32.mrf.mxu0 }
 0x20b   : > { %v4278_v45 = vadd.f32 %v1713_v29, %v1489_v35  ;;  %2184 = vmatmul.f32.gmra.mxu2 %v2055_v47  ;;  %v1975_v5 = vadd.f32 %v1881_v54, %v4094_v0 }
 0x20c   : > { %2442 = vmatmul.f32.gmra.mxu3 %v2313_v4  ;;  %v2058_v4 = vld [vmem:[#allocation2 + $0x110] sm:$0xff] }
 0x20d   : > { %1928 = vmatmul.f32.gmra.mxu1 %v2570_v30  ;;  %2703 = vmatmul.f32.gmra.mxu0 %v2572_v8 }
 0x20e   : > { %v2137_v51 = vpop.f32.mrf.mxu2 }
 0x20f   : > { %v2233_v32 = vadd.f32 %v2137_v51, %v1974_v50  ;;  %v2395_v14 = vpop.f32.mrf.mxu3  ;;  %v2316_v50 = vld [vmem:[#allocation2 + $0x111] sm:$0xff] }
 0x211   : > { %v2491_v44 = vadd.f32 %v2395_v14, %v2233_v32  ;;  %v2575_v32 = vld [vmem:[#allocation2 + $0x122] sm:$0xff] }
 0x212   : > { %v1884_v19 = vpop.f32.mrf.mxu1  ;;  %v2659_v33 = vpop.f32.mrf.mxu0 }
 0x213   : > { %v2749_v29 = vadd.f32 %v2653_v20, %v2491_v44  ;;  %2187 = vmatmul.f32.gmra.mxu2 %v2056_v10  ;;  %v1976_v20 = vadd.f32 %v1884_v19, %v4109_v13 }
 0x214   : > { %2445 = vmatmul.f32.gmra.mxu3 %v2314_v16 }
 0x215   : > { %2845 = vst [vmem:[%s4286_s25] sm:$0xff] %v2749_v29  ;;  %1931 = vmatmul.f32.gmra.mxu1 %v2571_v41  ;;  %2706 = vmatmul.f32.gmra.mxu0 %v2573_v58  ;;  %v2915_v26 = vmul.f32 %v2749_v29, %v2749_v29 }
 0x216   : > { %v2140_v30 = vpop.f32.mrf.mxu2 }
 0x217   : > { %v2234_v48 = vadd.f32 %v2140_v30, %v1975_v5  ;;  %v2398_v9 = vpop.f32.mrf.mxu3  ;;  %v2059_v5 = vld [vmem:[#allocation2 + $0x120] sm:$0xff] }
 0x219   : > { %v2492_v55 = vadd.f32 %v2398_v9, %v2234_v48  ;;  %v2317_v48 = vld [vmem:[#allocation2 + $0x121] sm:$0xff] }
 0x21a   : > { %v1887_v31 = vpop.f32.mrf.mxu1  ;;  %v2662_v21 = vpop.f32.mrf.mxu0 }
 0x21b   : > { %v2750_v53 = vadd.f32 %v2656_v1, %v2492_v55  ;;  %2190 = vmatmul.f32.gmra.mxu2 %v2057_v6  ;;  %v1977_v13 = vadd.f32 %v1887_v31, %v4118_v17 }
 0x21c   : > { %2448 = vmatmul.f32.gmra.mxu3 %v2315_v27 }
 0x21d   : > { %2846 = vst [vmem:[%s4286_s25 + $0x8] sm:$0xff] %v2750_v53  ;;  %v2877_v0 = vadd.f32 %v2750_v53, %v2749_v29  ;;  %v2916_v41 = vmul.f32 %v2750_v53, %v2750_v53  ;;  %1934 = vmatmul.f32.gmra.mxu1 %v2572_v8  ;;  %2709 = vmatmul.f32.gmra.mxu0 %v2574_v62 }
 0x21e   : > { %v2143_v12 = vpop.f32.mrf.mxu2 }
 0x21f   : > { %v2947_v15 = vadd.f32 %v2916_v41, %v2915_v26  ;;  %v2235_v47 = vadd.f32 %v2143_v12, %v1976_v20  ;;  %v2401_v35 = vpop.f32.mrf.mxu3  ;;  %v2318_v12 = vld [vmem:[#allocation2 + $0x129] sm:$0xff] }
 0x221   : > { %v2493_v54 = vadd.f32 %v2401_v35, %v2235_v47 }
 0x222   : > { %v1890_v51 = vpop.f32.mrf.mxu1  ;;  %v2665_v1 = vpop.f32.mrf.mxu0 }
 0x223   : > { %v2751_v14 = vadd.f32 %v2659_v33, %v2493_v54  ;;  %2193 = vmatmul.f32.gmra.mxu2 %v2058_v4  ;;  %v2576_v33 = vld [vmem:[#allocation2 + $0x12a] sm:$0xff]  ;;  %v1978_v17 = vadd.f32 %v1890_v51, %v4133_v56 }
 0x224   : > { %2451 = vmatmul.f32.gmra.mxu3 %v2316_v50 }
 0x225   : > { %2847 = vst [vmem:[%s4286_s25 + $0x10] sm:$0xff] %v2751_v14  ;;  %v2878_v10 = vadd.f32 %v2877_v0, %v2751_v14  ;;  %v2917_v8 = vmul.f32 %v2751_v14, %v2751_v14  ;;  %1937 = vmatmul.f32.gmra.mxu1 %v2573_v58  ;;  %2712 = vmatmul.f32.gmra.mxu0 %v2575_v32  ;;  %v2060_v0 = vld [vmem:[#allocation2 + $0x128] sm:$0xff] }
 0x226   : > { %v2146_v44 = vpop.f32.mrf.mxu2 }
 0x227   : > { %v2948_v16 = vadd.f32 %v2947_v15, %v2917_v8  ;;  %v2236_v19 = vadd.f32 %v2146_v44, %v1977_v13  ;;  %v2404_v29 = vpop.f32.mrf.mxu3  ;;  %v2061_v13 = vld [vmem:[#allocation2 + $0x138] sm:$0xff] }
 0x228   : > { %v2319_v8 = vld [vmem:[#allocation2 + $0x139] sm:$0xff] }
 0x229   : > { %v2494_v30 = vadd.f32 %v2404_v29, %v2236_v19 }
 0x22a   : > { %v1893_v9 = vpop.f32.mrf.mxu1  ;;  %v2668_v6 = vpop.f32.mrf.mxu0 }
 0x22b   : > { %v2752_v55 = vadd.f32 %v2662_v21, %v2494_v30  ;;  %2196 = vmatmul.f32.gmra.mxu2 %v2059_v5  ;;  %v2577_v21 = vld [vmem:[#allocation2 + $0x13a] sm:$0xff]  ;;  %v1979_v56 = vadd.f32 %v1893_v9, %v4141_v38 }
 0x22c   : > { %2454 = vmatmul.f32.gmra.mxu3 %v2317_v48 }
 0x22d   : > { %2848 = vst [vmem:[%s4286_s25 + $0x18] sm:$0xff] %v2752_v55  ;;  %v2879_v27 = vadd.f32 %v2878_v10, %v2752_v55  ;;  %v2918_v58 = vmul.f32 %v2752_v55, %v2752_v55  ;;  %1940 = vmatmul.f32.gmra.mxu1 %v2574_v62  ;;  %2715 = vmatmul.f32.gmra.mxu0 %v2576_v33  ;;  %v2062_v55 = vld [vmem:[#allocation2 + $0x140] sm:$0xff] }
 0x22e   : > { %v2149_v31 = vpop.f32.mrf.mxu2 }
 0x22f   : > { %v2949_v53 = vadd.f32 %v2948_v16, %v2918_v58  ;;  %v2237_v20 = vadd.f32 %v2149_v31, %v1978_v17  ;;  %v2407_v26 = vpop.f32.mrf.mxu3 }
 0x231   : > { %v2495_v41 = vadd.f32 %v2407_v26, %v2237_v20 }
 0x232   : > { %v1896_v15 = vpop.f32.mrf.mxu1  ;;  %v2671_v47 = vpop.f32.mrf.mxu0 }
 0x233   : > { %v2753_v35 = vadd.f32 %v2665_v1, %v2495_v41  ;;  %2199 = vmatmul.f32.gmra.mxu2 %v2060_v0  ;;  %v2578_v1 = vld [vmem:[#allocation2 + $0x142] sm:$0xff]  ;;  %v1980_v38 = vadd.f32 %v1896_v15, %v4154_v46  ;;  %v2063_v15 = vld [vmem:[#allocation2 + $0x150] sm:$0xff] }
 0x234   : > { %2457 = vmatmul.f32.gmra.mxu3 %v2318_v12 }
 0x235   : > { %2849 = vst [vmem:[%s4286_s25 + $0x20] sm:$0xff] %v2753_v35  ;;  %v2880_v4 = vadd.f32 %v2879_v27, %v2753_v35  ;;  %v2919_v62 = vmul.f32 %v2753_v35, %v2753_v35  ;;  %1943 = vmatmul.f32.gmra.mxu1 %v2575_v32  ;;  %2718 = vmatmul.f32.gmra.mxu0 %v2577_v21  ;;  %v2320_v27 = vld [vmem:[#allocation2 + $0x141] sm:$0xff] }
 0x236   : > { %v2152_v54 = vpop.f32.mrf.mxu2 }
 0x237   : > { %v2950_v50 = vadd.f32 %v2949_v53, %v2919_v62  ;;  %v2238_v51 = vadd.f32 %v2152_v54, %v1979_v56  ;;  %v2410_v14 = vpop.f32.mrf.mxu3  ;;  %v2321_v56 = vld [vmem:[#allocation2 + $0x151] sm:$0xff] }
 0x239   : > { %v2496_v10 = vadd.f32 %v2410_v14, %v2238_v51 }
 0x23a   : > { %v1899_v44 = vpop.f32.mrf.mxu1  ;;  %v2674_v16 = vpop.f32.mrf.mxu0 }
 0x23b   : > { %v2754_v19 = vadd.f32 %v2668_v6, %v2496_v10  ;;  %2202 = vmatmul.f32.gmra.mxu2 %v2061_v13  ;;  %v2579_v6 = vld [vmem:[#allocation2 + $0x152] sm:$0xff]  ;;  %v1981_v46 = vadd.f32 %v1899_v44, %v4160_v60 }
 0x23c   : > { %2460 = vmatmul.f32.gmra.mxu3 %v2319_v8  ;;  %v2064_v8 = vld [vmem:[#allocation2 + $0x158] sm:$0xff] }
 0x23d   : > { %2850 = vst [vmem:[%s4286_s25 + $0x28] sm:$0xff] %v2754_v19  ;;  %v2881_v29 = vadd.f32 %v2880_v4, %v2754_v19  ;;  %v2920_v32 = vmul.f32 %v2754_v19, %v2754_v19  ;;  %1946 = vmatmul.f32.gmra.mxu1 %v2576_v33  ;;  %2721 = vmatmul.f32.gmra.mxu0 %v2578_v1  ;;  %v2322_v19 = vld [vmem:[#allocation2 + $0x159] sm:$0xff] }
 0x23e   : > { %v2155_v5 = vpop.f32.mrf.mxu2 }
 0x23f   : > { %v2951_v30 = vadd.f32 %v2950_v50, %v2920_v32  ;;  %v2239_v48 = vadd.f32 %v2155_v5, %v1980_v38  ;;  %v2413_v9 = vpop.f32.mrf.mxu3 }
 0x241   : > { %v2497_v17 = vadd.f32 %v2413_v9, %v2239_v48 }
 0x242   : > { %v1902_v58 = vpop.f32.mrf.mxu1  ;;  %v2677_v31 = vpop.f32.mrf.mxu0 }
 0x243   : > { %v2755_v53 = vadd.f32 %v2671_v47, %v2497_v17  ;;  %2205 = vmatmul.f32.gmra.mxu2 %v2062_v55  ;;  %v2580_v47 = vld [vmem:[#allocation2 + $0x15a] sm:$0xff]  ;;  %v1982_v60 = vadd.f32 %v1902_v58, %v4181_v7  ;;  %v2065_v17 = vld [vmem:[#allocation2 + $0x168] sm:$0xff] }
 0x244   : > { %2463 = vmatmul.f32.gmra.mxu3 %v2320_v27  ;;  %v2323_v58 = vld [vmem:[#allocation2 + $0x169] sm:$0xff] }
 0x245   : > { %2851 = vst [vmem:[%s4286_s25 + $0x30] sm:$0xff] %v2755_v53  ;;  %v2882_v20 = vadd.f32 %v2881_v29, %v2755_v53  ;;  %v2921_v33 = vmul.f32 %v2755_v53, %v2755_v53  ;;  %1949 = vmatmul.f32.gmra.mxu1 %v2577_v21  ;;  %2724 = vmatmul.f32.gmra.mxu0 %v2579_v6 }
 0x246   : > { %v2158_v26 = vpop.f32.mrf.mxu2 }
 0x247   : > { %v2952_v0 = vadd.f32 %v2951_v30, %v2921_v33  ;;  %v2240_v41 = vadd.f32 %v2158_v26, %v1981_v46  ;;  %v2416_v12 = vpop.f32.mrf.mxu3 }
 0x249   : > { %v2498_v35 = vadd.f32 %v2416_v12, %v2240_v41 }
 0x24a   : > { %v1905_v4 = vpop.f32.mrf.mxu1  ;;  %v2680_v62 = vpop.f32.mrf.mxu0 }
 0x24b   : > { %v2756_v54 = vadd.f32 %v2674_v16, %v2498_v35  ;;  %2208 = vmatmul.f32.gmra.mxu2 %v2063_v15  ;;  %v2581_v16 = vld [vmem:[#allocation2 + $0x16a] sm:$0xff]  ;;  %v1983_v7 = vadd.f32 %v1905_v4, %v4193_v22 }
 0x24c   : > { %2466 = vmatmul.f32.gmra.mxu3 %v2321_v56  ;;  %v2066_v15 = vld [vmem:[#allocation2 + $0x170] sm:$0xff] }
 0x24d   : > { %2852 = vst [vmem:[%s4286_s25 + $0x38] sm:$0xff] %v2756_v54  ;;  %v2883_v50 = vadd.f32 %v2882_v20, %v2756_v54  ;;  %v2922_v21 = vmul.f32 %v2756_v54, %v2756_v54  ;;  %1952 = vmatmul.f32.gmra.mxu1 %v2578_v1  ;;  %2727 = vmatmul.f32.gmra.mxu0 %v2580_v47  ;;  %v2324_v56 = vld [vmem:[#allocation2 + $0x171] sm:$0xff] }
 0x24e   : > { %v2161_v51 = vpop.f32.mrf.mxu2 }
 0x24f   : > { %v2953_v14 = vadd.f32 %v2952_v0, %v2922_v21  ;;  %v2241_v13 = vadd.f32 %v2161_v51, %v1982_v60  ;;  %v2419_v10 = vpop.f32.mrf.mxu3 }
 0x251   : > { %v2499_v44 = vadd.f32 %v2419_v10, %v2241_v13  ;;  %v2067_v10 = vld [vmem:[#allocation2 + $0x180] sm:$0xff] }
 0x252   : > { %v1908_v38 = vpop.f32.mrf.mxu1  ;;  %v2683_v29 = vpop.f32.mrf.mxu0 }
 0x253   : > { %v2757_v32 = vadd.f32 %v2677_v31, %v2499_v44  ;;  %2211 = vmatmul.f32.gmra.mxu2 %v2064_v8  ;;  %v2582_v31 = vld [vmem:[#allocation2 + $0x172] sm:$0xff]  ;;  %v1984_v22 = vadd.f32 %v1908_v38, %v4208_v34  ;;  %v2325_v44 = vld [vmem:[#allocation2 + $0x181] sm:$0xff] }
 0x254   : > { %2469 = vmatmul.f32.gmra.mxu3 %v2322_v19 }
 0x255   : > { %2853 = vst [vmem:[%s4286_s25 + $0x40] sm:$0xff] %v2757_v32  ;;  %v2884_v5 = vadd.f32 %v2883_v50, %v2757_v32  ;;  %v2923_v1 = vmul.f32 %v2757_v32, %v2757_v32  ;;  %1955 = vmatmul.f32.gmra.mxu1 %v2579_v6  ;;  %2730 = vmatmul.f32.gmra.mxu0 %v2581_v16 }
 0x256   : > { %v2164_v30 = vpop.f32.mrf.mxu2 }
 0x257   : > { %v2954_v48 = vadd.f32 %v2953_v14, %v2923_v1  ;;  %v2242_v9 = vadd.f32 %v2164_v30, %v1983_v7  ;;  %v2422_v55 = vpop.f32.mrf.mxu3 }
 0x259   : > { %v2500_v27 = vadd.f32 %v2422_v55, %v2242_v9  ;;  %v2068_v9 = vld [vmem:[#allocation2 + $0x188] sm:$0xff] }
 0x25a   : > { %v1911_v53 = vpop.f32.mrf.mxu1  ;;  %v2686_v46 = vpop.f32.mrf.mxu0 }
 0x25b   : > { %v2758_v20 = vadd.f32 %v2680_v62, %v2500_v27  ;;  %2214 = vmatmul.f32.gmra.mxu2 %v2065_v17  ;;  %v2583_v62 = vld [vmem:[#allocation2 + $0x182] sm:$0xff]  ;;  %v1985_v34 = vadd.f32 %v1911_v53, %v4214_v42  ;;  %v2585_v53 = vld [vmem:[#allocation2 + $0x19a] sm:$0xff] }
 0x25c   : > { %2472 = vmatmul.f32.gmra.mxu3 %v2323_v58  ;;  %v2326_v17 = vld [vmem:[#allocation2 + $0x189] sm:$0xff] }
 0x25d   : > { %2854 = vst [vmem:[%s4286_s25 + $0x48] sm:$0xff] %v2758_v20  ;;  %v2885_v33 = vadd.f32 %v2884_v5, %v2758_v20  ;;  %v2924_v6 = vmul.f32 %v2758_v20, %v2758_v20  ;;  %1958 = vmatmul.f32.gmra.mxu1 %v2580_v47  ;;  %2733 = vmatmul.f32.gmra.mxu0 %v2582_v31 }
 0x25e   : > { %v2167_v26 = vpop.f32.mrf.mxu2 }
 0x25f   : > { %v2955_v0 = vadd.f32 %v2954_v48, %v2924_v6  ;;  %v2243_v41 = vadd.f32 %v2167_v26, %v1984_v22  ;;  %v2425_v12 = vpop.f32.mrf.mxu3 }
 0x261   : > { %v2501_v35 = vadd.f32 %v2425_v12, %v2243_v41  ;;  %v2327_v41 = vld [vmem:[#allocation2 + $0x199] sm:$0xff] }
 0x262   : > { %v1914_v4 = vpop.f32.mrf.mxu1  ;;  %v2689_v54 = vpop.f32.mrf.mxu0 }
 0x263   : > { %v2759_v60 = vadd.f32 %v2683_v29, %v2501_v35  ;;  %2217 = vmatmul.f32.gmra.mxu2 %v2066_v15  ;;  %v2584_v29 = vld [vmem:[#allocation2 + $0x18a] sm:$0xff]  ;;  %v1986_v42 = vadd.f32 %v1914_v4, %v4217_v11  ;;  %v2586_v35 = vld [vmem:[#allocation2 + $0x1a2] sm:$0xff] }
 0x264   : > { %2475 = vmatmul.f32.gmra.mxu3 %v2324_v56  ;;  %v3275_v4 = vld [vmem:[#allocation2] sm:$0xff] }
 0x265   : > { %2855 = vst [vmem:[%s4286_s25 + $0x50] sm:$0xff] %v2759_v60  ;;  %v2886_v50 = vadd.f32 %v2885_v33, %v2759_v60  ;;  %v2925_v47 = vmul.f32 %v2759_v60, %v2759_v60  ;;  %1961 = vmatmul.f32.gmra.mxu1 %v2581_v16  ;;  %2736 = vmatmul.f32.gmra.mxu0 %v2583_v62 }
 0x266   : > { %v2170_v21 = vpop.f32.mrf.mxu2 }
 0x267   : > { %v2956_v51 = vadd.f32 %v2955_v0, %v2925_v47  ;;  %v2244_v14 = vadd.f32 %v2170_v21, %v1985_v34  ;;  %v2428_v13 = vpop.f32.mrf.mxu3 }
 0x269   : > { %v2502_v8 = vadd.f32 %v2428_v13, %v2244_v14 }
 0x26a   : > { %v1917_v19 = vpop.f32.mrf.mxu1  ;;  %v2692_v38 = vpop.f32.mrf.mxu0 }
 0x26b   : > { %v2760_v32 = vadd.f32 %v2686_v46, %v2502_v8  ;;  %2220 = vmatmul.f32.gmra.mxu2 %v2067_v10  ;;  %v1987_v11 = vadd.f32 %v1917_v19, %v4222_v25 }
 0x26c   : > { %2478 = vmatmul.f32.gmra.mxu3 %v2325_v44 }
 0x26d   : > { %2856 = vst [vmem:[%s4286_s25 + $0x58] sm:$0xff] %v2760_v32  ;;  %v2887_v7 = vadd.f32 %v2886_v50, %v2760_v32  ;;  %v2926_v16 = vmul.f32 %v2760_v32, %v2760_v32  ;;  %1964 = vmatmul.f32.gmra.mxu1 %v2582_v31  ;;  %2739 = vmatmul.f32.gmra.mxu0 %v2584_v29 }
 0x26e   : > { %v2173_v5 = vpop.f32.mrf.mxu2 }
 0x26f   : > { %v2957_v1 = vadd.f32 %v2956_v51, %v2926_v16  ;;  %v2245_v30 = vadd.f32 %v2173_v5, %v1986_v42  ;;  %v2431_v48 = vpop.f32.mrf.mxu3  ;;  %v2328_v51 = vld [vmem:[#allocation2 + $0x1a1] sm:$0xff] }
 0x271   : > { %v2503_v55 = vadd.f32 %v2431_v48, %v2245_v30 }
 0x272   : > { %v1920_v27 = vpop.f32.mrf.mxu1  ;;  %v2695_v58 = vpop.f32.mrf.mxu0 }
 0x273   : > { %v2761_v46 = vadd.f32 %v2689_v54, %v2503_v55  ;;  %2223 = vmatmul.f32.gmra.mxu2 %v2068_v9  ;;  %v1988_v25 = vadd.f32 %v1920_v27, %v4227_v37 }
 0x274   : > { %2481 = vmatmul.f32.gmra.mxu3 %v2326_v17 }
 0x275   : > { %2857 = vst [vmem:[%s4286_s25 + $0x60] sm:$0xff] %v2761_v46  ;;  %v2888_v20 = vadd.f32 %v2887_v7, %v2761_v46  ;;  %v2927_v31 = vmul.f32 %v2761_v46, %v2761_v46  ;;  %1967 = vmatmul.f32.gmra.mxu1 %v2583_v62  ;;  %2742 = vmatmul.f32.gmra.mxu0 %v2585_v53 }
 0x276   : > { %v2176_v22 = vpop.f32.mrf.mxu2 }
 0x277   : > { %v2958_v33 = vadd.f32 %v2957_v1, %v2927_v31  ;;  %v2246_v6 = vadd.f32 %v2176_v22, %v1987_v11  ;;  %v2434_v26 = vpop.f32.mrf.mxu3 }
 0x279   : > { %v2504_v0 = vadd.f32 %v2434_v26, %v2246_v6 }
 0x27a   : > { %v1923_v12 = vpop.f32.mrf.mxu1  ;;  %v2698_v15 = vpop.f32.mrf.mxu0 }
 0x27b   : > { %v2762_v56 = vadd.f32 %v2692_v38, %v2504_v0  ;;  %2226 = vmatmul.f32.gmra.mxu2 %v3275_v4  ;;  %v1989_v37 = vadd.f32 %v1923_v12, %v4230_v24 }
 0x27c   : > { %2484 = vmatmul.f32.gmra.mxu3 %v2327_v41 }
 0x27d   : > { %2858 = vst [vmem:[%s4286_s25 + $0x68] sm:$0xff] %v2762_v56  ;;  %v2889_v54 = vadd.f32 %v2888_v20, %v2762_v56  ;;  %v2928_v62 = vmul.f32 %v2762_v56, %v2762_v56  ;;  %1970 = vmatmul.f32.gmra.mxu1 %v2584_v29  ;;  %2745 = vmatmul.f32.gmra.mxu0 %v2586_v35 }
 0x27e   : > { %v2179_v60 = vpop.f32.mrf.mxu2 }
 0x27f   : > { %v2959_v34 = vadd.f32 %v2958_v33, %v2928_v62  ;;  %v2247_v50 = vadd.f32 %v2179_v60, %v1988_v25  ;;  %v2437_v47 = vpop.f32.mrf.mxu3 }
 0x281   : > { %v2505_v21 = vadd.f32 %v2437_v47, %v2247_v50 }
 0x282   : > { %v1926_v14 = vpop.f32.mrf.mxu1  ;;  %v2701_v13 = vpop.f32.mrf.mxu0 }
 0x283   : > { %v2763_v10 = vadd.f32 %v2695_v58, %v2505_v21  ;;  %2229 = vmatmul.f32.gmra.mxu2 %v3275_v4  ;;  %v1990_v1 = vadd.f32 %v1926_v14, %v4233_v59 }
 0x284   : > { %2487 = vmatmul.f32.gmra.mxu3 %v2328_v51 }
 0x285   : > { %2859 = vst [vmem:[%s4286_s25 + $0x70] sm:$0xff] %v2763_v10  ;;  %v2890_v8 = vadd.f32 %v2889_v54, %v2763_v10  ;;  %v2929_v44 = vmul.f32 %v2763_v10, %v2763_v10 }
 0x286   : > { %v2182_v19 = vpop.f32.mrf.mxu2 }
 0x287   : > { %v2960_v38 = vadd.f32 %v2959_v34, %v2929_v44  ;;  %v2248_v29 = vadd.f32 %v2182_v19, %v1989_v37  ;;  %v2440_v32 = vpop.f32.mrf.mxu3 }
 0x289   : > { %v2506_v42 = vadd.f32 %v2440_v32, %v2248_v29 }
 0x28a   : > { %v1929_v7 = vpop.f32.mrf.mxu1  ;;  %v2704_v16 = vpop.f32.mrf.mxu0 }
 0x28b   : > { %v2764_v5 = vadd.f32 %v2698_v15, %v2506_v42  ;;  %v1991_v11 = vadd.f32 %v1929_v7, %v4236_v49 }
 0x28d   : > { %2860 = vst [vmem:[%s4286_s25 + $0x78] sm:$0xff] %v2764_v5  ;;  %v2891_v30 = vadd.f32 %v2890_v8, %v2764_v5  ;;  %v2930_v48 = vmul.f32 %v2764_v5, %v2764_v5 }
 0x28e   : > { %v2185_v9 = vpop.f32.mrf.mxu2 }
 0x28f   : > { %v2961_v55 = vadd.f32 %v2960_v38, %v2930_v48  ;;  %v2249_v24 = vadd.f32 %v2185_v9, %v1990_v1  ;;  %v2443_v17 = vpop.f32.mrf.mxu3 }
 0x291   : > { %v2507_v27 = vadd.f32 %v2443_v17, %v2249_v24 }
 0x292   : > { %v1932_v58 = vpop.f32.mrf.mxu1  ;;  %v2707_v53 = vpop.f32.mrf.mxu0 }
 0x293   : > { %v2765_v46 = vadd.f32 %v2701_v13, %v2507_v27  ;;  %v1992_v15 = vadd.f32 %v1932_v58, %v4239_v2 }
 0x295   : > { %2861 = vst [vmem:[%s4286_s25 + $0x80] sm:$0xff] %v2765_v46  ;;  %v2892_v20 = vadd.f32 %v2891_v30, %v2765_v46  ;;  %v2931_v31 = vmul.f32 %v2765_v46, %v2765_v46 }
 0x296   : > { %v2188_v22 = vpop.f32.mrf.mxu2 }
 0x297   : > { %v2962_v33 = vadd.f32 %v2961_v55, %v2931_v31  ;;  %v2250_v59 = vadd.f32 %v2188_v22, %v1991_v11  ;;  %v2446_v6 = vpop.f32.mrf.mxu3 }
 0x299   : > { %v2508_v26 = vadd.f32 %v2446_v6, %v2250_v59 }
 0x29a   : > { %v1935_v0 = vpop.f32.mrf.mxu1  ;;  %v2710_v41 = vpop.f32.mrf.mxu0 }
 0x29b   : > { %v2766_v12 = vadd.f32 %v2704_v16, %v2508_v26  ;;  %v1993_v47 = vadd.f32 %v1935_v0, %v4242_v63 }
 0x29d   : > { %2862 = vst [vmem:[%s4286_s25 + $0x88] sm:$0xff] %v2766_v12  ;;  %v2893_v35 = vadd.f32 %v2892_v20, %v2766_v12  ;;  %v2932_v56 = vmul.f32 %v2766_v12, %v2766_v12 }
 0x29e   : > { %v2191_v4 = vpop.f32.mrf.mxu2 }
 0x29f   : > { %v2963_v25 = vadd.f32 %v2962_v33, %v2932_v56  ;;  %v2251_v49 = vadd.f32 %v2191_v4, %v1992_v15  ;;  %v2449_v54 = vpop.f32.mrf.mxu3 }
 0x2a1   : > { %v2509_v62 = vadd.f32 %v2449_v54, %v2251_v49 }
 0x2a2   : > { %v1938_v60 = vpop.f32.mrf.mxu1  ;;  %v2713_v34 = vpop.f32.mrf.mxu0 }
 0x2a3   : > { %v2767_v50 = vadd.f32 %v2707_v53, %v2509_v62  ;;  %v1994_v38 = vadd.f32 %v1938_v60, %v4245_v57 }
 0x2a5   : > { %2863 = vst [vmem:[%s4286_s25 + $0x90] sm:$0xff] %v2767_v50  ;;  %v2894_v21 = vadd.f32 %v2893_v35, %v2767_v50  ;;  %v2933_v51 = vmul.f32 %v2767_v50, %v2767_v50 }
 0x2a6   : > { %v2194_v14 = vpop.f32.mrf.mxu2 }
 0x2a7   : > { %v2964_v13 = vadd.f32 %v2963_v25, %v2933_v51  ;;  %v2252_v2 = vadd.f32 %v2194_v14, %v1993_v47  ;;  %v2452_v10 = vpop.f32.mrf.mxu3 }
 0x2a9   : > { %v2510_v37 = vadd.f32 %v2452_v10, %v2252_v2 }
 0x2aa   : > { %v1941_v8 = vpop.f32.mrf.mxu1  ;;  %v2716_v44 = vpop.f32.mrf.mxu0 }
 0x2ab   : > { %v2768_v19 = vadd.f32 %v2710_v41, %v2510_v37  ;;  %v1995_v9 = vadd.f32 %v1941_v8, %v4248_v43 }
 0x2ad   : > { %2864 = vst [vmem:[%s4286_s25 + $0x98] sm:$0xff] %v2768_v19  ;;  %v2895_v29 = vadd.f32 %v2894_v21, %v2768_v19  ;;  %v2934_v32 = vmul.f32 %v2768_v19, %v2768_v19 }
 0x2ae   : > { %v2197_v42 = vpop.f32.mrf.mxu2 }
 0x2af   : > { %v2965_v7 = vadd.f32 %v2964_v13, %v2934_v32  ;;  %v2253_v63 = vadd.f32 %v2197_v42, %v1994_v38  ;;  %v2455_v16 = vpop.f32.mrf.mxu3 }
 0x2b1   : > { %v2511_v5 = vadd.f32 %v2455_v16, %v2253_v63 }
 0x2b2   : > { %v1944_v1 = vpop.f32.mrf.mxu1  ;;  %v2719_v30 = vpop.f32.mrf.mxu0 }
 0x2b3   : > { %v2769_v48 = vadd.f32 %v2713_v34, %v2511_v5  ;;  %v1996_v31 = vadd.f32 %v1944_v1, %v4251_v3 }
 0x2b5   : > { %2865 = vst [vmem:[%s4286_s25 + $0xa0] sm:$0xff] %v2769_v48  ;;  %v2896_v55 = vadd.f32 %v2895_v29, %v2769_v48  ;;  %v2935_v24 = vmul.f32 %v2769_v48, %v2769_v48 }
 0x2b6   : > { %v2200_v17 = vpop.f32.mrf.mxu2 }
 0x2b7   : > { %v2966_v27 = vadd.f32 %v2965_v7, %v2935_v24  ;;  %v2254_v57 = vadd.f32 %v2200_v17, %v1995_v9  ;;  %v2458_v58 = vpop.f32.mrf.mxu3 }
 0x2b9   : > { %v2512_v53 = vadd.f32 %v2458_v58, %v2254_v57 }
 0x2ba   : > { %v1947_v46 = vpop.f32.mrf.mxu1  ;;  %v2722_v11 = vpop.f32.mrf.mxu0 }
 0x2bb   : > { %v2770_v20 = vadd.f32 %v2716_v44, %v2512_v53  ;;  %v1997_v35 = vadd.f32 %v1947_v46, %v4254_v28 }
 0x2bd   : > { %2866 = vst [vmem:[%s4286_s25 + $0xa8] sm:$0xff] %v2770_v20  ;;  %v2897_v22 = vadd.f32 %v2896_v55, %v2770_v20  ;;  %v2936_v33 = vmul.f32 %v2770_v20, %v2770_v20 }
 0x2be   : > { %v2203_v59 = vpop.f32.mrf.mxu2 }
 0x2bf   : > { %v2967_v6 = vadd.f32 %v2966_v27, %v2936_v33  ;;  %v2255_v43 = vadd.f32 %v2203_v59, %v1996_v31  ;;  %v2461_v26 = vpop.f32.mrf.mxu3 }
 0x2c1   : > { %v2513_v0 = vadd.f32 %v2461_v26, %v2255_v43 }
 0x2c2   : > { %v1950_v41 = vpop.f32.mrf.mxu1  ;;  %v2725_v12 = vpop.f32.mrf.mxu0 }
 0x2c3   : > { %v2771_v15 = vadd.f32 %v2719_v30, %v2513_v0  ;;  %v1998_v47 = vadd.f32 %v1950_v41, %v4257_v40 }
 0x2c5   : > { %2867 = vst [vmem:[%s4286_s25 + $0xb0] sm:$0xff] %v2771_v15  ;;  %v2898_v56 = vadd.f32 %v2897_v22, %v2771_v15  ;;  %v2937_v4 = vmul.f32 %v2771_v15, %v2771_v15 }
 0x2c6   : > { %v2206_v25 = vpop.f32.mrf.mxu2 }
 0x2c7   : > { %v2968_v49 = vadd.f32 %v2967_v6, %v2937_v4  ;;  %v2256_v3 = vadd.f32 %v2206_v25, %v1997_v35  ;;  %v2464_v54 = vpop.f32.mrf.mxu3 }
 0x2c9   : > { %v2514_v62 = vadd.f32 %v2464_v54, %v2256_v3 }
 0x2ca   : > { %v1953_v60 = vpop.f32.mrf.mxu1  ;;  %v2728_v50 = vpop.f32.mrf.mxu0 }
 0x2cb   : > { %v2772_v34 = vadd.f32 %v2722_v11, %v2514_v62  ;;  %v1999_v44 = vadd.f32 %v1953_v60, %v4260_v61 }
 0x2cd   : > { %2868 = vst [vmem:[%s4286_s25 + $0xb8] sm:$0xff] %v2772_v34  ;;  %v2899_v21 = vadd.f32 %v2898_v56, %v2772_v34  ;;  %v2938_v51 = vmul.f32 %v2772_v34, %v2772_v34 }
 0x2ce   : > { %v2209_v14 = vpop.f32.mrf.mxu2 }
 0x2cf   : > { %v2969_v13 = vadd.f32 %v2968_v49, %v2938_v51  ;;  %v2257_v28 = vadd.f32 %v2209_v14, %v1998_v47  ;;  %v2467_v2 = vpop.f32.mrf.mxu3 }
 0x2d1   : > { %v2515_v10 = vadd.f32 %v2467_v2, %v2257_v28 }
 0x2d2   : > { %v1956_v37 = vpop.f32.mrf.mxu1  ;;  %v2731_v32 = vpop.f32.mrf.mxu0 }
 0x2d3   : > { %v2773_v8 = vadd.f32 %v2725_v12, %v2515_v10  ;;  %v2000_v1 = vadd.f32 %v1956_v37, %v4263_v39 }
 0x2d5   : > { %2869 = vst [vmem:[%s4286_s25 + $0xc0] sm:$0xff] %v2773_v8  ;;  %v2900_v19 = vadd.f32 %v2899_v21, %v2773_v8  ;;  %v2939_v38 = vmul.f32 %v2773_v8, %v2773_v8 }
 0x2d6   : > { %v2212_v29 = vpop.f32.mrf.mxu2 }
 0x2d7   : > { %v2970_v42 = vadd.f32 %v2969_v13, %v2939_v38  ;;  %v2258_v40 = vadd.f32 %v2212_v29, %v1999_v44  ;;  %v2470_v7 = vpop.f32.mrf.mxu3 }
 0x2d9   : > { %v2516_v63 = vadd.f32 %v2470_v7, %v2258_v40 }
 0x2da   : > { %v1959_v16 = vpop.f32.mrf.mxu1  ;;  %v2734_v17 = vpop.f32.mrf.mxu0 }
 0x2db   : > { %v2774_v5 = vadd.f32 %v2728_v50, %v2516_v63  ;;  %v2001_v53 = vadd.f32 %v1959_v16, %v4266_v18 }
 0x2dd   : > { %2870 = vst [vmem:[%s4286_s25 + $0xc8] sm:$0xff] %v2774_v5  ;;  %v2901_v30 = vadd.f32 %v2900_v19, %v2774_v5  ;;  %v2940_v48 = vmul.f32 %v2774_v5, %v2774_v5 }
 0x2de   : > { %v2215_v9 = vpop.f32.mrf.mxu2 }
 0x2df   : > { %v2971_v55 = vadd.f32 %v2970_v42, %v2940_v48  ;;  %v2259_v61 = vadd.f32 %v2215_v9, %v2000_v1  ;;  %v2473_v24 = vpop.f32.mrf.mxu3 }
 0x2e1   : > { %v2517_v27 = vadd.f32 %v2473_v24, %v2259_v61 }
 0x2e2   : > { %v1962_v58 = vpop.f32.mrf.mxu1  ;;  %v2737_v59 = vpop.f32.mrf.mxu0 }
 0x2e3   : > { %v2775_v57 = vadd.f32 %v2731_v32, %v2517_v27  ;;  %v2002_v43 = vadd.f32 %v1962_v58, %v4269_v52 }
 0x2e5   : > { %2871 = vst [vmem:[%s4286_s25 + $0xd0] sm:$0xff] %v2775_v57  ;;  %v2902_v46 = vadd.f32 %v2901_v30, %v2775_v57  ;;  %v2941_v11 = vmul.f32 %v2775_v57, %v2775_v57 }
 0x2e6   : > { %v2218_v20 = vpop.f32.mrf.mxu2 }
 0x2e7   : > { %v2972_v31 = vadd.f32 %v2971_v55, %v2941_v11  ;;  %v2260_v39 = vadd.f32 %v2218_v20, %v2001_v53  ;;  %v2476_v22 = vpop.f32.mrf.mxu3 }
 0x2e9   : > { %v2518_v33 = vadd.f32 %v2476_v22, %v2260_v39 }
 0x2ea   : > { %v1965_v12 = vpop.f32.mrf.mxu1  ;;  %v2740_v25 = vpop.f32.mrf.mxu0 }
 0x2eb   : > { %v2776_v6 = vadd.f32 %v2734_v17, %v2518_v33  ;;  %v2003_v49 = vadd.f32 %v1965_v12, %v4272_v36 }
 0x2ed   : > { %2872 = vst [vmem:[%s4286_s25 + $0xd8] sm:$0xff] %v2776_v6  ;;  %v2903_v26 = vadd.f32 %v2902_v46, %v2776_v6  ;;  %v2942_v0 = vmul.f32 %v2776_v6, %v2776_v6 }
 0x2ee   : > { %v2221_v41 = vpop.f32.mrf.mxu2 }
 0x2ef   : > { %v2973_v15 = vadd.f32 %v2972_v31, %v2942_v0  ;;  %v2261_v18 = vadd.f32 %v2221_v41, %v2002_v43  ;;  %v2479_v35 = vpop.f32.mrf.mxu3 }
 0x2f1   : > { %v2519_v56 = vadd.f32 %v2479_v35, %v2261_v18 }
 0x2f2   : > { %v1968_v50 = vpop.f32.mrf.mxu1  ;;  %v2743_v2 = vpop.f32.mrf.mxu0 }
 0x2f3   : > { %v2777_v4 = vadd.f32 %v2737_v59, %v2519_v56  ;;  %v2004_v51 = vadd.f32 %v1968_v50, %v4275_v23 }
 0x2f5   : > { %2873 = vst [vmem:[%s4286_s25 + $0xe0] sm:$0xff] %v2777_v4  ;;  %v2904_v3 = vadd.f32 %v2903_v26, %v2777_v4  ;;  %v2943_v54 = vmul.f32 %v2777_v4, %v2777_v4 }
 0x2f6   : > { %v2224_v62 = vpop.f32.mrf.mxu2 }
 0x2f7   : > { %v2974_v60 = vadd.f32 %v2973_v15, %v2943_v54  ;;  %v2262_v52 = vadd.f32 %v2224_v62, %v2003_v49  ;;  %v2482_v34 = vpop.f32.mrf.mxu3 }
 0x2f9   : > { %v2520_v47 = vadd.f32 %v2482_v34, %v2262_v52 }
 0x2fa   : > { %v1971_v44 = vpop.f32.mrf.mxu1  ;;  %v2746_v63 = vpop.f32.mrf.mxu0 }
 0x2fb   : > { %v2778_v21 = vadd.f32 %v2740_v25, %v2520_v47  ;;  %v2005_v38 = vadd.f32 %v1971_v44, %v4278_v45 }
 0x2fd   : > { %2874 = vst [vmem:[%s4286_s25 + $0xe8] sm:$0xff] %v2778_v21  ;;  %v2905_v14 = vadd.f32 %v2904_v3, %v2778_v21  ;;  %v2944_v13 = vmul.f32 %v2778_v21, %v2778_v21 }
 0x2fe   : > { %v2227_v28 = vpop.f32.mrf.mxu2 }
 0x2ff   : > { %v2975_v10 = vadd.f32 %v2974_v60, %v2944_v13  ;;  %v2263_v36 = vadd.f32 %v2227_v28, %v2004_v51  ;;  %v2485_v37 = vpop.f32.mrf.mxu3 }
 0x301   : > { %v2521_v8 = vadd.f32 %v2485_v37, %v2263_v36 }
 0x303   : > { %v2779_v19 = vadd.f32 %v2743_v2, %v2521_v8 }
 0x305   : > { %2875 = vst [vmem:[%s4286_s25 + $0xf0] sm:$0xff] %v2779_v19  ;;  %v2906_v29 = vadd.f32 %v2905_v14, %v2779_v19  ;;  %v2945_v32 = vmul.f32 %v2779_v19, %v2779_v19 }
 0x306   : > { %v2230_v42 = vpop.f32.mrf.mxu2 }
 0x307   : > { %v2976_v23 = vadd.f32 %v2975_v10, %v2945_v32  ;;  %v2264_v40 = vadd.f32 %v2230_v42, %v2005_v38  ;;  %v2488_v7 = vpop.f32.mrf.mxu3 }
 0x309   : > { %v2522_v16 = vadd.f32 %v2488_v7, %v2264_v40 }
 0x30b   : > { %v2780_v5 = vadd.f32 %v2746_v63, %v2522_v16 }
 0x30d   : > { %2876 = vst [vmem:[%s4286_s25 + $0xf8] sm:$0xff] %v2780_v5  ;;  %v2907_v1 = vadd.f32 %v2906_v29, %v2780_v5  ;;  %v2946_v30 = vmul.f32 %v2780_v5, %v2780_v5 }
 0x30f   : > { %v2908_v48 = vrot.slane %v2907_v1, 4  ;;  %v2977_v9 = vadd.f32 %v2976_v23, %v2946_v30 }
 0x311   : > { %v2909_v55 = vadd.f32 %v2908_v48, %v2907_v1  ;;  %v2978_v61 = vrot.slane %v2977_v9, 4 }
 0x313   : > { %v2910_v24 = vrot.slane %v2909_v55, 2  ;;  %v2979_v45 = vadd.f32 %v2978_v61, %v2977_v9 }
 0x315   : > { %v2911_v17 = vadd.f32 %v2910_v24, %v2909_v55  ;;  %v2980_v27 = vrot.slane %v2979_v45, 2 }
 0x317   : > { %v2912_v57 = vrot.slane %v2911_v17, 1  ;;  %v2981_v58 = vadd.f32 %v2980_v27, %v2979_v45 }
 0x319   : > { %v2913_v53 = vadd.f32 %v2912_v57, %v2911_v17  ;;  %v2982_v46 = vrot.slane %v2981_v58, 1 }
 0x31b   : > { %2914 = vst [vmem:[%s235_s29] sm:$0x1] %v2913_v53  ;;  %v2983_v11 = vadd.f32 %v2982_v46, %v2981_v58 }
 0x31d   : > { %2984 = vst [vmem:[%s235_s29 + $0x1] sm:$0x1] %v2983_v11 }
 0x31e PF: > { %s16_s18 = sadd.s32 1, %s3282_s18  }
 0x31f   : > { %p13_p4 = scmp.ge.s32.totalorder %s16_s18, 4  }
 0x321   :  { %15 = sbr.rel (!%p13_p4) target bundleno = 1 (0x1), region = 88 }

</bundles_post_ra>
